<compile_context>
chip_gen: v5e
topology: v5e:2x2
jax: 0.10.0
libtpu: 0.0.40
codegen_flags: <defaults>
</compile_context>

<pallas_src>
import math

import jax
import jax.numpy as jnp
from jax import lax
from jax.experimental import pallas as pl
from jax.experimental.pallas import tpu as pltpu

B = 8          # batch size
IN_DIM = 16    # input_dim
H = 32         # hidden_dim
P = 8          # num_periods
NH = 4         # attention heads
HD = H // NH   # head_dim
PB = P * B
EPS = 1e-5
NEG = -1e30
OUT_W = 128    # lane-dense output width (>= 3*P, multiple of 128)

# ---- slab32 ([*, 32]) row offsets -------------------------------------------
W1_R = 0              # 16 rows: w1 (in->out)
WF2_R = 16            # 64 rows: wf2 (in->out)
B1_R = 80
B2_R = 81
BN1_R = 82            # 2 rows: folded scale, shift
BN2_R = 84            # 2 rows
A1OB_R = 86
A2OB_R = 87
LN1_R = 88            # 2 rows: gamma, beta
LN2_R = 90
LN3_R = 92
BF2_R = 94
S32_ROWS = 95

# ---- wmain ([32, 1024]) column offsets (each section padded to 128 lanes) ----
WEXP_C = 0            # 256 wide
W2_C = 256            # 32 wide
A1QKV_C = 384         # 96 wide
A1O_C = 512           # 32 wide
A2QKV_C = 640         # 96 wide
A2O_C = 768           # 32 wide
WF1_C = 896           # 64 wide
WM_COLS = 1024


# ------------------------------- kernel helpers ------------------------------
def _layer_norm(v, gamma, beta):
    mu = jnp.mean(v, axis=-1, keepdims=True)
    var = jnp.mean((v - mu) ** 2, axis=-1, keepdims=True)
    return (v - mu) * lax.rsqrt(var + EPS) * gamma + beta


def _mha(seq, w_qkv, b_qkv, w_o, b_o, addmask):
    """Multi-head self attention on the period-major slab [PB, H].

    w_qkv: [H, 3H] (Wq|Wk|Wv columns) with the 1/sqrt(HD) scale already folded
    into the Q columns; w_o: [H, H]; additive mask restricts attention to rows
    of the same batch element.
    """
    qkv = jnp.dot(seq, w_qkv, preferred_element_type=jnp.float32) + b_qkv   # [PB, 3H]
    ctx = []
    for hh in range(NH):
        qh = qkv[:, 0 * H + hh * HD: 0 * H + (hh + 1) * HD]
        kh = qkv[:, 1 * H + hh * HD: 1 * H + (hh + 1) * HD]
        vh = qkv[:, 2 * H + hh * HD: 2 * H + (hh + 1) * HD]
        s = lax.dot_general(qh, kh, (((1,), (1,)), ((), ())),
                            preferred_element_type=jnp.float32) + addmask
        s = s - jnp.max(s, axis=-1, keepdims=True)
        e = jnp.exp(s)
        a = e * pl.reciprocal(jnp.sum(e, axis=-1, keepdims=True), approx=True)
        ctx.append(jnp.dot(a, vh, preferred_element_type=jnp.float32))       # [PB, HD]
    ctx = jnp.concatenate(ctx, axis=1)                                       # [PB, H]
    return jnp.dot(ctx, w_o, preferred_element_type=jnp.float32) + b_o


# ----------------------------------- kernel -----------------------------------
def planning_kernel(x_ref, s32_ref, wm_ref, wh1_ref, wh2_ref, vw_ref, out_ref):
    # --- base MLP: (Linear -> ReLU -> BatchNorm(eval, folded) [-> Dropout=id]) x 2
    x = x_ref[...]
    h = jnp.maximum(
        jnp.dot(x, s32_ref[W1_R:W1_R + IN_DIM, :], preferred_element_type=jnp.float32)
        + s32_ref[B1_R:B1_R + 1, :], 0.0)
    h = h * s32_ref[BN1_R:BN1_R + 1, :] + s32_ref[BN1_R + 1:BN1_R + 2, :]
    h = jnp.maximum(
        jnp.dot(h, wm_ref[:, W2_C:W2_C + H], preferred_element_type=jnp.float32)
        + s32_ref[B2_R:B2_R + 1, :], 0.0)
    h = h * s32_ref[BN2_R:BN2_R + 1, :] + s32_ref[BN2_R + 1:BN2_R + 2, :]     # [B, H]

    # --- feature expansion: ONE wide dot, then rearrange to period-major slab -
    flat0 = (jnp.dot(h, wm_ref[:, WEXP_C:WEXP_C + P * H],
                     preferred_element_type=jnp.float32)
             + vw_ref[0:1, 0:P * H])                                          # [B, P*H]
    # row r = p*B + b  <->  (batch b, period p)
    seq = jnp.concatenate([flat0[:, p * H:(p + 1) * H] for p in range(P)], axis=0)

    # --- same-batch additive mask (0 / -1e30), generated in-kernel ------------
    r = lax.broadcasted_iota(jnp.int32, (PB, PB), 0)
    c = lax.broadcasted_iota(jnp.int32, (PB, PB), 1)
    addmask = jnp.where((r & (B - 1)) == (c & (B - 1)), 0.0, NEG).astype(jnp.float32)

    # --- self attention + residual + LayerNorm --------------------------------
    seq = _layer_norm(
        seq + _mha(seq,
                   wm_ref[:, A1QKV_C:A1QKV_C + 3 * H], vw_ref[1:2, 0:3 * H],
                   wm_ref[:, A1O_C:A1O_C + H], s32_ref[A1OB_R:A1OB_R + 1, :],
                   addmask),
        s32_ref[LN1_R:LN1_R + 1, :], s32_ref[LN1_R + 1:LN1_R + 2, :])
    # --- cross attention + residual + LayerNorm -------------------------------
    seq = _layer_norm(
        seq + _mha(seq,
                   wm_ref[:, A2QKV_C:A2QKV_C + 3 * H], vw_ref[2:3, 0:3 * H],
                   wm_ref[:, A2O_C:A2O_C + H], s32_ref[A2OB_R:A2OB_R + 1, :],
                   addmask),
        s32_ref[LN2_R:LN2_R + 1, :], s32_ref[LN2_R + 1:LN2_R + 2, :])
    # --- position-wise feed forward + residual + LayerNorm --------------------
    ffh = jnp.maximum(
        jnp.dot(seq, wm_ref[:, WF1_C:WF1_C + 2 * H], preferred_element_type=jnp.float32)
        + vw_ref[3:4, 0:2 * H], 0.0)
    ffo = (jnp.dot(ffh, s32_ref[WF2_R:WF2_R + 2 * H, :], preferred_element_type=jnp.float32)
           + s32_ref[BF2_R:BF2_R + 1, :])
    seq = _layer_norm(seq + ffo,
                      s32_ref[LN3_R:LN3_R + 1, :], s32_ref[LN3_R + 1:LN3_R + 2, :])

    # --- task heads: one wide hidden dot + one block-diagonal (padded) output dot
    flat = jnp.concatenate([seq[p * B:(p + 1) * B, :] for p in range(P)], axis=1)  # [B, P*H]
    hid = jnp.maximum(
        jnp.dot(flat, wh1_ref[...], preferred_element_type=jnp.float32)
        + vw_ref[4:5, 0:3 * H], 0.0)                                                # [B, 3H]
    raw = (jnp.dot(hid, wh2_ref[...], preferred_element_type=jnp.float32)
           + vw_ref[5:6, 0:OUT_W])                                                  # [B, OUT_W]
    col = lax.broadcasted_iota(jnp.int32, (B, OUT_W), 1)
    out_ref[...] = jnp.where(col < P,
                             1.0 / (1.0 + jnp.exp(-raw)),   # Sigmoid head (cols 0:P)
                             jnp.maximum(raw, 0.0))         # ReLU heads  (cols P:3P); pad cols = 0
    # TODO(synk): attention weights (return_attention=True path) are not emitted as outputs.


# ----------------------------------- wrapper -----------------------------------
def production_planning_forward(packed, x):
    vmem = pl.BlockSpec(memory_space=pltpu.MemorySpace.VMEM)
    out = pl.pallas_call(
        planning_kernel,
        out_shape=jax.ShapeDtypeStruct((B, OUT_W), jnp.float32),
        in_specs=[vmem] * 6,
        out_specs=vmem,
    )(x, packed["slab32"], packed["wmain"], packed["wh1p"],
      packed["wh2blk"], packed["vecwide"])
    return out[:, 0:P], out[:, P:2 * P], out[:, 2 * P:3 * P]


# ------------------------------- parameter packing ------------------------------
def pack_params(p):
    def bn_fold(bn):
        g, bt, mu, vr = bn
        scale = g / jnp.sqrt(vr + EPS)
        shift = bt - mu * scale
        return jnp.stack([scale, shift])                       # [2, H]

    def qkv_fold(w, b):
        s = 1.0 / math.sqrt(HD)
        w = jnp.concatenate([w[:, :H] * s, w[:, H:]], axis=1)  # scale Q columns
        b = jnp.concatenate([b[:H] * s, b[H:]])
        return w, b

    a1_qkv_w, a1_qkv_b = qkv_fold(p["a1_qkv_w"], p["a1_qkv_b"])
    a2_qkv_w, a2_qkv_b = qkv_fold(p["a2_qkv_w"], p["a2_qkv_b"])

    slab32 = jnp.concatenate([
        p["w1"],                                     # rows  0:16
        p["wf2"],                                    # rows 16:80
        p["b1"][None, :], p["b2"][None, :],          # 80, 81
        bn_fold(p["bn1"]), bn_fold(p["bn2"]),        # 82:84, 84:86
        p["a1_o_b"][None, :], p["a2_o_b"][None, :],  # 86, 87
        p["ln1"], p["ln2"], p["ln3"],                # 88:90, 90:92, 92:94
        p["bf2"][None, :],                           # 94
    ], axis=0)                                       # [95, 32]

    def padc(w, total):
        return jnp.pad(w, ((0, 0), (0, total - w.shape[1])))

    wmain = jnp.concatenate([
        p["wexp"],                  # 0:256
        padc(p["w2"], 128),         # 256:...
        padc(a1_qkv_w, 128),        # 384:...
        padc(p["a1_o_w"], 128),     # 512:...
        padc(a2_qkv_w, 128),        # 640:...
        padc(p["a2_o_w"], 128),     # 768:...
        padc(p["wf1"], 128),        # 896:...
    ], axis=1)                      # [32, 1024]

    wh1p = jnp.concatenate([p["wh1"][i] for i in range(3)], axis=1)   # [256, 96]

    wh2blk = jnp.zeros((3 * H, OUT_W), jnp.float32)                   # lane-dense output dot
    for i in range(3):
        wh2blk = wh2blk.at[i * H:(i + 1) * H, i * P:(i + 1) * P].set(p["wh2"][i])

    def padrow(v):
        return jnp.pad(v, (0, P * H - v.shape[0]))[None, :]

    vecwide = jnp.concatenate([
        padrow(p["bexp"]),               # row 0
        padrow(a1_qkv_b),                # row 1
        padrow(a2_qkv_b),                # row 2
        padrow(p["bf1"]),                # row 3
        padrow(p["bh1"].reshape(-1)),    # row 4
        padrow(p["bh2"].reshape(-1)),    # row 5
    ], axis=0)                           # [6, 256]

    return {"slab32": slab32, "wmain": wmain, "wh1p": wh1p,
            "wh2blk": wh2blk, "vecwide": vecwide}


# --------------------------- deterministic parameters ---------------------------
def make_params(key):
    kit = iter(jax.random.split(key, 48))

    def uni(shape, fan_in):
        bound = 1.0 / math.sqrt(fan_in)
        return jax.random.uniform(next(kit), shape, jnp.float32, -bound, bound)

    def nrm(shape, scale):
        return scale * jax.random.normal(next(kit), shape, jnp.float32)

    p = {}
    p["w1"], p["b1"] = uni((IN_DIM, H), IN_DIM), uni((H,), IN_DIM)
    p["bn1"] = jnp.stack([1.0 + nrm((H,), 0.1), nrm((H,), 0.1), nrm((H,), 0.1),
                          jax.random.uniform(next(kit), (H,), jnp.float32, 0.5, 1.5)])
    p["w2"], p["b2"] = uni((H, H), H), uni((H,), H)
    p["bn2"] = jnp.stack([1.0 + nrm((H,), 0.1), nrm((H,), 0.1), nrm((H,), 0.1),
                          jax.random.uniform(next(kit), (H,), jnp.float32, 0.5, 1.5)])
    p["wexp"], p["bexp"] = uni((H, P * H), H), uni((P * H,), H)
    p["a1_qkv_w"], p["a1_qkv_b"] = uni((H, 3 * H), H), uni((3 * H,), H)
    p["a1_o_w"], p["a1_o_b"] = uni((H, H), H), uni((H,), H)
    p["ln1"] = jnp.stack([1.0 + nrm((H,), 0.05), nrm((H,), 0.05)])
    p["a2_qkv_w"], p["a2_qkv_b"] = uni((H, 3 * H), H), uni((3 * H,), H)
    p["a2_o_w"], p["a2_o_b"] = uni((H, H), H), uni((H,), H)
    p["ln2"] = jnp.stack([1.0 + nrm((H,), 0.05), nrm((H,), 0.05)])
    p["wf1"], p["bf1"] = uni((H, 2 * H), H), uni((2 * H,), H)
    p["wf2"], p["bf2"] = uni((2 * H, H), 2 * H), uni((H,), 2 * H)
    p["ln3"] = jnp.stack([1.0 + nrm((H,), 0.05), nrm((H,), 0.05)])
    p["wh1"], p["bh1"] = uni((3, P * H, H), P * H), uni((3, H), P * H)
    p["wh2"], p["bh2"] = uni((3, H, P), H), uni((3, P), H)
    return p


# ------------------------ plain-JAX reference (host side) ------------------------
def reference_forward(p, x):
    hp = lax.Precision.HIGHEST

    h = jnp.maximum(jnp.dot(x, p["w1"], precision=hp) + p["b1"], 0.0)
    g, bt, mu, vr = p["bn1"]
    h = (h - mu) / jnp.sqrt(vr + EPS) * g + bt
    h = jnp.maximum(jnp.dot(h, p["w2"], precision=hp) + p["b2"], 0.0)
    g, bt, mu, vr = p["bn2"]
    h = (h - mu) / jnp.sqrt(vr + EPS) * g + bt

    seq = (jnp.dot(h, p["wexp"], precision=hp) + p["bexp"]).reshape(B, P, H)

    def mha(s, wqkv, bqkv, wo, bo):
        qkv = jnp.einsum("bpi,io->bpo", s, wqkv, precision=hp) + bqkv
        q, k, v = qkv[..., 0:H], qkv[..., H:2 * H], qkv[..., 2 * H:3 * H]
        qh = q.reshape(B, P, NH, HD).transpose(0, 2, 1, 3)
        kh = k.reshape(B, P, NH, HD).transpose(0, 2, 1, 3)
        vh = v.reshape(B, P, NH, HD).transpose(0, 2, 1, 3)
        att = jnp.einsum("bhqd,bhkd->bhqk", qh, kh, precision=hp) / math.sqrt(HD)
        att = jax.nn.softmax(att, axis=-1)
        ctx = jnp.einsum("bhqk,bhkd->bhqd", att, vh, precision=hp)
        ctx = ctx.transpose(0, 2, 1, 3).reshape(B, P, H)
        return jnp.einsum("bpi,io->bpo", ctx, wo, precision=hp) + bo

    def ln(xx, g2):
        mu2 = xx.mean(-1, keepdims=True)
        var2 = ((xx - mu2) ** 2).mean(-1, keepdims=True)
        return (xx - mu2) / jnp.sqrt(var2 + EPS) * g2[0] + g2[1]

    seq = ln(seq + mha(seq, p["a1_qkv_w"], p["a1_qkv_b"], p["a1_o_w"], p["a1_o_b"]), p["ln1"])
    seq = ln(seq + mha(seq, p["a2_qkv_w"], p["a2_qkv_b"], p["a2_o_w"], p["a2_o_b"]), p["ln2"])
    ffh = jnp.maximum(jnp.einsum("bpi,io->bpo", seq, p["wf1"], precision=hp) + p["bf1"], 0.0)
    ffo = jnp.einsum("bpi,io->bpo", ffh, p["wf2"], precision=hp) + p["bf2"]
    seq = ln(seq + ffo, p["ln3"])

    flat = seq.reshape(B, P * H)
    outs = []
    for hi in range(3):
        hid = jnp.maximum(jnp.dot(flat, p["wh1"][hi], precision=hp) + p["bh1"][hi], 0.0)
        outs.append(jnp.dot(hid, p["wh2"][hi], precision=hp) + p["bh2"][hi])
    return (jax.nn.sigmoid(outs[0]), jnp.maximum(outs[1], 0.0), jnp.maximum(outs[2], 0.0))


# ------------------------------------- main -------------------------------------
if __name__ == "__main__":
    key = jax.random.PRNGKey(0)
    pkey, xkey = jax.random.split(key)
    params = make_params(pkey)
    x = jax.random.normal(xkey, (B, IN_DIM), jnp.float32)

    packed = pack_params(params)           # done once, outside the jitted forward
    fwd = jax.jit(production_planning_forward)
    setup, prod, inv = jax.block_until_ready(fwd(packed, x))

    ref_setup, ref_prod, ref_inv = reference_forward(params, x)
    for got, want in zip((setup, prod, inv), (ref_setup, ref_prod, ref_inv)):
        assert got.shape == (B, P), got.shape
        err = float(jnp.max(jnp.abs(got - want)))
        assert err < 5e-2, f"kernel/reference mismatch: max abs err {err}"

    print("KERNEL_OK")
</pallas_src>

<mosaic_0001>
module attributes {stable_mosaic.version = 11 : i64} {
  func.func @planning_kernel(%arg0: memref<8x16xf32, #tpu.memory_space<vmem>>, %arg1: memref<95x32xf32, #tpu.memory_space<vmem>>, %arg2: memref<32x1024xf32, #tpu.memory_space<vmem>>, %arg3: memref<256x96xf32, #tpu.memory_space<vmem>>, %arg4: memref<96x128xf32, #tpu.memory_space<vmem>>, %arg5: memref<6x256xf32, #tpu.memory_space<vmem>>, %arg6: memref<8x128xf32, #tpu.memory_space<vmem>>) attributes {dimension_semantics = [], scalar_prefetch = 0 : i64, scratch_operands = 0 : i64, tpu.core_type = #tpu.core_type<tc>} {
    %c0 = arith.constant 0 : index
    %c0_0 = arith.constant 0 : index
    %0 = vector.load %arg0[%c0, %c0_0] : memref<8x16xf32, #tpu.memory_space<vmem>>, vector<8x16xf32>
    %c0_1 = arith.constant 0 : index
    %c0_2 = arith.constant 0 : index
    %1 = vector.load %arg1[%c0_1, %c0_2] : memref<95x32xf32, #tpu.memory_space<vmem>>, vector<16x32xf32>
    %cst = arith.constant dense<0.000000e+00> : vector<8x32xf32>
    %2 = tpu.matmul %0, %1, %cst {dimension_numbers = #tpu.dot_dimension_numbers<[1], [0], [0], [1], [0, 0, 1, 1], [], []>} : vector<8x16xf32>, vector<16x32xf32>, vector<8x32xf32> -> vector<8x32xf32>
    %c80 = arith.constant 80 : index
    %c0_3 = arith.constant 0 : index
    %3 = vector.load %arg1[%c80, %c0_3] : memref<95x32xf32, #tpu.memory_space<vmem>>, vector<1x32xf32>
    %4 = vector.broadcast %3 : vector<1x32xf32> to vector<8x32xf32>
    %5 = arith.addf %2, %4 : vector<8x32xf32>
    %cst_4 = arith.constant 0.000000e+00 : f32
    %6 = vector.broadcast %cst_4 : f32 to vector<8x32xf32>
    %7 = arith.maximumf %5, %6 : vector<8x32xf32>
    %c82 = arith.constant 82 : index
    %c0_5 = arith.constant 0 : index
    %8 = vector.load %arg1[%c82, %c0_5] : memref<95x32xf32, #tpu.memory_space<vmem>>, vector<1x32xf32>
    %9 = vector.broadcast %8 : vector<1x32xf32> to vector<8x32xf32>
    %10 = arith.mulf %7, %9 : vector<8x32xf32>
    %c83 = arith.constant 83 : index
    %c0_6 = arith.constant 0 : index
    %11 = vector.load %arg1[%c83, %c0_6] : memref<95x32xf32, #tpu.memory_space<vmem>>, vector<1x32xf32>
    %12 = vector.broadcast %11 : vector<1x32xf32> to vector<8x32xf32>
    %13 = arith.addf %10, %12 : vector<8x32xf32>
    %c0_7 = arith.constant 0 : index
    %c256 = arith.constant 256 : index
    %14 = vector.load %arg2[%c0_7, %c256] : memref<32x1024xf32, #tpu.memory_space<vmem>>, vector<32x32xf32>
    %cst_8 = arith.constant dense<0.000000e+00> : vector<8x32xf32>
    %15 = tpu.matmul %13, %14, %cst_8 {dimension_numbers = #tpu.dot_dimension_numbers<[1], [0], [0], [1], [0, 0, 1, 1], [], []>} : vector<8x32xf32>, vector<32x32xf32>, vector<8x32xf32> -> vector<8x32xf32>
    %c81 = arith.constant 81 : index
    %c0_9 = arith.constant 0 : index
    %16 = vector.load %arg1[%c81, %c0_9] : memref<95x32xf32, #tpu.memory_space<vmem>>, vector<1x32xf32>
    %17 = vector.broadcast %16 : vector<1x32xf32> to vector<8x32xf32>
    %18 = arith.addf %15, %17 : vector<8x32xf32>
    %cst_10 = arith.constant 0.000000e+00 : f32
    %19 = vector.broadcast %cst_10 : f32 to vector<8x32xf32>
    %20 = arith.maximumf %18, %19 : vector<8x32xf32>
    %c84 = arith.constant 84 : index
    %c0_11 = arith.constant 0 : index
    %21 = vector.load %arg1[%c84, %c0_11] : memref<95x32xf32, #tpu.memory_space<vmem>>, vector<1x32xf32>
    %22 = vector.broadcast %21 : vector<1x32xf32> to vector<8x32xf32>
    %23 = arith.mulf %20, %22 : vector<8x32xf32>
    %c85 = arith.constant 85 : index
    %c0_12 = arith.constant 0 : index
    %24 = vector.load %arg1[%c85, %c0_12] : memref<95x32xf32, #tpu.memory_space<vmem>>, vector<1x32xf32>
    %25 = vector.broadcast %24 : vector<1x32xf32> to vector<8x32xf32>
    %26 = arith.addf %23, %25 : vector<8x32xf32>
    %c0_13 = arith.constant 0 : index
    %c0_14 = arith.constant 0 : index
    %27 = vector.load %arg2[%c0_13, %c0_14] : memref<32x1024xf32, #tpu.memory_space<vmem>>, vector<32x256xf32>
    %cst_15 = arith.constant dense<0.000000e+00> : vector<8x256xf32>
    %28 = tpu.matmul %26, %27, %cst_15 {dimension_numbers = #tpu.dot_dimension_numbers<[1], [0], [0], [1], [0, 0, 1, 1], [], []>} : vector<8x32xf32>, vector<32x256xf32>, vector<8x256xf32> -> vector<8x256xf32>
    %c0_16 = arith.constant 0 : index
    %c0_17 = arith.constant 0 : index
    %29 = vector.load %arg5[%c0_16, %c0_17] : memref<6x256xf32, #tpu.memory_space<vmem>>, vector<1x256xf32>
    %30 = vector.broadcast %29 : vector<1x256xf32> to vector<8x256xf32>
    %31 = arith.addf %28, %30 : vector<8x256xf32>
    %32 = vector.extract_strided_slice %31 {offsets = [0, 0], sizes = [8, 32], strides = [1, 1]} : vector<8x256xf32> to vector<8x32xf32>
    %33 = vector.extract_strided_slice %31 {offsets = [0, 32], sizes = [8, 32], strides = [1, 1]} : vector<8x256xf32> to vector<8x32xf32>
    %34 = vector.extract_strided_slice %31 {offsets = [0, 64], sizes = [8, 32], strides = [1, 1]} : vector<8x256xf32> to vector<8x32xf32>
    %35 = vector.extract_strided_slice %31 {offsets = [0, 96], sizes = [8, 32], strides = [1, 1]} : vector<8x256xf32> to vector<8x32xf32>
    %36 = vector.extract_strided_slice %31 {offsets = [0, 128], sizes = [8, 32], strides = [1, 1]} : vector<8x256xf32> to vector<8x32xf32>
    %37 = vector.extract_strided_slice %31 {offsets = [0, 160], sizes = [8, 32], strides = [1, 1]} : vector<8x256xf32> to vector<8x32xf32>
    %38 = vector.extract_strided_slice %31 {offsets = [0, 192], sizes = [8, 32], strides = [1, 1]} : vector<8x256xf32> to vector<8x32xf32>
    %39 = vector.extract_strided_slice %31 {offsets = [0, 224], sizes = [8, 32], strides = [1, 1]} : vector<8x256xf32> to vector<8x32xf32>
    %40 = tpu.concatenate %32, %33, %34, %35, %36, %37, %38, %39 in 0 : vector<8x32xf32>, vector<8x32xf32>, vector<8x32xf32>, vector<8x32xf32>, vector<8x32xf32>, vector<8x32xf32>, vector<8x32xf32>, vector<8x32xf32> -> vector<64x32xf32>
    %41 = tpu.iota {dimensions = array<i32: 0>} : vector<64x64xi32>
    %42 = tpu.iota {dimensions = array<i32: 1>} : vector<64x64xi32>
    %c7_i32 = arith.constant 7 : i32
    %43 = vector.broadcast %c7_i32 : i32 to vector<64x64xi32>
    %44 = arith.andi %41, %43 : vector<64x64xi32>
    %c7_i32_18 = arith.constant 7 : i32
    %45 = vector.broadcast %c7_i32_18 : i32 to vector<64x64xi32>
    %46 = arith.andi %42, %45 : vector<64x64xi32>
    %47 = arith.cmpi eq, %44, %46 : vector<64x64xi32>
    %cst_19 = arith.constant 0.000000e+00 : f32
    %cst_20 = arith.constant -1.000000e+30 : f32
    %48 = vector.broadcast %cst_19 : f32 to vector<64x64xf32>
    %49 = vector.broadcast %cst_20 : f32 to vector<64x64xf32>
    %50 = arith.select %47, %48, %49 : vector<64x64xi1>, vector<64x64xf32>
    %c0_21 = arith.constant 0 : index
    %c384 = arith.constant 384 : index
    %51 = vector.load %arg2[%c0_21, %c384] : memref<32x1024xf32, #tpu.memory_space<vmem>>, vector<32x96xf32>
    %c1 = arith.constant 1 : index
    %c0_22 = arith.constant 0 : index
    %52 = vector.load %arg5[%c1, %c0_22] : memref<6x256xf32, #tpu.memory_space<vmem>>, vector<1x96xf32>
    %c0_23 = arith.constant 0 : index
    %c512 = arith.constant 512 : index
    %53 = vector.load %arg2[%c0_23, %c512] : memref<32x1024xf32, #tpu.memory_space<vmem>>, vector<32x32xf32>
    %c86 = arith.constant 86 : index
    %c0_24 = arith.constant 0 : index
    %54 = vector.load %arg1[%c86, %c0_24] : memref<95x32xf32, #tpu.memory_space<vmem>>, vector<1x32xf32>
    %cst_25 = arith.constant dense<0.000000e+00> : vector<64x96xf32>
    %55 = tpu.matmul %40, %51, %cst_25 {dimension_numbers = #tpu.dot_dimension_numbers<[1], [0], [0], [1], [0, 0, 1, 1], [], []>} : vector<64x32xf32>, vector<32x96xf32>, vector<64x96xf32> -> vector<64x96xf32>
    %56 = vector.broadcast %52 : vector<1x96xf32> to vector<64x96xf32>
    %57 = arith.addf %55, %56 : vector<64x96xf32>
    %58 = vector.extract_strided_slice %57 {offsets = [0, 0], sizes = [64, 8], strides = [1, 1]} : vector<64x96xf32> to vector<64x8xf32>
    %59 = vector.extract_strided_slice %57 {offsets = [0, 32], sizes = [64, 8], strides = [1, 1]} : vector<64x96xf32> to vector<64x8xf32>
    %60 = vector.extract_strided_slice %57 {offsets = [0, 64], sizes = [64, 8], strides = [1, 1]} : vector<64x96xf32> to vector<64x8xf32>
    %cst_26 = arith.constant dense<0.000000e+00> : vector<64x64xf32>
    %61 = tpu.matmul %58, %59, %cst_26 {dimension_numbers = #tpu.dot_dimension_numbers<[1], [1], [0], [0], [0, 0, 1, 0], [], []>} : vector<64x8xf32>, vector<64x8xf32>, vector<64x64xf32> -> vector<64x64xf32>
    %62 = arith.addf %61, %50 : vector<64x64xf32>
    %cst_27 = arith.constant dense<0xFF800000> : vector<64xf32>
    %63 = vector.multi_reduction <maximumf>, %62, %cst_27 [1] : vector<64x64xf32> to vector<64xf32>
    %64 = vector.shape_cast %63 : vector<64xf32> to vector<64x1xf32>
    %65 = vector.broadcast %64 : vector<64x1xf32> to vector<64x64xf32>
    %66 = arith.subf %62, %65 : vector<64x64xf32>
    %67 = math.exp %66 : vector<64x64xf32>
    %cst_28 = arith.constant dense<0.000000e+00> : vector<64xf32>
    %68 = vector.multi_reduction <add>, %67, %cst_28 [1] : vector<64x64xf32> to vector<64xf32>
    %69 = vector.shape_cast %68 : vector<64xf32> to vector<64x1xf32>
    %70 = tpu.reciprocal %69 {approx = true} : vector<64x1xf32> -> vector<64x1xf32>
    %71 = vector.broadcast %70 : vector<64x1xf32> to vector<64x64xf32>
    %72 = arith.mulf %67, %71 : vector<64x64xf32>
    %cst_29 = arith.constant dense<0.000000e+00> : vector<64x8xf32>
    %73 = tpu.matmul %72, %60, %cst_29 {dimension_numbers = #tpu.dot_dimension_numbers<[1], [0], [0], [1], [0, 0, 1, 1], [], []>} : vector<64x64xf32>, vector<64x8xf32>, vector<64x8xf32> -> vector<64x8xf32>
    %74 = vector.extract_strided_slice %57 {offsets = [0, 8], sizes = [64, 8], strides = [1, 1]} : vector<64x96xf32> to vector<64x8xf32>
    %75 = vector.extract_strided_slice %57 {offsets = [0, 40], sizes = [64, 8], strides = [1, 1]} : vector<64x96xf32> to vector<64x8xf32>
    %76 = vector.extract_strided_slice %57 {offsets = [0, 72], sizes = [64, 8], strides = [1, 1]} : vector<64x96xf32> to vector<64x8xf32>
    %cst_30 = arith.constant dense<0.000000e+00> : vector<64x64xf32>
    %77 = tpu.matmul %74, %75, %cst_30 {dimension_numbers = #tpu.dot_dimension_numbers<[1], [1], [0], [0], [0, 0, 1, 0], [], []>} : vector<64x8xf32>, vector<64x8xf32>, vector<64x64xf32> -> vector<64x64xf32>
    %78 = arith.addf %77, %50 : vector<64x64xf32>
    %cst_31 = arith.constant dense<0xFF800000> : vector<64xf32>
    %79 = vector.multi_reduction <maximumf>, %78, %cst_31 [1] : vector<64x64xf32> to vector<64xf32>
    %80 = vector.shape_cast %79 : vector<64xf32> to vector<64x1xf32>
    %81 = vector.broadcast %80 : vector<64x1xf32> to vector<64x64xf32>
    %82 = arith.subf %78, %81 : vector<64x64xf32>
    %83 = math.exp %82 : vector<64x64xf32>
    %cst_32 = arith.constant dense<0.000000e+00> : vector<64xf32>
    %84 = vector.multi_reduction <add>, %83, %cst_32 [1] : vector<64x64xf32> to vector<64xf32>
    %85 = vector.shape_cast %84 : vector<64xf32> to vector<64x1xf32>
    %86 = tpu.reciprocal %85 {approx = true} : vector<64x1xf32> -> vector<64x1xf32>
    %87 = vector.broadcast %86 : vector<64x1xf32> to vector<64x64xf32>
    %88 = arith.mulf %83, %87 : vector<64x64xf32>
    %cst_33 = arith.constant dense<0.000000e+00> : vector<64x8xf32>
    %89 = tpu.matmul %88, %76, %cst_33 {dimension_numbers = #tpu.dot_dimension_numbers<[1], [0], [0], [1], [0, 0, 1, 1], [], []>} : vector<64x64xf32>, vector<64x8xf32>, vector<64x8xf32> -> vector<64x8xf32>
    %90 = vector.extract_strided_slice %57 {offsets = [0, 16], sizes = [64, 8], strides = [1, 1]} : vector<64x96xf32> to vector<64x8xf32>
    %91 = vector.extract_strided_slice %57 {offsets = [0, 48], sizes = [64, 8], strides = [1, 1]} : vector<64x96xf32> to vector<64x8xf32>
    %92 = vector.extract_strided_slice %57 {offsets = [0, 80], sizes = [64, 8], strides = [1, 1]} : vector<64x96xf32> to vector<64x8xf32>
    %cst_34 = arith.constant dense<0.000000e+00> : vector<64x64xf32>
    %93 = tpu.matmul %90, %91, %cst_34 {dimension_numbers = #tpu.dot_dimension_numbers<[1], [1], [0], [0], [0, 0, 1, 0], [], []>} : vector<64x8xf32>, vector<64x8xf32>, vector<64x64xf32> -> vector<64x64xf32>
    %94 = arith.addf %93, %50 : vector<64x64xf32>
    %cst_35 = arith.constant dense<0xFF800000> : vector<64xf32>
    %95 = vector.multi_reduction <maximumf>, %94, %cst_35 [1] : vector<64x64xf32> to vector<64xf32>
    %96 = vector.shape_cast %95 : vector<64xf32> to vector<64x1xf32>
    %97 = vector.broadcast %96 : vector<64x1xf32> to vector<64x64xf32>
    %98 = arith.subf %94, %97 : vector<64x64xf32>
    %99 = math.exp %98 : vector<64x64xf32>
    %cst_36 = arith.constant dense<0.000000e+00> : vector<64xf32>
    %100 = vector.multi_reduction <add>, %99, %cst_36 [1] : vector<64x64xf32> to vector<64xf32>
    %101 = vector.shape_cast %100 : vector<64xf32> to vector<64x1xf32>
    %102 = tpu.reciprocal %101 {approx = true} : vector<64x1xf32> -> vector<64x1xf32>
    %103 = vector.broadcast %102 : vector<64x1xf32> to vector<64x64xf32>
    %104 = arith.mulf %99, %103 : vector<64x64xf32>
    %cst_37 = arith.constant dense<0.000000e+00> : vector<64x8xf32>
    %105 = tpu.matmul %104, %92, %cst_37 {dimension_numbers = #tpu.dot_dimension_numbers<[1], [0], [0], [1], [0, 0, 1, 1], [], []>} : vector<64x64xf32>, vector<64x8xf32>, vector<64x8xf32> -> vector<64x8xf32>
    %106 = vector.extract_strided_slice %57 {offsets = [0, 24], sizes = [64, 8], strides = [1, 1]} : vector<64x96xf32> to vector<64x8xf32>
    %107 = vector.extract_strided_slice %57 {offsets = [0, 56], sizes = [64, 8], strides = [1, 1]} : vector<64x96xf32> to vector<64x8xf32>
    %108 = vector.extract_strided_slice %57 {offsets = [0, 88], sizes = [64, 8], strides = [1, 1]} : vector<64x96xf32> to vector<64x8xf32>
    %cst_38 = arith.constant dense<0.000000e+00> : vector<64x64xf32>
    %109 = tpu.matmul %106, %107, %cst_38 {dimension_numbers = #tpu.dot_dimension_numbers<[1], [1], [0], [0], [0, 0, 1, 0], [], []>} : vector<64x8xf32>, vector<64x8xf32>, vector<64x64xf32> -> vector<64x64xf32>
    %110 = arith.addf %109, %50 : vector<64x64xf32>
    %cst_39 = arith.constant dense<0xFF800000> : vector<64xf32>
    %111 = vector.multi_reduction <maximumf>, %110, %cst_39 [1] : vector<64x64xf32> to vector<64xf32>
    %112 = vector.shape_cast %111 : vector<64xf32> to vector<64x1xf32>
    %113 = vector.broadcast %112 : vector<64x1xf32> to vector<64x64xf32>
    %114 = arith.subf %110, %113 : vector<64x64xf32>
    %115 = math.exp %114 : vector<64x64xf32>
    %cst_40 = arith.constant dense<0.000000e+00> : vector<64xf32>
    %116 = vector.multi_reduction <add>, %115, %cst_40 [1] : vector<64x64xf32> to vector<64xf32>
    %117 = vector.shape_cast %116 : vector<64xf32> to vector<64x1xf32>
    %118 = tpu.reciprocal %117 {approx = true} : vector<64x1xf32> -> vector<64x1xf32>
    %119 = vector.broadcast %118 : vector<64x1xf32> to vector<64x64xf32>
    %120 = arith.mulf %115, %119 : vector<64x64xf32>
    %cst_41 = arith.constant dense<0.000000e+00> : vector<64x8xf32>
    %121 = tpu.matmul %120, %108, %cst_41 {dimension_numbers = #tpu.dot_dimension_numbers<[1], [0], [0], [1], [0, 0, 1, 1], [], []>} : vector<64x64xf32>, vector<64x8xf32>, vector<64x8xf32> -> vector<64x8xf32>
    %122 = tpu.concatenate %73, %89, %105, %121 in 1 : vector<64x8xf32>, vector<64x8xf32>, vector<64x8xf32>, vector<64x8xf32> -> vector<64x32xf32>
    %cst_42 = arith.constant dense<0.000000e+00> : vector<64x32xf32>
    %123 = tpu.matmul %122, %53, %cst_42 {dimension_numbers = #tpu.dot_dimension_numbers<[1], [0], [0], [1], [0, 0, 1, 1], [], []>} : vector<64x32xf32>, vector<32x32xf32>, vector<64x32xf32> -> vector<64x32xf32>
    %124 = vector.broadcast %54 : vector<1x32xf32> to vector<64x32xf32>
    %125 = arith.addf %123, %124 : vector<64x32xf32>
    %126 = arith.addf %40, %125 : vector<64x32xf32>
    %c88 = arith.constant 88 : index
    %c0_43 = arith.constant 0 : index
    %127 = vector.load %arg1[%c88, %c0_43] : memref<95x32xf32, #tpu.memory_space<vmem>>, vector<1x32xf32>
    %c89 = arith.constant 89 : index
    %c0_44 = arith.constant 0 : index
    %128 = vector.load %arg1[%c89, %c0_44] : memref<95x32xf32, #tpu.memory_space<vmem>>, vector<1x32xf32>
    %cst_45 = arith.constant dense<0.000000e+00> : vector<64xf32>
    %129 = vector.multi_reduction <add>, %126, %cst_45 [1] : vector<64x32xf32> to vector<64xf32>
    %130 = vector.shape_cast %129 : vector<64xf32> to vector<64x1xf32>
    %cst_46 = arith.constant 3.200000e+01 : f32
    %131 = vector.broadcast %cst_46 : f32 to vector<64x1xf32>
    %132 = arith.divf %130, %131 : vector<64x1xf32>
    %133 = vector.broadcast %132 : vector<64x1xf32> to vector<64x32xf32>
    %134 = arith.subf %126, %133 : vector<64x32xf32>
    %135 = arith.mulf %134, %134 : vector<64x32xf32>
    %cst_47 = arith.constant dense<0.000000e+00> : vector<64xf32>
    %136 = vector.multi_reduction <add>, %135, %cst_47 [1] : vector<64x32xf32> to vector<64xf32>
    %137 = vector.shape_cast %136 : vector<64xf32> to vector<64x1xf32>
    %cst_48 = arith.constant 3.200000e+01 : f32
    %138 = vector.broadcast %cst_48 : f32 to vector<64x1xf32>
    %139 = arith.divf %137, %138 : vector<64x1xf32>
    %140 = vector.broadcast %132 : vector<64x1xf32> to vector<64x32xf32>
    %141 = arith.subf %126, %140 : vector<64x32xf32>
    %cst_49 = arith.constant 9.99999974E-6 : f32
    %142 = vector.broadcast %cst_49 : f32 to vector<64x1xf32>
    %143 = arith.addf %139, %142 : vector<64x1xf32>
    %144 = math.rsqrt %143 : vector<64x1xf32>
    %145 = vector.broadcast %144 : vector<64x1xf32> to vector<64x32xf32>
    %146 = arith.mulf %141, %145 : vector<64x32xf32>
    %147 = vector.broadcast %127 : vector<1x32xf32> to vector<64x32xf32>
    %148 = arith.mulf %146, %147 : vector<64x32xf32>
    %149 = vector.broadcast %128 : vector<1x32xf32> to vector<64x32xf32>
    %150 = arith.addf %148, %149 : vector<64x32xf32>
    %c0_50 = arith.constant 0 : index
    %c640 = arith.constant 640 : index
    %151 = vector.load %arg2[%c0_50, %c640] : memref<32x1024xf32, #tpu.memory_space<vmem>>, vector<32x96xf32>
    %c2 = arith.constant 2 : index
    %c0_51 = arith.constant 0 : index
    %152 = vector.load %arg5[%c2, %c0_51] : memref<6x256xf32, #tpu.memory_space<vmem>>, vector<1x96xf32>
    %c0_52 = arith.constant 0 : index
    %c768 = arith.constant 768 : index
    %153 = vector.load %arg2[%c0_52, %c768] : memref<32x1024xf32, #tpu.memory_space<vmem>>, vector<32x32xf32>
    %c87 = arith.constant 87 : index
    %c0_53 = arith.constant 0 : index
    %154 = vector.load %arg1[%c87, %c0_53] : memref<95x32xf32, #tpu.memory_space<vmem>>, vector<1x32xf32>
    %cst_54 = arith.constant dense<0.000000e+00> : vector<64x96xf32>
    %155 = tpu.matmul %150, %151, %cst_54 {dimension_numbers = #tpu.dot_dimension_numbers<[1], [0], [0], [1], [0, 0, 1, 1], [], []>} : vector<64x32xf32>, vector<32x96xf32>, vector<64x96xf32> -> vector<64x96xf32>
    %156 = vector.broadcast %152 : vector<1x96xf32> to vector<64x96xf32>
    %157 = arith.addf %155, %156 : vector<64x96xf32>
    %158 = vector.extract_strided_slice %157 {offsets = [0, 0], sizes = [64, 8], strides = [1, 1]} : vector<64x96xf32> to vector<64x8xf32>
    %159 = vector.extract_strided_slice %157 {offsets = [0, 32], sizes = [64, 8], strides = [1, 1]} : vector<64x96xf32> to vector<64x8xf32>
    %160 = vector.extract_strided_slice %157 {offsets = [0, 64], sizes = [64, 8], strides = [1, 1]} : vector<64x96xf32> to vector<64x8xf32>
    %cst_55 = arith.constant dense<0.000000e+00> : vector<64x64xf32>
    %161 = tpu.matmul %158, %159, %cst_55 {dimension_numbers = #tpu.dot_dimension_numbers<[1], [1], [0], [0], [0, 0, 1, 0], [], []>} : vector<64x8xf32>, vector<64x8xf32>, vector<64x64xf32> -> vector<64x64xf32>
    %162 = arith.addf %161, %50 : vector<64x64xf32>
    %cst_56 = arith.constant dense<0xFF800000> : vector<64xf32>
    %163 = vector.multi_reduction <maximumf>, %162, %cst_56 [1] : vector<64x64xf32> to vector<64xf32>
    %164 = vector.shape_cast %163 : vector<64xf32> to vector<64x1xf32>
    %165 = vector.broadcast %164 : vector<64x1xf32> to vector<64x64xf32>
    %166 = arith.subf %162, %165 : vector<64x64xf32>
    %167 = math.exp %166 : vector<64x64xf32>
    %cst_57 = arith.constant dense<0.000000e+00> : vector<64xf32>
    %168 = vector.multi_reduction <add>, %167, %cst_57 [1] : vector<64x64xf32> to vector<64xf32>
    %169 = vector.shape_cast %168 : vector<64xf32> to vector<64x1xf32>
    %170 = tpu.reciprocal %169 {approx = true} : vector<64x1xf32> -> vector<64x1xf32>
    %171 = vector.broadcast %170 : vector<64x1xf32> to vector<64x64xf32>
    %172 = arith.mulf %167, %171 : vector<64x64xf32>
    %cst_58 = arith.constant dense<0.000000e+00> : vector<64x8xf32>
    %173 = tpu.matmul %172, %160, %cst_58 {dimension_numbers = #tpu.dot_dimension_numbers<[1], [0], [0], [1], [0, 0, 1, 1], [], []>} : vector<64x64xf32>, vector<64x8xf32>, vector<64x8xf32> -> vector<64x8xf32>
    %174 = vector.extract_strided_slice %157 {offsets = [0, 8], sizes = [64, 8], strides = [1, 1]} : vector<64x96xf32> to vector<64x8xf32>
    %175 = vector.extract_strided_slice %157 {offsets = [0, 40], sizes = [64, 8], strides = [1, 1]} : vector<64x96xf32> to vector<64x8xf32>
    %176 = vector.extract_strided_slice %157 {offsets = [0, 72], sizes = [64, 8], strides = [1, 1]} : vector<64x96xf32> to vector<64x8xf32>
    %cst_59 = arith.constant dense<0.000000e+00> : vector<64x64xf32>
    %177 = tpu.matmul %174, %175, %cst_59 {dimension_numbers = #tpu.dot_dimension_numbers<[1], [1], [0], [0], [0, 0, 1, 0], [], []>} : vector<64x8xf32>, vector<64x8xf32>, vector<64x64xf32> -> vector<64x64xf32>
    %178 = arith.addf %177, %50 : vector<64x64xf32>
    %cst_60 = arith.constant dense<0xFF800000> : vector<64xf32>
    %179 = vector.multi_reduction <maximumf>, %178, %cst_60 [1] : vector<64x64xf32> to vector<64xf32>
    %180 = vector.shape_cast %179 : vector<64xf32> to vector<64x1xf32>
    %181 = vector.broadcast %180 : vector<64x1xf32> to vector<64x64xf32>
    %182 = arith.subf %178, %181 : vector<64x64xf32>
    %183 = math.exp %182 : vector<64x64xf32>
    %cst_61 = arith.constant dense<0.000000e+00> : vector<64xf32>
    %184 = vector.multi_reduction <add>, %183, %cst_61 [1] : vector<64x64xf32> to vector<64xf32>
    %185 = vector.shape_cast %184 : vector<64xf32> to vector<64x1xf32>
    %186 = tpu.reciprocal %185 {approx = true} : vector<64x1xf32> -> vector<64x1xf32>
    %187 = vector.broadcast %186 : vector<64x1xf32> to vector<64x64xf32>
    %188 = arith.mulf %183, %187 : vector<64x64xf32>
    %cst_62 = arith.constant dense<0.000000e+00> : vector<64x8xf32>
    %189 = tpu.matmul %188, %176, %cst_62 {dimension_numbers = #tpu.dot_dimension_numbers<[1], [0], [0], [1], [0, 0, 1, 1], [], []>} : vector<64x64xf32>, vector<64x8xf32>, vector<64x8xf32> -> vector<64x8xf32>
    %190 = vector.extract_strided_slice %157 {offsets = [0, 16], sizes = [64, 8], strides = [1, 1]} : vector<64x96xf32> to vector<64x8xf32>
    %191 = vector.extract_strided_slice %157 {offsets = [0, 48], sizes = [64, 8], strides = [1, 1]} : vector<64x96xf32> to vector<64x8xf32>
    %192 = vector.extract_strided_slice %157 {offsets = [0, 80], sizes = [64, 8], strides = [1, 1]} : vector<64x96xf32> to vector<64x8xf32>
    %cst_63 = arith.constant dense<0.000000e+00> : vector<64x64xf32>
    %193 = tpu.matmul %190, %191, %cst_63 {dimension_numbers = #tpu.dot_dimension_numbers<[1], [1], [0], [0], [0, 0, 1, 0], [], []>} : vector<64x8xf32>, vector<64x8xf32>, vector<64x64xf32> -> vector<64x64xf32>
    %194 = arith.addf %193, %50 : vector<64x64xf32>
    %cst_64 = arith.constant dense<0xFF800000> : vector<64xf32>
    %195 = vector.multi_reduction <maximumf>, %194, %cst_64 [1] : vector<64x64xf32> to vector<64xf32>
    %196 = vector.shape_cast %195 : vector<64xf32> to vector<64x1xf32>
    %197 = vector.broadcast %196 : vector<64x1xf32> to vector<64x64xf32>
    %198 = arith.subf %194, %197 : vector<64x64xf32>
    %199 = math.exp %198 : vector<64x64xf32>
    %cst_65 = arith.constant dense<0.000000e+00> : vector<64xf32>
    %200 = vector.multi_reduction <add>, %199, %cst_65 [1] : vector<64x64xf32> to vector<64xf32>
    %201 = vector.shape_cast %200 : vector<64xf32> to vector<64x1xf32>
    %202 = tpu.reciprocal %201 {approx = true} : vector<64x1xf32> -> vector<64x1xf32>
    %203 = vector.broadcast %202 : vector<64x1xf32> to vector<64x64xf32>
    %204 = arith.mulf %199, %203 : vector<64x64xf32>
    %cst_66 = arith.constant dense<0.000000e+00> : vector<64x8xf32>
    %205 = tpu.matmul %204, %192, %cst_66 {dimension_numbers = #tpu.dot_dimension_numbers<[1], [0], [0], [1], [0, 0, 1, 1], [], []>} : vector<64x64xf32>, vector<64x8xf32>, vector<64x8xf32> -> vector<64x8xf32>
    %206 = vector.extract_strided_slice %157 {offsets = [0, 24], sizes = [64, 8], strides = [1, 1]} : vector<64x96xf32> to vector<64x8xf32>
    %207 = vector.extract_strided_slice %157 {offsets = [0, 56], sizes = [64, 8], strides = [1, 1]} : vector<64x96xf32> to vector<64x8xf32>
    %208 = vector.extract_strided_slice %157 {offsets = [0, 88], sizes = [64, 8], strides = [1, 1]} : vector<64x96xf32> to vector<64x8xf32>
    %cst_67 = arith.constant dense<0.000000e+00> : vector<64x64xf32>
    %209 = tpu.matmul %206, %207, %cst_67 {dimension_numbers = #tpu.dot_dimension_numbers<[1], [1], [0], [0], [0, 0, 1, 0], [], []>} : vector<64x8xf32>, vector<64x8xf32>, vector<64x64xf32> -> vector<64x64xf32>
    %210 = arith.addf %209, %50 : vector<64x64xf32>
    %cst_68 = arith.constant dense<0xFF800000> : vector<64xf32>
    %211 = vector.multi_reduction <maximumf>, %210, %cst_68 [1] : vector<64x64xf32> to vector<64xf32>
    %212 = vector.shape_cast %211 : vector<64xf32> to vector<64x1xf32>
    %213 = vector.broadcast %212 : vector<64x1xf32> to vector<64x64xf32>
    %214 = arith.subf %210, %213 : vector<64x64xf32>
    %215 = math.exp %214 : vector<64x64xf32>
    %cst_69 = arith.constant dense<0.000000e+00> : vector<64xf32>
    %216 = vector.multi_reduction <add>, %215, %cst_69 [1] : vector<64x64xf32> to vector<64xf32>
    %217 = vector.shape_cast %216 : vector<64xf32> to vector<64x1xf32>
    %218 = tpu.reciprocal %217 {approx = true} : vector<64x1xf32> -> vector<64x1xf32>
    %219 = vector.broadcast %218 : vector<64x1xf32> to vector<64x64xf32>
    %220 = arith.mulf %215, %219 : vector<64x64xf32>
    %cst_70 = arith.constant dense<0.000000e+00> : vector<64x8xf32>
    %221 = tpu.matmul %220, %208, %cst_70 {dimension_numbers = #tpu.dot_dimension_numbers<[1], [0], [0], [1], [0, 0, 1, 1], [], []>} : vector<64x64xf32>, vector<64x8xf32>, vector<64x8xf32> -> vector<64x8xf32>
    %222 = tpu.concatenate %173, %189, %205, %221 in 1 : vector<64x8xf32>, vector<64x8xf32>, vector<64x8xf32>, vector<64x8xf32> -> vector<64x32xf32>
    %cst_71 = arith.constant dense<0.000000e+00> : vector<64x32xf32>
    %223 = tpu.matmul %222, %153, %cst_71 {dimension_numbers = #tpu.dot_dimension_numbers<[1], [0], [0], [1], [0, 0, 1, 1], [], []>} : vector<64x32xf32>, vector<32x32xf32>, vector<64x32xf32> -> vector<64x32xf32>
    %224 = vector.broadcast %154 : vector<1x32xf32> to vector<64x32xf32>
    %225 = arith.addf %223, %224 : vector<64x32xf32>
    %226 = arith.addf %150, %225 : vector<64x32xf32>
    %c90 = arith.constant 90 : index
    %c0_72 = arith.constant 0 : index
    %227 = vector.load %arg1[%c90, %c0_72] : memref<95x32xf32, #tpu.memory_space<vmem>>, vector<1x32xf32>
    %c91 = arith.constant 91 : index
    %c0_73 = arith.constant 0 : index
    %228 = vector.load %arg1[%c91, %c0_73] : memref<95x32xf32, #tpu.memory_space<vmem>>, vector<1x32xf32>
    %cst_74 = arith.constant dense<0.000000e+00> : vector<64xf32>
    %229 = vector.multi_reduction <add>, %226, %cst_74 [1] : vector<64x32xf32> to vector<64xf32>
    %230 = vector.shape_cast %229 : vector<64xf32> to vector<64x1xf32>
    %cst_75 = arith.constant 3.200000e+01 : f32
    %231 = vector.broadcast %cst_75 : f32 to vector<64x1xf32>
    %232 = arith.divf %230, %231 : vector<64x1xf32>
    %233 = vector.broadcast %232 : vector<64x1xf32> to vector<64x32xf32>
    %234 = arith.subf %226, %233 : vector<64x32xf32>
    %235 = arith.mulf %234, %234 : vector<64x32xf32>
    %cst_76 = arith.constant dense<0.000000e+00> : vector<64xf32>
    %236 = vector.multi_reduction <add>, %235, %cst_76 [1] : vector<64x32xf32> to vector<64xf32>
    %237 = vector.shape_cast %236 : vector<64xf32> to vector<64x1xf32>
    %cst_77 = arith.constant 3.200000e+01 : f32
    %238 = vector.broadcast %cst_77 : f32 to vector<64x1xf32>
    %239 = arith.divf %237, %238 : vector<64x1xf32>
    %240 = vector.broadcast %232 : vector<64x1xf32> to vector<64x32xf32>
    %241 = arith.subf %226, %240 : vector<64x32xf32>
    %cst_78 = arith.constant 9.99999974E-6 : f32
    %242 = vector.broadcast %cst_78 : f32 to vector<64x1xf32>
    %243 = arith.addf %239, %242 : vector<64x1xf32>
    %244 = math.rsqrt %243 : vector<64x1xf32>
    %245 = vector.broadcast %244 : vector<64x1xf32> to vector<64x32xf32>
    %246 = arith.mulf %241, %245 : vector<64x32xf32>
    %247 = vector.broadcast %227 : vector<1x32xf32> to vector<64x32xf32>
    %248 = arith.mulf %246, %247 : vector<64x32xf32>
    %249 = vector.broadcast %228 : vector<1x32xf32> to vector<64x32xf32>
    %250 = arith.addf %248, %249 : vector<64x32xf32>
    %c0_79 = arith.constant 0 : index
    %c896 = arith.constant 896 : index
    %251 = vector.load %arg2[%c0_79, %c896] : memref<32x1024xf32, #tpu.memory_space<vmem>>, vector<32x64xf32>
    %cst_80 = arith.constant dense<0.000000e+00> : vector<64x64xf32>
    %252 = tpu.matmul %250, %251, %cst_80 {dimension_numbers = #tpu.dot_dimension_numbers<[1], [0], [0], [1], [0, 0, 1, 1], [], []>} : vector<64x32xf32>, vector<32x64xf32>, vector<64x64xf32> -> vector<64x64xf32>
    %c3 = arith.constant 3 : index
    %c0_81 = arith.constant 0 : index
    %253 = vector.load %arg5[%c3, %c0_81] : memref<6x256xf32, #tpu.memory_space<vmem>>, vector<1x64xf32>
    %254 = vector.broadcast %253 : vector<1x64xf32> to vector<64x64xf32>
    %255 = arith.addf %252, %254 : vector<64x64xf32>
    %cst_82 = arith.constant 0.000000e+00 : f32
    %256 = vector.broadcast %cst_82 : f32 to vector<64x64xf32>
    %257 = arith.maximumf %255, %256 : vector<64x64xf32>
    %c16 = arith.constant 16 : index
    %c0_83 = arith.constant 0 : index
    %258 = vector.load %arg1[%c16, %c0_83] : memref<95x32xf32, #tpu.memory_space<vmem>>, vector<64x32xf32>
    %cst_84 = arith.constant dense<0.000000e+00> : vector<64x32xf32>
    %259 = tpu.matmul %257, %258, %cst_84 {dimension_numbers = #tpu.dot_dimension_numbers<[1], [0], [0], [1], [0, 0, 1, 1], [], []>} : vector<64x64xf32>, vector<64x32xf32>, vector<64x32xf32> -> vector<64x32xf32>
    %c94 = arith.constant 94 : index
    %c0_85 = arith.constant 0 : index
    %260 = vector.load %arg1[%c94, %c0_85] : memref<95x32xf32, #tpu.memory_space<vmem>>, vector<1x32xf32>
    %261 = vector.broadcast %260 : vector<1x32xf32> to vector<64x32xf32>
    %262 = arith.addf %259, %261 : vector<64x32xf32>
    %263 = arith.addf %250, %262 : vector<64x32xf32>
    %c92 = arith.constant 92 : index
    %c0_86 = arith.constant 0 : index
    %264 = vector.load %arg1[%c92, %c0_86] : memref<95x32xf32, #tpu.memory_space<vmem>>, vector<1x32xf32>
    %c93 = arith.constant 93 : index
    %c0_87 = arith.constant 0 : index
    %265 = vector.load %arg1[%c93, %c0_87] : memref<95x32xf32, #tpu.memory_space<vmem>>, vector<1x32xf32>
    %cst_88 = arith.constant dense<0.000000e+00> : vector<64xf32>
    %266 = vector.multi_reduction <add>, %263, %cst_88 [1] : vector<64x32xf32> to vector<64xf32>
    %267 = vector.shape_cast %266 : vector<64xf32> to vector<64x1xf32>
    %cst_89 = arith.constant 3.200000e+01 : f32
    %268 = vector.broadcast %cst_89 : f32 to vector<64x1xf32>
    %269 = arith.divf %267, %268 : vector<64x1xf32>
    %270 = vector.broadcast %269 : vector<64x1xf32> to vector<64x32xf32>
    %271 = arith.subf %263, %270 : vector<64x32xf32>
    %272 = arith.mulf %271, %271 : vector<64x32xf32>
    %cst_90 = arith.constant dense<0.000000e+00> : vector<64xf32>
    %273 = vector.multi_reduction <add>, %272, %cst_90 [1] : vector<64x32xf32> to vector<64xf32>
    %274 = vector.shape_cast %273 : vector<64xf32> to vector<64x1xf32>
    %cst_91 = arith.constant 3.200000e+01 : f32
    %275 = vector.broadcast %cst_91 : f32 to vector<64x1xf32>
    %276 = arith.divf %274, %275 : vector<64x1xf32>
    %277 = vector.broadcast %269 : vector<64x1xf32> to vector<64x32xf32>
    %278 = arith.subf %263, %277 : vector<64x32xf32>
    %cst_92 = arith.constant 9.99999974E-6 : f32
    %279 = vector.broadcast %cst_92 : f32 to vector<64x1xf32>
    %280 = arith.addf %276, %279 : vector<64x1xf32>
    %281 = math.rsqrt %280 : vector<64x1xf32>
    %282 = vector.broadcast %281 : vector<64x1xf32> to vector<64x32xf32>
    %283 = arith.mulf %278, %282 : vector<64x32xf32>
    %284 = vector.broadcast %264 : vector<1x32xf32> to vector<64x32xf32>
    %285 = arith.mulf %283, %284 : vector<64x32xf32>
    %286 = vector.broadcast %265 : vector<1x32xf32> to vector<64x32xf32>
    %287 = arith.addf %285, %286 : vector<64x32xf32>
    %288 = vector.extract_strided_slice %287 {offsets = [0, 0], sizes = [8, 32], strides = [1, 1]} : vector<64x32xf32> to vector<8x32xf32>
    %289 = vector.extract_strided_slice %287 {offsets = [8, 0], sizes = [8, 32], strides = [1, 1]} : vector<64x32xf32> to vector<8x32xf32>
    %290 = vector.extract_strided_slice %287 {offsets = [16, 0], sizes = [8, 32], strides = [1, 1]} : vector<64x32xf32> to vector<8x32xf32>
    %291 = vector.extract_strided_slice %287 {offsets = [24, 0], sizes = [8, 32], strides = [1, 1]} : vector<64x32xf32> to vector<8x32xf32>
    %292 = vector.extract_strided_slice %287 {offsets = [32, 0], sizes = [8, 32], strides = [1, 1]} : vector<64x32xf32> to vector<8x32xf32>
    %293 = vector.extract_strided_slice %287 {offsets = [40, 0], sizes = [8, 32], strides = [1, 1]} : vector<64x32xf32> to vector<8x32xf32>
    %294 = vector.extract_strided_slice %287 {offsets = [48, 0], sizes = [8, 32], strides = [1, 1]} : vector<64x32xf32> to vector<8x32xf32>
    %295 = vector.extract_strided_slice %287 {offsets = [56, 0], sizes = [8, 32], strides = [1, 1]} : vector<64x32xf32> to vector<8x32xf32>
    %296 = tpu.concatenate %288, %289, %290, %291, %292, %293, %294, %295 in 1 : vector<8x32xf32>, vector<8x32xf32>, vector<8x32xf32>, vector<8x32xf32>, vector<8x32xf32>, vector<8x32xf32>, vector<8x32xf32>, vector<8x32xf32> -> vector<8x256xf32>
    %c0_93 = arith.constant 0 : index
    %c0_94 = arith.constant 0 : index
    %297 = vector.load %arg3[%c0_93, %c0_94] : memref<256x96xf32, #tpu.memory_space<vmem>>, vector<256x96xf32>
    %cst_95 = arith.constant dense<0.000000e+00> : vector<8x96xf32>
    %298 = tpu.matmul %296, %297, %cst_95 {dimension_numbers = #tpu.dot_dimension_numbers<[1], [0], [0], [1], [0, 0, 1, 1], [], []>} : vector<8x256xf32>, vector<256x96xf32>, vector<8x96xf32> -> vector<8x96xf32>
    %c4 = arith.constant 4 : index
    %c0_96 = arith.constant 0 : index
    %299 = vector.load %arg5[%c4, %c0_96] : memref<6x256xf32, #tpu.memory_space<vmem>>, vector<1x96xf32>
    %300 = vector.broadcast %299 : vector<1x96xf32> to vector<8x96xf32>
    %301 = arith.addf %298, %300 : vector<8x96xf32>
    %cst_97 = arith.constant 0.000000e+00 : f32
    %302 = vector.broadcast %cst_97 : f32 to vector<8x96xf32>
    %303 = arith.maximumf %301, %302 : vector<8x96xf32>
    %c0_98 = arith.constant 0 : index
    %c0_99 = arith.constant 0 : index
    %304 = vector.load %arg4[%c0_98, %c0_99] : memref<96x128xf32, #tpu.memory_space<vmem>>, vector<96x128xf32>
    %cst_100 = arith.constant dense<0.000000e+00> : vector<8x128xf32>
    %305 = tpu.matmul %303, %304, %cst_100 {dimension_numbers = #tpu.dot_dimension_numbers<[1], [0], [0], [1], [0, 0, 1, 1], [], []>} : vector<8x96xf32>, vector<96x128xf32>, vector<8x128xf32> -> vector<8x128xf32>
    %c5 = arith.constant 5 : index
    %c0_101 = arith.constant 0 : index
    %306 = vector.load %arg5[%c5, %c0_101] : memref<6x256xf32, #tpu.memory_space<vmem>>, vector<1x128xf32>
    %307 = vector.broadcast %306 : vector<1x128xf32> to vector<8x128xf32>
    %308 = arith.addf %305, %307 : vector<8x128xf32>
    %309 = tpu.iota {dimensions = array<i32: 1>} : vector<8x128xi32>
    %c8_i32 = arith.constant 8 : i32
    %310 = vector.broadcast %c8_i32 : i32 to vector<8x128xi32>
    %311 = arith.cmpi slt, %309, %310 : vector<8x128xi32>
    %cst_102 = arith.constant 0.000000e+00 : f32
    %312 = vector.broadcast %cst_102 : f32 to vector<8x128xf32>
    %313 = arith.subf %312, %308 : vector<8x128xf32>
    %314 = math.exp %313 : vector<8x128xf32>
    %cst_103 = arith.constant 1.000000e+00 : f32
    %315 = vector.broadcast %cst_103 : f32 to vector<8x128xf32>
    %316 = arith.addf %315, %314 : vector<8x128xf32>
    %cst_104 = arith.constant 1.000000e+00 : f32
    %317 = vector.broadcast %cst_104 : f32 to vector<8x128xf32>
    %318 = arith.divf %317, %316 : vector<8x128xf32>
    %cst_105 = arith.constant 0.000000e+00 : f32
    %319 = vector.broadcast %cst_105 : f32 to vector<8x128xf32>
    %320 = arith.maximumf %308, %319 : vector<8x128xf32>
    %321 = arith.select %311, %318, %320 : vector<8x128xi1>, vector<8x128xf32>
    %c0_106 = arith.constant 0 : index
    %c0_107 = arith.constant 0 : index
    %322 = vector.load %arg6[%c0_106, %c0_107] : memref<8x128xf32, #tpu.memory_space<vmem>>, vector<8x128xf32>
    tpu.vector_store %arg6[%c0_106, %c0_107], %321 {strides = array<i32>} : memref<8x128xf32, #tpu.memory_space<vmem>>, vector<8x128xf32>,
    return
  }
}

</mosaic_0001>

<bundles_post_ra>
// kernel: production_planning_forward.1
= control target key start
LH: loop header
LB: loop body
LE: loop exit
PB: predicated region body
PF: predicated region fallthrough
CT: control target
= control target key end

     0   :  { %vm28_vm0 = vcmask 130048   ;;  %vm65_vm1 = vcmask 261120   ;;  %s4679_s23 = smov 64   ;;  %s4680_s24 = smov 32   ;;  %vm300_vm2 = vcmask 64512   ;;  %vm374_vm4 = vcmask 523264   ;;  %s7031_s1 = inlined_call_operand.vmem [shape: f32[95,32], index: 1, kind: input, shape index: {}]   ;;  %s7032_s0 = inlined_call_operand.vmem [shape: f32[8,16], index: 0, kind: input, shape index: {}]   ;;  %s7033_s2 = inlined_call_operand.vmem [shape: f32[32,1024], index: 2, kind: input, shape index: {}]   ;;  %s7034_s5 = inlined_call_operand.vmem [shape: f32[6,256], index: 5, kind: input, shape index: {}]   ;;  %s7035_s3 = inlined_call_operand.vmem [shape: f32[256,96], index: 3, kind: input, shape index: {}]   ;;  %s7036_s4 = inlined_call_operand.vmem [shape: f32[96,128], index: 4, kind: input, shape index: {}]   ;;  %s7037_s6 = inlined_call_operand.vmem [shape: f32[8,128], index: 6, kind: output, shape index: {}]  }
   0x1   :  { %v25_v0 = vld [vmem:[%s7031_s1 + $0x8] sm:$0xff]  ;;  %v24_v1 = vld [vmem:[%s7031_s1] sm:$0xff]  ;;  %v62_v3 = vld [vmem:[%s7033_s2 + $0xd0] sm:$0xff]  ;;  %s4681_s25 = smov 96   ;;  %s4682_s28 = smov 88   ;;  %vm1510_vm12 = vcmask 195584  }
   0x2   :  { %46 = vmatpush.msra.mxu0 %v25_v0  ;;  %v23_v2 = vld [vmem:[%s7032_s0] sm:$0xff]  ;;  %81 = vmatpush.msra.mxu1 %v62_v3  ;;  %v61_v4 = vld [vmem:[%s7033_s2 + $0x90] sm:$0xff]  ;;  %v103_v16 = vld [vmem:[%s7033_s2 + $0xc8] sm:$0xff]  ;;  %s4683_s29 = smov 120   ;;  %s4684_s30 = smov 72  }
   0x3   :  { %v60_v5 = vld [vmem:[%s7033_s2 + $0x50] sm:$0xff]  ;;  %v102_v15 = vld [vmem:[%s7033_s2 + $0xc0] sm:$0xff]  ;;  %145 = vmatpush.msra.mxu3 %v103_v16  ;;  %v101_v18 = vld [vmem:[%s7033_s2 + $0x88] sm:$0xff]  ;;  %s4685_s7 = smov 80   ;;  %s4687_s8 = smov 104  }
   0x4   :  { %47 = vmatpush.msra.mxu0 %v24_v1  ;;  %82 = vmatpush.msra.mxu1 %v61_v4  ;;  %v59_v6 = vld [vmem:[%s7033_s2 + $0x10] sm:$0xff]  ;;  %v100_v17 = vld [vmem:[%s7033_s2 + $0x80] sm:$0xff]  ;;  %v99_v20 = vld [vmem:[%s7033_s2 + $0x48] sm:$0xff]  ;;  %s4688_s9 = smov 112   ;;  %s4689_s0 = smov 56  }
   0x5   :  { %3906 = vmatmul.msk.f32.vlgmr.msra.gmra.mxu0 %vm28_vm0, %v23_v2  ;;  %v4354_v7 = vld [vmem:[%s7031_s1 + $0x50] ss:$0 sm:$0xff]  ;;  %v4355_v10 = vld [vmem:[%s7031_s1 + $0x52] ss:$0 sm:$0xff]  ;;  %v4356_v12 = vld [vmem:[%s7031_s1 + $0x53] ss:$0 sm:$0xff]  ;;  %125 = vmatpush.msra.mxu2 %v102_v15 }
   0x6   :  { %83 = vmatpush.msra.mxu1 %v60_v5  ;;  %146 = vmatpush.msra.mxu3 %v101_v18  ;;  %v98_v19 = vld [vmem:[%s7033_s2 + $0x40] sm:$0xff]  ;;  %v97_v22 = vld [vmem:[%s7033_s2 + $0x8] sm:$0xff]  ;;  %v212_v23 = vld [vmem:[%s7033_s2 + $0xd8] sm:$0xff]  ;;  %s4690_s10 = smov 48   ;;  %s4691_s11 = smov 40  }
   0x7   :  { %126 = vmatpush.msra.mxu2 %v100_v17  ;;  %v96_v21 = vld [vmem:[%s7033_s2] sm:$0xff]  ;;  %v211_v24 = vld [vmem:[%s7033_s2 + $0x98] sm:$0xff]  ;;  %247 = vmatpush.msrb.mxu0 %v212_v23  ;;  %v4357_v25 = vld [vmem:[%s7031_s1 + $0x51] ss:$0 sm:$0xff]  ;;  %s4692_s12 = smov 8   ;;  %s4693_s13 = smov 16  }
   0x8   :  { %84 = vmatpush.msra.mxu1 %v59_v6  ;;  %147 = vmatpush.msra.mxu3 %v99_v20  ;;  %v4358_v28 = vld [vmem:[%s7031_s1 + $0x54] ss:$0 sm:$0xff]  ;;  %v4359_v30 = vld [vmem:[%s7031_s1 + $0x55] ss:$0 sm:$0xff]  ;;  %v210_v33 = vld [vmem:[%s7033_s2 + $0x58] sm:$0xff]  ;;  %s4694_s14 = smov 24  }
   0x9   :  { %127 = vmatpush.msra.mxu2 %v98_v19  ;;  %248 = vmatpush.msrb.mxu0 %v211_v24  ;;  %v209_v34 = vld [vmem:[%s7033_s2 + $0x18] sm:$0xff]  ;;  %v104_v35 = vld [vmem:[%s7034_s5] ss:$8 sm:$0x3]  ;;  %v213_v53 = vld [vmem:[%s7034_s5 + $0x1] ss:$0 sm:$0xff] }
   0xa   :  { %148 = vmatpush.msra.mxu3 %v97_v22  ;;  %v106_v36 = vperm.slane %v104_v35, 0  ;;  %v107_v37 = vperm.slane %v104_v35, 1 }
   0xb   :  { %128 = vmatpush.msra.mxu2 %v96_v21  ;;  %249 = vmatpush.msrb.mxu0 %v210_v33 }
   0xd   :  { %250 = vmatpush.msrb.mxu0 %v209_v34 }
  0x82   :  { %v49_v8 = vpop.f32.mrf.mxu0 }
  0x83   :  { %v50_v9 = vadd.f32 %v4354_v7, %v49_v8 }
  0x85   :  { %v52_v11 = vmax.f32 %v50_v9, 0.0 }
  0x87   :  { %v55_v13 = vmul.f32 %v4355_v10, %v52_v11 }
  0x89   :  { %v58_v14 = vadd.f32 %v4356_v12, %v55_v13 }
  0x8b   :  { %3907 = vmatmul.msk.f32.vlgmr.msra.gmra.mxu1 %vm65_vm1, %v58_v14 }
 0x108   :  { %v86_v26 = vpop.f32.mrf.mxu1 }
 0x109   :  { %v87_v27 = vadd.f32 %v4357_v25, %v86_v26 }
 0x10b   :  { %v89_v29 = vmax.f32 %v87_v27, 0.0 }
 0x10d   :  { %v92_v31 = vmul.f32 %v4358_v28, %v89_v29 }
 0x10f   :  { %v95_v32 = vadd.f32 %v4359_v30, %v92_v31 }
 0x111   :  { %3908 = vmatmul.msk.f32.vlgmr.msra.gmra.mxu2 %vm65_vm1, %v95_v32  ;;  %3909 = vmatmul.msk.f32.vlgmr.msra.gmra.mxu3 %vm65_vm1, %v95_v32 }
 0x194   :  { %v130_v38 = vpop.f32.mrf.mxu2  ;;  %v150_v39 = vpop.f32.mrf.mxu3 }
 0x195   :  { %v4813_v40 = vadd.f32 %v130_v38, %v106_v36  ;;  %v4815_v41 = vadd.f32 %v150_v39, %v107_v37 }
 0x197   :  { %167 = vrot.lane.b32.xlu2 %v4815_v41, %s4679_s23  ;;  %160 = vrot.lane.b32.xlu1 %v4813_v40, %s4680_s24 }
 0x198   :  { %154 = vrot.lane.b32.xlu0 %v4813_v40, %s4681_s25  ;;  %3910 = vmatmul.msk.f32.vlgmr.msrb.gmra.mxu0 %vm65_vm1, %v4813_v40 }
 0x19f   :  { %170 = vrot.lane.b32.xlu2 %v4815_v41, %s4680_s24  ;;  %164 = vrot.lane.b32.xlu1 %v4815_v41, %s4681_s25 }
 0x1a0   :  { %157 = vrot.lane.b32.xlu0 %v4813_v40, %s4679_s23 }
 0x1f1   :  { %v4849_v46 = vpop.permute.xlu2 %167 }
 0x1f9   :  { %v4853_v47 = vpop.permute.xlu2 %170 }
 0x1fa   :  { %7056 = vst [vmem:[#allocation2_spill] sm:$0xff] %v4853_v47 }
 0x209   :  { %v4839_v44 = vpop.permute.xlu1 %160 }
 0x20a   :  { %v4831_v42 = vpop.permute.xlu0 %154 }
 0x20b   :  { %3911 = vmatmul.msk.f32.gmra.mxu0 %vm65_vm1, %v4831_v42 }
 0x211   :  { %v4845_v45 = vpop.permute.xlu1 %164 }
 0x212   :  { %v4835_v43 = vpop.permute.xlu0 %157 }
 0x213   :  { %3912 = vmatmul.msk.f32.gmra.mxu0 %vm65_vm1, %v4835_v43 }
 0x215   :  { %v252_v48 = vpop.f32.mrf.mxu0 }
 0x216   :  { %v4882_v62 = vadd.f32 %v252_v48, %v213_v53 }
 0x21b   :  { %3913 = vmatmul.msk.f32.gmra.mxu0 %vm65_vm1, %v4839_v44 }
 0x223   :  { %3914 = vmatmul.msk.f32.gmra.mxu0 %vm65_vm1, %v4815_v41 }
 0x22b   :  { %3915 = vmatmul.msk.f32.gmra.mxu0 %vm65_vm1, %v4845_v45 }
 0x233   :  { %3916 = vmatmul.msk.f32.gmra.mxu0 %vm65_vm1, %v4849_v46 }
 0x23b   :  { %3917 = vmatmul.msk.f32.gmra.mxu0 %vm65_vm1, %v4853_v47 }
 0x288   :  { %v255_v49 = vpop.f32.mrf.mxu0 }
 0x289   :  { %v4886_v0 = vadd.f32 %v255_v49, %v213_v53  ;;  %v173_v49 = vlaneseq }
 0x28b   :  { %v4920_v4 = vpack.i.bf16 %v4882_v62, %v4886_v0 }
 0x290   :  { %v258_v50 = vpop.f32.mrf.mxu0 }
 0x291   :  { %v4864_v57 = vadd.f32 %v258_v50, %v213_v53  ;;  %v174_v50 = vshrl.u32 %v173_v49, 7 }
 0x298   :  { %v261_v51 = vpop.f32.mrf.mxu0 }
 0x299   :  { %v4872_v60 = vadd.f32 %v261_v51, %v213_v53  ;;  %v5003_v51 = vand.u32 127, %v173_v49 }
 0x29b   :  { %v4896_v1 = vpack.i.bf16 %v4864_v57, %v4872_v60  ;;  %7057 = vst [vmem:[#allocation3_spill] sm:$0xff] %v5003_v51 }
 0x2a0   :  { %v264_v52 = vpop.f32.mrf.mxu0 }
 0x2a1   :  { %v4884_v63 = vadd.f32 %v264_v52, %v213_v53  ;;  %v184_v52 = vand.u32 7, %v174_v50 }
 0x2a8   :  { %v267_v54 = vpop.f32.mrf.mxu0 }
 0x2a9   :  { %v4860_v55 = vadd.f32 %v267_v54, %v213_v53  ;;  %v175_v54 = vadd.s32 8, %v174_v50 }
 0x2ab   :  { %294 = vrot.lane.b32.xlu2 %v4860_v55, %s4681_s25  ;;  %v4906_v2 = vpack.i.bf16 %v4884_v63, %v4860_v55 }
 0x2b0   :  { %v270_v56 = vpop.f32.mrf.mxu0 }
 0x2b1   :  { %v4866_v58 = vadd.f32 %v270_v56, %v213_v53  ;;  %v4686_v56 = vmov -1e+30  }
 0x2b3   :  { %296 = vrot.lane.b32.xlu1 %v4866_v58, %s4681_s25  ;;  %288 = vrot.lane.b32.xlu2 %v4864_v57, %s4681_s25 }
 0x2b8   :  { %v273_v59 = vpop.f32.mrf.mxu0 }
 0x2b9   :  { %v4874_v61 = vadd.f32 %v273_v59, %v213_v53  ;;  %v192_v53 = vand.u32 7, %v5003_v51 }
 0x2bb   :  { %298 = vrot.lane.b32.xlu0 %v4874_v61, %s4681_s25  ;;  %290 = vrot.lane.b32.xlu1 %v4872_v60, %s4681_s25  ;;  %v4910_v3 = vpack.i.bf16 %v4866_v58, %v4874_v61  ;;  %vm193_vm3 = vcmp.eq.s32.totalorder %v184_v52, %v192_v53 }
 0x2bc   :  { %578 = vrot.lane.b32.xlu2 %v4860_v55, %s4682_s28  ;;  %v5006_v59 = vsel %vm193_vm3, 0.0, %v4686_v56 }
 0x2bd   :  { %7058 = vst [vmem:[#allocation4_spill] sm:$0xff] %v5006_v59 }
 0x2c3   :  { %292 = vrot.lane.b32.xlu0 %v4884_v63, %s4681_s25  ;;  %284 = vrot.lane.b32.xlu1 %v4882_v62, %s4681_s25 }
 0x2c4   :  { %554 = vrot.lane.b32.xlu2 %v4886_v0, %s4683_s29 }
 0x2cb   :  { %286 = vrot.lane.b32.xlu0 %v4886_v0, %s4681_s25  ;;  %4190 = vrot.lane.b32.xlu1 %v4896_v1, %s4679_s23 }
 0x2cc   :  { %560 = vrot.lane.b32.xlu2 %v4884_v63, %s4683_s29 }
 0x2d3   :  { %4185 = vrot.lane.b32.xlu0 %v4906_v2, %s4679_s23  ;;  %580 = vrot.lane.b32.xlu1 %v4866_v58, %s4682_s28 }
 0x2d4   :  { %4200 = vrot.lane.b32.xlu2 %v4910_v3, %s4679_s23 }
 0x2db   :  { %4195 = vrot.lane.b32.xlu0 %v4920_v4, %s4679_s23  ;;  %574 = vrot.lane.b32.xlu1 %v4872_v60, %s4682_s28 }
 0x2e3   :  { %576 = vrot.lane.b32.xlu0 %v4884_v63, %s4682_s28  ;;  %570 = vrot.lane.b32.xlu1 %v4886_v0, %s4682_s28 }
 0x2eb   :  { %572 = vrot.lane.b32.xlu0 %v4864_v57, %s4682_s28  ;;  %568 = vrot.lane.b32.xlu1 %v4882_v62, %s4682_s28 }
 0x2f3   :  { %558 = vrot.lane.b32.xlu0 %v4872_v60, %s4683_s29  ;;  %552 = vrot.lane.b32.xlu1 %v4882_v62, %s4683_s29 }
 0x2fb   :  { %1144 = vrot.lane.b32.xlu0 %v4866_v58, %s4684_s30  ;;  %556 = vrot.lane.b32.xlu1 %v4864_v57, %s4683_s29 }
 0x303   :  { %1142 = vrot.lane.b32.xlu0 %v4860_v55, %s4684_s30  ;;  %562 = vrot.lane.b32.xlu1 %v4860_v55, %s4683_s29 }
 0x305   :  { %v295_v5 = vpop.permute.xlu2 %294 }
 0x30b   :  { %862 = vrot.lane.b32.xlu0 %v4866_v58, %s4685_s7 }
 0x30d   :  { %v289_v6 = vpop.permute.xlu2 %288 }
 0x313   :  { %582 = vrot.lane.b32.xlu0 %v4874_v61, %s4682_s28 }
 0x316   :  { %v4950_v7 = vpop.permute.xlu2 %578 }
 0x31b   :  { %1146 = vrot.lane.b32.xlu0 %v4874_v61, %s4684_s30 }
 0x31e   :  { %v4954_v8 = vpop.permute.xlu2 %554 }
 0x323   :  { %864 = vrot.lane.b32.xlu0 %v4874_v61, %s4685_s7 }
 0x325   :  { %v297_v10 = vpop.permute.xlu1 %296 }
 0x326   :  { %v4958_v9 = vpop.permute.xlu2 %560 }
 0x32d   :  { %v299_v11 = vpop.permute.xlu0 %298  ;;  %v291_v15 = vpop.permute.xlu1 %290 }
 0x32e   :  { %v4201_v12 = vpop.permute.xlu2 %4200  ;;  %3918 = vmatpush.xpose.msk.msrb.mxu1 %vm300_vm2, %v299_v11  ;;  %v176_v11 = vadd.s32 16, %v174_v50 }
 0x32f   :  { %v4202_v13 = vunpack.i.l.bf16 %v4201_v12  ;;  %v4203_v14 = vunpack.i.h.bf16 %v4201_v12 }
 0x331   :  { %519 = vmatpush.msrb.mxu2 %v4202_v13  ;;  %4151 = vmatpush.msrb.mxu3 %v4202_v13  ;;  %v186_v13 = vand.u32 7, %v176_v11 }
 0x332   :  { %3919 = vmatpush.xpose.msk.msrb.mxu1 %vm300_vm2, %v297_v10 }
 0x333   :  { %520 = vmatpush.msrb.mxu2 %v4203_v14  ;;  %4152 = vmatpush.msrb.mxu3 %v4203_v14  ;;  %vm195_vm6 = vcmp.eq.s32.totalorder %v186_v13, %v192_v53 }
 0x335   :  { %v293_v16 = vpop.permute.xlu0 %292  ;;  %v285_v17 = vpop.permute.xlu1 %284 }
 0x336   :  { %3920 = vmatpush.xpose.msk.msrb.mxu1 %vm300_vm2, %v295_v5  ;;  %v185_v5 = vand.u32 7, %v175_v54 }
 0x338   :  { %vm194_vm5 = vcmp.eq.s32.totalorder %v185_v5, %v192_v53 }
 0x339   :  { %v5013_v12 = vsel %vm194_vm5, 0.0, %v4686_v56 }
 0x33a   :  { %3921 = vmatpush.xpose.msk.msrb.mxu1 %vm300_vm2, %v293_v16  ;;  %7059 = vst [vmem:[#allocation5_spill] sm:$0xff] %v5013_v12 }
 0x33d   :  { %v287_v18 = vpop.permute.xlu0 %286  ;;  %v4191_v21 = vpop.permute.xlu1 %4190 }
 0x33e   :  { %3922 = vmatpush.xpose.msk.msrb.mxu1 %vm300_vm2, %v291_v15  ;;  %v4192_v23 = vunpack.i.l.bf16 %v4191_v21  ;;  %v4193_v24 = vunpack.i.h.bf16 %v4191_v21 }
 0x342   :  { %3923 = vmatpush.xpose.msk.msrb.mxu1 %vm300_vm2, %v289_v6 }
 0x345   :  { %v4186_v19 = vpop.permute.xlu0 %4185  ;;  %v581_v34 = vpop.permute.xlu1 %580 }
 0x346   :  { %3924 = vmatpush.xpose.msk.msrb.mxu1 %vm300_vm2, %v287_v18  ;;  %v4187_v20 = vunpack.i.l.bf16 %v4186_v19  ;;  %v4188_v22 = vunpack.i.h.bf16 %v4186_v19  ;;  %v5017_v18 = vsel %vm195_vm6, 0.0, %v4686_v56 }
 0x347   :  { %7060 = vst [vmem:[#allocation6_spill] sm:$0xff] %v5017_v18 }
 0x348   :  { %521 = vmatpush.msrb.mxu2 %v4187_v20  ;;  %4153 = vmatpush.msrb.mxu3 %v4187_v20 }
 0x34a   :  { %3925 = vmatpush.xpose.msk.msrb.mxu1 %vm300_vm2, %v285_v17  ;;  %522 = vmatpush.msrb.mxu2 %v4188_v22  ;;  %v177_v17 = vadd.s32 24, %v174_v50 }
 0x34b   :  { %4154 = vmatpush.msrb.mxu3 %v4188_v22 }
 0x34c   :  { %523 = vmatpush.msrb.mxu2 %v4192_v23  ;;  %v187_v19 = vand.u32 7, %v177_v17 }
 0x34d   :  { %4155 = vmatpush.msrb.mxu3 %v4192_v23  ;;  %v4196_v25 = vpop.permute.xlu0 %4195  ;;  %3926 = vmatmul.msk.f32.vlgmr.msrb.gmra.mxu1 %vm300_vm2, %v4882_v62  ;;  %v575_v36 = vpop.permute.xlu1 %574  ;;  %v178_v23 = vadd.s32 32, %v174_v50 }
 0x34e   :  { %524 = vmatpush.msrb.mxu2 %v4193_v24  ;;  %v4197_v26 = vunpack.i.l.bf16 %v4196_v25  ;;  %v4198_v27 = vunpack.i.h.bf16 %v4196_v25  ;;  %vm196_vm7 = vcmp.eq.s32.totalorder %v187_v19, %v192_v53 }
 0x34f   :  { %4156 = vmatpush.msrb.mxu3 %v4193_v24  ;;  %v5021_v24 = vsel %vm196_vm7, 0.0, %v4686_v56  ;;  %v188_v25 = vand.u32 7, %v178_v23 }
 0x350   :  { %525 = vmatpush.msrb.mxu2 %v4197_v26  ;;  %7061 = vst [vmem:[#allocation7_spill] sm:$0xff] %v5021_v24 }
 0x351   :  { %4157 = vmatpush.msrb.mxu3 %v4197_v26  ;;  %vm197_vm8 = vcmp.eq.s32.totalorder %v188_v25, %v192_v53 }
 0x352   :  { %526 = vmatpush.msrb.mxu2 %v4198_v27 }
 0x353   :  { %4158 = vmatpush.msrb.mxu3 %v4198_v27 }
 0x355   :  { %v577_v28 = vpop.permute.xlu0 %576  ;;  %3927 = vmatmul.msk.f32.gmra.mxu1 %vm300_vm2, %v4886_v0  ;;  %v571_v39 = vpop.permute.xlu1 %570 }
 0x35d   :  { %v573_v29 = vpop.permute.xlu0 %572  ;;  %3928 = vmatmul.msk.f32.gmra.mxu1 %vm300_vm2, %v4864_v57  ;;  %v569_v48 = vpop.permute.xlu1 %568 }
 0x365   :  { %v4974_v30 = vpop.permute.xlu0 %558  ;;  %3929 = vmatmul.msk.f32.gmra.mxu1 %vm300_vm2, %v4872_v60 }
 0x36d   :  { %v4978_v31 = vpop.permute.xlu0 %1144  ;;  %3930 = vmatmul.msk.f32.gmra.mxu1 %vm300_vm2, %v4884_v63 }
 0x375   :  { %v4982_v32 = vpop.permute.xlu0 %1142  ;;  %3931 = vmatmul.msk.f32.gmra.mxu1 %vm300_vm2, %v4860_v55 }
 0x37d   :  { %v863_v33 = vpop.permute.xlu0 %862  ;;  %3932 = vmatmul.msk.f32.gmra.mxu1 %vm300_vm2, %v4866_v58 }
 0x385   :  { %v583_v35 = vpop.permute.xlu0 %582  ;;  %3933 = vmatmul.msk.f32.gmra.mxu1 %vm300_vm2, %v4874_v61 }
 0x386   :  { %3942 = vmatpush.xpose.msk.msra.mxu3 %vm300_vm2, %v583_v35 }
 0x38a   :  { %3943 = vmatpush.xpose.msk.msra.mxu3 %vm300_vm2, %v581_v34 }
 0x38d   :  { %v4992_v37 = vpop.permute.xlu0 %1146 }
 0x38e   :  { %3944 = vmatpush.xpose.msk.msra.mxu3 %vm300_vm2, %v4950_v7 }
 0x392   :  { %3945 = vmatpush.xpose.msk.msra.mxu3 %vm300_vm2, %v577_v28 }
 0x395   :  { %v865_v38 = vpop.permute.xlu0 %864 }
 0x396   :  { %3946 = vmatpush.xpose.msk.msra.mxu3 %vm300_vm2, %v575_v36  ;;  %3966 = vmatpush.xpose.msk.msra.mxu2 %vm300_vm2, %v865_v38 }
 0x39a   :  { %3947 = vmatpush.xpose.msk.msra.mxu3 %vm300_vm2, %v573_v29  ;;  %3967 = vmatpush.xpose.msk.msra.mxu2 %vm300_vm2, %v863_v33  ;;  %v179_v29 = vadd.s32 40, %v174_v50  ;;  %v5028_v33 = vsel %vm197_vm8, 0.0, %v4686_v56 }
 0x39b   :  { %7062 = vst [vmem:[#allocation8_spill] sm:$0xff] %v5028_v33 }
 0x39c   :  { %v189_v34 = vand.u32 7, %v179_v29 }
 0x39e   :  { %3948 = vmatpush.xpose.msk.msra.mxu3 %vm300_vm2, %v571_v39  ;;  %vm198_vm9 = vcmp.eq.s32.totalorder %v189_v34, %v192_v53  ;;  %v180_v39 = vadd.s32 48, %v174_v50 }
 0x3a0   :  { %v190_v49 = vand.u32 7, %v180_v39 }
 0x3a2   :  { %3949 = vmatpush.xpose.msk.msra.mxu3 %vm300_vm2, %v569_v48  ;;  %v5032_v48 = vsel %vm198_vm9, 0.0, %v4686_v56  ;;  %vm199_vm10 = vcmp.eq.s32.totalorder %v190_v49, %v192_v53 }
 0x3a3   :  { %7063 = vst [vmem:[#allocation9_spill] sm:$0xff] %v5032_v48 }
 0x3ca   :  { %v350_v6 = vpop.f32.mrf.mxu1 }
 0x3cb   :  { %v5009_v7 = vadd.f32 %v350_v6, %v5006_v59  ;;  %v181_v6 = vadd.s32 56, %v174_v50  ;;  %v5050_v50 = vpop.permute.xlu1 %552 }
 0x3cd   :  { %v375_v10 = vsel %vm374_vm4, %v5009_v7, -inf  ;;  %v191_v11 = vand.u32 7, %v181_v6 }
 0x3ce   :  { %376 = vmax.xlane.f32.xlu1 %v375_v10  ;;  %v5036_v10 = vsel %vm199_vm10, 0.0, %v4686_v56 }
 0x3cf   :  { %7064 = vst [vmem:[#allocation10_spill] sm:$0xff] %v5036_v10  ;;  %vm200_vm11 = vcmp.eq.s32.totalorder %v191_v11, %v192_v53 }
 0x3d0   :  { %v5040_v17 = vsel %vm200_vm11, 0.0, %v4686_v56 }
 0x3d1   :  { %7065 = vst [vmem:[#allocation11_spill] sm:$0xff] %v5040_v17 }
 0x3d2   :  { %v353_v14 = vpop.f32.mrf.mxu1 }
 0x3d3   :  { %v354_v15 = vadd.f32 %v353_v14, %v5013_v12  ;;  %v5052_v53 = vpop.permute.xlu1 %556 }
 0x3d5   :  { %v378_v16 = vsel %vm374_vm4, %v354_v15, -inf }
 0x3d6   :  { %379 = vmax.xlane.f32.xlu2 %v378_v16 }
 0x3da   :  { %v356_v20 = vpop.f32.mrf.mxu1 }
 0x3db   :  { %v357_v21 = vadd.f32 %v356_v20, %v5017_v18  ;;  %v5054_v56 = vpop.permute.xlu1 %562 }
 0x3dd   :  { %v381_v22 = vsel %vm374_vm4, %v357_v21, -inf }
 0x3de   :  { %382 = vmax.xlane.f32.xlu0 %v381_v22 }
 0x3e2   :  { %v359_v26 = vpop.f32.mrf.mxu1 }
 0x3e3   :  { %v5024_v27 = vadd.f32 %v359_v26, %v5021_v24 }
 0x3e5   :  { %v384_v28 = vsel %vm374_vm4, %v5024_v27, -inf }
 0x3e6   :  { %385 = vmax.xlane.f32.xlu2 %v384_v28 }
 0x3ea   :  { %v362_v35 = vpop.f32.mrf.mxu1 }
 0x3eb   :  { %v363_v36 = vadd.f32 %v362_v35, %v5028_v33 }
 0x3ed   :  { %v387_v38 = vsel %vm374_vm4, %v363_v36, -inf }
 0x3ee   :  { %388 = vmax.xlane.f32.xlu2 %v387_v38 }
 0x3f2   :  { %v365_v52 = vpop.f32.mrf.mxu1 }
 0x3f3   :  { %v366_v54 = vadd.f32 %v365_v52, %v5032_v48 }
 0x3f5   :  { %v390_v5 = vsel %vm374_vm4, %v366_v54, -inf }
 0x3f6   :  { %391 = vmax.xlane.f32.xlu0 %v390_v5 }
 0x3fa   :  { %v368_v13 = vpop.f32.mrf.mxu1 }
 0x3fb   :  { %v369_v14 = vadd.f32 %v368_v13, %v5036_v10 }
 0x3fd   :  { %v393_v16 = vsel %vm374_vm4, %v369_v14, -inf }
 0x3fe   :  { %394 = vmax.xlane.f32.xlu1 %v393_v16 }
 0x402   :  { %v371_v19 = vpop.f32.mrf.mxu1 }
 0x403   :  { %v372_v20 = vadd.f32 %v371_v19, %v5040_v17 }
 0x405   :  { %v396_v22 = vsel %vm374_vm4, %v372_v20, -inf }
 0x406   :  { %397 = vmax.xlane.f32.xlu2 %v396_v22 }
 0x417   :  { %860 = vrot.lane.b32.xlu1 %v4860_v55, %s4685_s7 }
 0x41e   :  { %1140 = vrot.lane.b32.xlu2 %v4884_v63, %s4684_s30 }
 0x41f   :  { %564 = vrot.lane.b32.xlu1 %v4866_v58, %s4683_s29 }
 0x441   :  { %v377_v23 = vpop.xlane.xlu1 %376 }
 0x442   :  { %v399_v25 = vsub.f32 %v5009_v7, %v377_v23 }
 0x444   :  { %v407_v26 = vmul.f32 1.442695, %v399_v25 }
 0x446   :  { %4369 = vpow2.f32 %v407_v26 }
 0x449   :  { %v380_v28 = vpop.xlane.xlu2 %379 }
 0x44a   :  { %v400_v29 = vsub.f32 %v354_v15, %v380_v28 }
 0x44c   :  { %v5057_v34 = vpop.eup %4369  ;;  %v409_v35 = vmul.f32 1.442695, %v400_v29 }
 0x44d   :  { %v423_v38 = vsel %vm374_vm4, %v5057_v34, 0.0 }
 0x44e   :  { %4371 = vpow2.f32 %v409_v35  ;;  %424 = vadd.xlane.f32.xlu1 %v423_v38 }
 0x451   :  { %v383_v39 = vpop.xlane.xlu0 %382 }
 0x452   :  { %v401_v49 = vsub.f32 %v357_v21, %v383_v39 }
 0x454   :  { %v5061_v52 = vpop.eup %4371  ;;  %v411_v5 = vmul.f32 1.442695, %v401_v49 }
 0x455   :  { %v426_v7 = vsel %vm374_vm4, %v5061_v52, 0.0 }
 0x456   :  { %4373 = vpow2.f32 %v411_v5  ;;  %427 = vadd.xlane.f32.xlu2 %v426_v7 }
 0x459   :  { %v386_v6 = vpop.xlane.xlu2 %385 }
 0x45c   :  { %v5065_v15 = vpop.eup %4373 }
 0x45d   :  { %v429_v11 = vsel %vm374_vm4, %v5065_v15, 0.0 }
 0x45e   :  { %430 = vadd.xlane.f32.xlu0 %v429_v11 }
 0x461   :  { %v389_v13 = vpop.xlane.xlu2 %388 }
 0x462   :  { %v403_v16 = vsub.f32 %v363_v36, %v389_v13 }
 0x464   :  { %v415_v19 = vmul.f32 1.442695, %v403_v16 }
 0x466   :  { %4375 = vpow2.f32 %v415_v19 }
 0x469   :  { %v392_v21 = vpop.xlane.xlu0 %391 }
 0x46a   :  { %v404_v22 = vsub.f32 %v366_v54, %v392_v21 }
 0x46c   :  { %v5069_v23 = vpop.eup %4375  ;;  %v417_v25 = vmul.f32 1.442695, %v404_v22 }
 0x46d   :  { %v435_v26 = vsel %vm374_vm4, %v5069_v23, 0.0 }
 0x46e   :  { %4377 = vpow2.f32 %v417_v25  ;;  %436 = vadd.xlane.f32.xlu1 %v435_v26 }
 0x471   :  { %v395_v28 = vpop.xlane.xlu1 %394 }
 0x472   :  { %v405_v29 = vsub.f32 %v369_v14, %v395_v28 }
 0x474   :  { %v5073_v35 = vpop.eup %4377  ;;  %v419_v38 = vmul.f32 1.442695, %v405_v29 }
 0x475   :  { %v438_v36 = vsel %vm374_vm4, %v5073_v35, 0.0 }
 0x476   :  { %4379 = vpow2.f32 %v419_v38  ;;  %439 = vadd.xlane.f32.xlu2 %v438_v36 }
 0x479   :  { %v398_v39 = vpop.xlane.xlu2 %397 }
 0x47a   :  { %v406_v54 = vsub.f32 %v372_v20, %v398_v39  ;;  %v402_v20 = vsub.f32 %v5024_v27, %v386_v6 }
 0x47c   :  { %v5077_v49 = vpop.eup %4379  ;;  %v421_v5 = vmul.f32 1.442695, %v406_v54  ;;  %v413_v19 = vmul.f32 1.442695, %v402_v20 }
 0x47d   :  { %v441_v7 = vsel %vm374_vm4, %v5077_v49, 0.0 }
 0x47e   :  { %4381 = vpow2.f32 %v421_v5  ;;  %442 = vadd.xlane.f32.xlu0 %v441_v7 }
 0x47f   :  { %4383 = vpow2.f32 %v413_v19 }
 0x481   :  { %v1141_v21 = vpop.permute.xlu2 %1140 }
 0x484   :  { %v5081_v11 = vpop.eup %4381 }
 0x485   :  { %v444_v14 = vsel %vm374_vm4, %v5081_v11, 0.0  ;;  %v5119_v25 = vpop.eup %4383 }
 0x486   :  { %445 = vadd.xlane.f32.xlu1 %v444_v14  ;;  %v432_v6 = vsel %vm374_vm4, %v5119_v25, 0.0 }
 0x489   :  { %v861_v13 = vpop.permute.xlu1 %860 }
 0x48a   :  { %3968 = vmatpush.xpose.msk.msra.mxu2 %vm300_vm2, %v861_v13 }
 0x48e   :  { %858 = vrot.lane.b32.xlu2 %v4884_v63, %s4685_s7 }
 0x491   :  { %v5111_v16 = vpop.permute.xlu1 %564 }
 0x492   :  { %856 = vrot.lane.b32.xlu0 %v4872_v60, %s4685_s7 }
 0x496   :  { %1136 = vrot.lane.b32.xlu2 %v4864_v57, %s4684_s30 }
 0x49a   :  { %1132 = vrot.lane.b32.xlu0 %v4882_v62, %s4684_s30 }
 0x49e   :  { %566 = vrot.lane.b32.xlu2 %v4874_v61, %s4683_s29 }
 0x49f   :  { %1138 = vrot.lane.b32.xlu1 %v4872_v60, %s4684_s30 }
 0x4a2   :  { %1116 = vrot.lane.b32.xlu0 %v4882_v62, %s4687_s8 }
 0x4a6   :  { %1134 = vrot.lane.b32.xlu2 %v4886_v0, %s4684_s30 }
 0x4aa   :  { %1118 = vrot.lane.b32.xlu0 %v4886_v0, %s4687_s8 }
 0x4ae   :  { %854 = vrot.lane.b32.xlu2 %v4864_v57, %s4685_s7 }
 0x4b2   :  { %1120 = vrot.lane.b32.xlu0 %v4864_v57, %s4687_s8 }
 0x4b6   :  { %852 = vrot.lane.b32.xlu2 %v4886_v0, %s4685_s7 }
 0x4ba   :  { %1122 = vrot.lane.b32.xlu0 %v4872_v60, %s4687_s8 }
 0x4be   :  { %834 = vrot.lane.b32.xlu2 %v4882_v62, %s4688_s9 }
 0x4c1   :  { %v425_v22 = vpop.xlane.xlu1 %424 }
 0x4c2   :  { %4385 = vrcp.f32 %v425_v22  ;;  %842 = vrot.lane.b32.xlu0 %v4884_v63, %s4688_s9 }
 0x4c6   :  { %836 = vrot.lane.b32.xlu2 %v4886_v0, %s4688_s9 }
 0x4c8   :  { %v4386_v27 = vpop.eup %4385 }
 0x4c9   :  { %v428_v26 = vpop.xlane.xlu2 %427  ;;  %433 = vadd.xlane.f32.xlu1 %v432_v6  ;;  %v455_v28 = vmul.f32 %v4386_v27, %v5057_v34 }
 0x4ca   :  { %4387 = vrcp.f32 %v428_v26  ;;  %1128 = vrot.lane.b32.xlu0 %v4866_v58, %s4687_s8 }
 0x4cb   :  { %3934 = vmatmul.msk.f32.vlgmr.msrb.gmra.mxu2 %vm374_vm4, %v455_v28 }
 0x4ce   :  { %838 = vrot.lane.b32.xlu2 %v4864_v57, %s4688_s9 }
 0x4d0   :  { %v4388_v29 = vpop.eup %4387 }
 0x4d1   :  { %v431_v38 = vpop.xlane.xlu0 %430  ;;  %v456_v0 = vmul.f32 %v4388_v29, %v5061_v52 }
 0x4d2   :  { %4389 = vrcp.f32 %v431_v38  ;;  %848 = vrot.lane.b32.xlu0 %v4874_v61, %s4688_s9 }
 0x4d3   :  { %3935 = vmatmul.msk.f32.gmra.mxu2 %vm374_vm4, %v456_v0 }
 0x4d6   :  { %1124 = vrot.lane.b32.xlu2 %v4884_v63, %s4687_s8 }
 0x4d8   :  { %v4390_v34 = vpop.eup %4389 }
 0x4d9   :  { %v457_v36 = vmul.f32 %v4390_v34, %v5065_v15 }
 0x4da   :  { %4210 = vrot.lane.b32.xlu0 %v4906_v2, %s4689_s0 }
 0x4db   :  { %3936 = vmatmul.msk.f32.gmra.mxu2 %vm374_vm4, %v457_v36 }
 0x4de   :  { %844 = vrot.lane.b32.xlu2 %v4860_v55, %s4688_s9 }
 0x4e1   :  { %v437_v57 = vpop.xlane.xlu1 %436 }
 0x4e2   :  { %4391 = vrcp.f32 %v437_v57  ;;  %850 = vrot.lane.b32.xlu1 %v4882_v62, %s4685_s7  ;;  %4220 = vrot.lane.b32.xlu0 %v4920_v4, %s4689_s0 }
 0x4e6   :  { %1130 = vrot.lane.b32.xlu2 %v4874_v61, %s4687_s8 }
 0x4e8   :  { %v4392_v63 = vpop.eup %4391 }
 0x4e9   :  { %v440_v52 = vpop.xlane.xlu2 %439  ;;  %v459_v15 = vmul.f32 %v4392_v63, %v5069_v23 }
 0x4ea   :  { %4393 = vrcp.f32 %v440_v52  ;;  %840 = vrot.lane.b32.xlu1 %v4872_v60, %s4688_s9 }
 0x4eb   :  { %3938 = vmatmul.msk.f32.vlgmr.msrb.gmra.mxu3 %vm374_vm4, %v459_v15 }
 0x4ec   :  { %3990 = vmatpush.xpose.msk.msrb.mxu3 %vm300_vm2, %v4992_v37 }
 0x4ee   :  { %4205 = vrot.lane.b32.xlu2 %v4910_v3, %s4689_s0 }
 0x4f0   :  { %v4394_v62 = vpop.eup %4393  ;;  %3991 = vmatpush.xpose.msk.msrb.mxu3 %vm300_vm2, %v4978_v31 }
 0x4f1   :  { %v859_v61 = vpop.permute.xlu2 %858  ;;  %v443_v39 = vpop.xlane.xlu0 %442  ;;  %v460_v23 = vmul.f32 %v4394_v62, %v5073_v35 }
 0x4f2   :  { %4395 = vrcp.f32 %v443_v39  ;;  %1126 = vrot.lane.b32.xlu1 %v4860_v55, %s4687_s8  ;;  %3969 = vmatpush.xpose.msk.msra.mxu2 %vm300_vm2, %v859_v61 }
 0x4f3   :  { %3939 = vmatmul.msk.f32.gmra.mxu3 %vm374_vm4, %v460_v23 }
 0x4f4   :  { %3992 = vmatpush.xpose.msk.msrb.mxu3 %vm300_vm2, %v4982_v32 }
 0x4f6   :  { %4235 = vrot.lane.b32.xlu2 %v4906_v2, %s4690_s10 }
 0x4f8   :  { %v4396_v60 = vpop.eup %4395  ;;  %3993 = vmatpush.xpose.msk.msrb.mxu3 %vm300_vm2, %v1141_v21 }
 0x4f9   :  { %v1137_v31 = vpop.permute.xlu2 %1136  ;;  %v446_v37 = vpop.xlane.xlu1 %445  ;;  %v461_v35 = vmul.f32 %v4396_v60, %v5077_v49 }
 0x4fa   :  { %4397 = vrcp.f32 %v446_v37  ;;  %846 = vrot.lane.b32.xlu1 %v4866_v58, %s4688_s9 }
 0x4fb   :  { %3940 = vmatmul.msk.f32.gmra.mxu3 %vm374_vm4, %v461_v35 }
 0x500   :  { %v4398_v55 = vpop.eup %4397 }
 0x501   :  { %v567_v54 = vpop.permute.xlu2 %566  ;;  %v462_v32 = vmul.f32 %v4398_v55, %v5081_v11 }
 0x502   :  { %4215 = vrot.lane.b32.xlu1 %v4896_v1, %s4689_s0 }
 0x503   :  { %3941 = vmatmul.msk.f32.gmra.mxu3 %vm374_vm4, %v462_v32 }
 0x504   :  { %v857_v5 = vpop.permute.xlu0 %856 }
 0x505   :  { %3970 = vmatpush.xpose.msk.msra.mxu2 %vm300_vm2, %v857_v5 }
 0x509   :  { %v1135_v7 = vpop.permute.xlu2 %1134 }
 0x50b   :  { %3950 = vmatmul.msk.f32.vlgmr.msra.gmra.mxu3 %vm300_vm2, %v5050_v50 }
 0x50c   :  { %v1133_v49 = vpop.permute.xlu0 %1132 }
 0x511   :  { %v855_v58 = vpop.permute.xlu2 %854  ;;  %v1139_v14 = vpop.permute.xlu1 %1138 }
 0x512   :  { %3971 = vmatpush.xpose.msk.msra.mxu2 %vm300_vm2, %v855_v58  ;;  %3994 = vmatpush.xpose.msk.msrb.mxu3 %vm300_vm2, %v1139_v14 }
 0x513   :  { %3951 = vmatmul.msk.f32.gmra.mxu3 %vm300_vm2, %v4954_v8 }
 0x514   :  { %v1117_v11 = vpop.permute.xlu0 %1116 }
 0x516   :  { %3995 = vmatpush.xpose.msk.msrb.mxu3 %vm300_vm2, %v1137_v31 }
 0x519   :  { %v853_v13 = vpop.permute.xlu2 %852 }
 0x51a   :  { %3972 = vmatpush.xpose.msk.msra.mxu2 %vm300_vm2, %v853_v13  ;;  %3996 = vmatpush.xpose.msk.msrb.mxu3 %vm300_vm2, %v1135_v7 }
 0x51b   :  { %3952 = vmatmul.msk.f32.gmra.mxu3 %vm300_vm2, %v5052_v53 }
 0x51c   :  { %v1119_v50 = vpop.permute.xlu0 %1118 }
 0x51e   :  { %3997 = vmatpush.xpose.msk.msrb.mxu3 %vm300_vm2, %v1133_v49 }
 0x521   :  { %v835_v20 = vpop.permute.xlu2 %834 }
 0x523   :  { %3953 = vmatmul.msk.f32.gmra.mxu3 %vm300_vm2, %v4974_v30 }
 0x524   :  { %v1121_v19 = vpop.permute.xlu0 %1120 }
 0x529   :  { %v837_v8 = vpop.permute.xlu2 %836 }
 0x52b   :  { %3954 = vmatmul.msk.f32.gmra.mxu3 %vm300_vm2, %v4958_v9 }
 0x52c   :  { %v1123_v21 = vpop.permute.xlu0 %1122 }
 0x531   :  { %v839_v22 = vpop.permute.xlu2 %838 }
 0x533   :  { %3955 = vmatmul.msk.f32.gmra.mxu3 %vm300_vm2, %v5054_v56 }
 0x534   :  { %v843_v27 = vpop.permute.xlu0 %842 }
 0x539   :  { %v1125_v6 = vpop.permute.xlu2 %1124 }
 0x53b   :  { %3956 = vmatmul.msk.f32.gmra.mxu3 %vm300_vm2, %v5111_v16 }
 0x53c   :  { %v434_v53 = vpop.xlane.xlu1 %433  ;;  %v1129_v26 = vpop.permute.xlu0 %1128 }
 0x53d   :  { %4399 = vrcp.f32 %v434_v53 }
 0x541   :  { %v845_v28 = vpop.permute.xlu2 %844 }
 0x543   :  { %v4400_v30 = vpop.eup %4399  ;;  %3957 = vmatmul.msk.f32.gmra.mxu3 %vm300_vm2, %v567_v54 }
 0x544   :  { %v458_v29 = vmul.f32 %v4400_v30, %v5119_v25  ;;  %v849_v9 = vpop.permute.xlu0 %848 }
 0x546   :  { %3937 = vmatmul.msk.f32.gmra.mxu2 %vm374_vm4, %v458_v29 }
 0x549   :  { %v1131_v38 = vpop.permute.xlu2 %1130 }
 0x54b   :  { %3998 = vmatmul.msk.f32.vlgmr.msrb.gmra.mxu3 %vm300_vm2, %v1117_v11 }
 0x54c   :  { %v4211_v34 = vpop.permute.xlu0 %4210 }
 0x54d   :  { %v4212_v57 = vunpack.i.l.bf16 %v4211_v34  ;;  %v4213_v63 = vunpack.i.h.bf16 %v4211_v34 }
 0x54e   :  { %v5231_v58 = vpop.f32.mrf.mxu2 }
 0x551   :  { %v4206_v56 = vpop.permute.xlu2 %4205 }
 0x552   :  { %v4207_v0 = vunpack.i.l.bf16 %v4206_v56  ;;  %v4208_v16 = vunpack.i.h.bf16 %v4206_v56 }
 0x553   :  { %3999 = vmatmul.msk.f32.gmra.mxu3 %vm300_vm2, %v1119_v50 }
 0x554   :  { %801 = vmatpush.msra.mxu0 %v4207_v0  ;;  %v851_v36 = vpop.permute.xlu1 %850  ;;  %v4221_v23 = vpop.permute.xlu0 %4220 }
 0x555   :  { %3973 = vmatpush.xpose.msk.msra.mxu2 %vm300_vm2, %v851_v36  ;;  %v4222_v37 = vunpack.i.l.bf16 %v4221_v23  ;;  %v4223_v35 = vunpack.i.h.bf16 %v4221_v23 }
 0x556   :  { %802 = vmatpush.msra.mxu0 %v4208_v16  ;;  %v5233_v14 = vpop.f32.mrf.mxu2 }
 0x558   :  { %803 = vmatpush.msra.mxu0 %v4212_v57  ;;  %3974 = vmatmul.msk.f32.vlgmr.msra.gmra.mxu2 %vm300_vm2, %v835_v20 }
 0x55a   :  { %804 = vmatpush.msra.mxu0 %v4213_v63 }
 0x55b   :  { %4000 = vmatmul.msk.f32.gmra.mxu3 %vm300_vm2, %v1121_v19 }
 0x55c   :  { %v841_v25 = vpop.permute.xlu1 %840 }
 0x55e   :  { %v5235_v11 = vpop.f32.mrf.mxu2 }
 0x560   :  { %3975 = vmatmul.msk.f32.gmra.mxu2 %vm300_vm2, %v837_v8 }
 0x563   :  { %4001 = vmatmul.msk.f32.gmra.mxu3 %vm300_vm2, %v1123_v21 }
 0x564   :  { %v1127_v52 = vpop.permute.xlu1 %1126 }
 0x568   :  { %3976 = vmatmul.msk.f32.gmra.mxu2 %vm300_vm2, %v839_v22 }
 0x56b   :  { %4002 = vmatmul.msk.f32.gmra.mxu3 %vm300_vm2, %v1125_v6 }
 0x56c   :  { %v847_v15 = vpop.permute.xlu1 %846 }
 0x56e   :  { %v5210_v62 = vpop.f32.mrf.mxu3 }
 0x570   :  { %3977 = vmatmul.msk.f32.gmra.mxu2 %vm300_vm2, %v841_v25 }
 0x573   :  { %4003 = vmatmul.msk.f32.gmra.mxu3 %vm300_vm2, %v1127_v52 }
 0x574   :  { %v4216_v61 = vpop.permute.xlu1 %4215 }
 0x575   :  { %v4217_v39 = vunpack.i.l.bf16 %v4216_v61  ;;  %v4218_v31 = vunpack.i.h.bf16 %v4216_v61 }
 0x576   :  { %v5214_v60 = vpop.f32.mrf.mxu3 }
 0x577   :  { %805 = vmatpush.msra.mxu0 %v4217_v39 }
 0x578   :  { %3978 = vmatmul.msk.f32.gmra.mxu2 %vm300_vm2, %v843_v27 }
 0x579   :  { %806 = vmatpush.msra.mxu0 %v4218_v31 }
 0x57b   :  { %807 = vmatpush.msra.mxu0 %v4222_v37  ;;  %4004 = vmatmul.msk.f32.gmra.mxu3 %vm300_vm2, %v1129_v26 }
 0x57d   :  { %808 = vmatpush.msra.mxu0 %v4223_v35 }
 0x57e   :  { %v5218_v55 = vpop.f32.mrf.mxu3 }
 0x580   :  { %3979 = vmatmul.msk.f32.gmra.mxu2 %vm300_vm2, %v845_v28 }
 0x583   :  { %4005 = vmatmul.msk.f32.gmra.mxu3 %vm300_vm2, %v1131_v38 }
 0x586   :  { %v5222_v54 = vpop.f32.mrf.mxu3 }
 0x588   :  { %3980 = vmatmul.msk.f32.gmra.mxu2 %vm300_vm2, %v847_v15 }
 0x58e   :  { %v633_v32 = vpop.f32.mrf.mxu3 }
 0x58f   :  { %v5262_v0 = vadd.f32 %v633_v32, %v5006_v59 }
 0x590   :  { %3981 = vmatmul.msk.f32.gmra.mxu2 %vm300_vm2, %v849_v9 }
 0x591   :  { %v657_v16 = vsel %vm374_vm4, %v5262_v0, -inf }
 0x596   :  { %v636_v5 = vpop.f32.mrf.mxu3 }
 0x597   :  { %v5227_v7 = vadd.f32 %v636_v5, %v5013_v12 }
 0x599   :  { %v660_v49 = vsel %vm374_vm4, %v5227_v7, -inf }
 0x59a   :  { %661 = vmax.xlane.f32.xlu2 %v660_v49 }
 0x59e   :  { %v639_v50 = vpop.f32.mrf.mxu3 }
 0x59f   :  { %v5286_v32 = vadd.f32 %v639_v50, %v5017_v18 }
 0x5a1   :  { %v663_v49 = vsel %vm374_vm4, %v5286_v32, -inf }
 0x5a6   :  { %v642_v21 = vpop.f32.mrf.mxu3 }
 0x5a7   :  { %v5274_v61 = vadd.f32 %v642_v21, %v5021_v24 }
 0x5a9   :  { %v666_v23 = vsel %vm374_vm4, %v5274_v61, -inf }
 0x5ae   :  { %v5249_v53 = vpop.f32.mrf.mxu3 }
 0x5b6   :  { %v648_v38 = vpop.f32.mrf.mxu3 }
 0x5be   :  { %v651_v36 = vpop.f32.mrf.mxu3 }
 0x5c6   :  { %v654_v63 = vpop.f32.mrf.mxu3 }
 0x5c7   :  { %v5281_v31 = vadd.f32 %v654_v63, %v5040_v17 }
 0x5c9   :  { %v5237_v13 = vpop.f32.mrf.mxu2  ;;  %v678_v35 = vsel %vm374_vm4, %v5281_v31, -inf }
 0x5ce   :  { %v1197_v39 = vpop.f32.mrf.mxu3 }
 0x5cf   :  { %v5289_v5 = vadd.f32 %v1197_v39, %v5006_v59 }
 0x5d6   :  { %v1200_v37 = vpop.f32.mrf.mxu3 }
 0x5d7   :  { %v5299_v21 = vadd.f32 %v1200_v37, %v5013_v12  ;;  %v5330_v37 = vpop.permute.xlu2 %4235 }
 0x5db   :  { %v915_v20 = vpop.f32.mrf.mxu2 }
 0x5dc   :  { %v5240_v19 = vadd.f32 %v915_v20, %v5006_v59 }
 0x5de   :  { %v939_v8 = vsel %vm374_vm4, %v5240_v19, -inf  ;;  %v1203_v20 = vpop.f32.mrf.mxu3 }
 0x5df   :  { %940 = vmax.xlane.f32.xlu1 %v939_v8  ;;  %v5296_v8 = vadd.f32 %v648_v38, %v5032_v48 }
 0x5e1   :  { %v672_v50 = vsel %vm374_vm4, %v5296_v8, -inf }
 0x5e3   :  { %v918_v22 = vpop.f32.mrf.mxu2 }
 0x5e4   :  { %v5245_v27 = vadd.f32 %v918_v22, %v5013_v12  ;;  %v1224_v22 = vsel %vm374_vm4, %v5299_v21, -inf }
 0x5e6   :  { %v942_v6 = vsel %vm374_vm4, %v5245_v27, -inf }
 0x5e7   :  { %943 = vmax.xlane.f32.xlu0 %v942_v6  ;;  %v1206_v6 = vpop.f32.mrf.mxu3 }
 0x5eb   :  { %v921_v26 = vpop.f32.mrf.mxu2 }
 0x5ec   :  { %v5252_v28 = vadd.f32 %v921_v26, %v5017_v18  ;;  %v5306_v26 = vadd.f32 %v1203_v20, %v5017_v18 }
 0x5ee   :  { %v945_v30 = vsel %vm374_vm4, %v5252_v28, -inf }
 0x5ef   :  { %946 = vmax.xlane.f32.xlu1 %v945_v30  ;;  %v1227_v30 = vsel %vm374_vm4, %v5306_v26, -inf  ;;  %v1209_v38 = vpop.f32.mrf.mxu3 }
 0x5f3   :  { %v924_v29 = vpop.f32.mrf.mxu2 }
 0x5f4   :  { %v5257_v9 = vadd.f32 %v924_v29, %v5021_v24  ;;  %v5311_v29 = vadd.f32 %v1206_v6, %v5021_v24 }
 0x5f6   :  { %v948_v56 = vsel %vm374_vm4, %v5257_v9, -inf }
 0x5f7   :  { %949 = vmax.xlane.f32.xlu1 %v948_v56 }
 0x5fb   :  { %v927_v34 = vpop.f32.mrf.mxu2  ;;  %4230 = vrot.lane.b32.xlu0 %v4910_v3, %s4691_s11 }
 0x5fc   :  { %v5314_v56 = vadd.f32 %v927_v34, %v5028_v33 }
 0x5fe   :  { %v951_v63 = vsel %vm374_vm4, %v5314_v56, -inf }
 0x5ff   :  { %658 = vmax.xlane.f32.xlu1 %v657_v16  ;;  %v1230_v16 = vsel %vm374_vm4, %v5311_v29, -inf }
 0x603   :  { %v930_v57 = vpop.f32.mrf.mxu2 }
 0x604   :  { %v5324_v39 = vadd.f32 %v930_v57, %v5032_v48 }
 0x606   :  { %v954_v34 = vsel %vm374_vm4, %v5324_v39, -inf }
 0x60b   :  { %v933_v25 = vpop.f32.mrf.mxu2 }
 0x60c   :  { %v5269_v52 = vadd.f32 %v933_v25, %v5036_v10  ;;  %v5321_v25 = vadd.f32 %v1209_v38, %v5028_v33  ;;  %v5348_v38 = vadd.f32 %v651_v36, %v5036_v10 }
 0x60e   :  { %v957_v15 = vsel %vm374_vm4, %v5269_v52, -inf }
 0x60f   :  { %958 = vmax.xlane.f32.xlu2 %v957_v15  ;;  %v1212_v15 = vpop.f32.mrf.mxu3 }
 0x617   :  { %667 = vmax.xlane.f32.xlu2 %v666_v23  ;;  %v1233_v23 = vsel %vm374_vm4, %v5321_v25, -inf }
 0x618   :  { %4225 = vrot.lane.b32.xlu1 %v4910_v3, %s4690_s10  ;;  %v1221_v3 = vsel %vm374_vm4, %v5289_v5, -inf }
 0x61f   :  { %679 = vmax.xlane.f32.xlu2 %v678_v35  ;;  %v5333_v35 = vadd.f32 %v1212_v15, %v5032_v48 }
 0x621   :  { %v1236_v57 = vsel %vm374_vm4, %v5333_v35, -inf }
 0x625   :  { %664 = vmax.xlane.f32.xlu0 %v663_v49  ;;  %v5337_v49 = vadd.f32 %v5249_v53, %v5028_v33 }
 0x627   :  { %1222 = vmax.xlane.f32.xlu2 %v1221_v3  ;;  %v1215_v3 = vpop.f32.mrf.mxu3  ;;  %v669_v20 = vsel %vm374_vm4, %v5337_v49, -inf }
 0x62d   :  { %673 = vmax.xlane.f32.xlu0 %v672_v50  ;;  %v5344_v50 = vadd.f32 %v1215_v3, %v5036_v10 }
 0x62f   :  { %1225 = vmax.xlane.f32.xlu2 %v1224_v22  ;;  %v662_v22 = vpop.xlane.xlu2 %661 }
 0x630   :  { %v682_v53 = vsub.f32 %v5227_v7, %v662_v22 }
 0x632   :  { %v691_v15 = vmul.f32 1.442695, %v682_v53 }
 0x637   :  { %1228 = vmax.xlane.f32.xlu2 %v1227_v30 }
 0x63f   :  { %1231 = vmax.xlane.f32.xlu2 %v1230_v16 }
 0x642   :  { %952 = vmax.xlane.f32.xlu1 %v951_v63  ;;  %v1239_v63 = vsel %vm374_vm4, %v5344_v50, -inf }
 0x647   :  { %1234 = vmax.xlane.f32.xlu2 %v1233_v23  ;;  %v675_v23 = vsel %vm374_vm4, %v5348_v38, -inf }
 0x64a   :  { %955 = vmax.xlane.f32.xlu1 %v954_v34  ;;  %v1218_v34 = vpop.f32.mrf.mxu3 }
 0x64f   :  { %1237 = vmax.xlane.f32.xlu2 %v1236_v57 }
 0x652   :  { %670 = vmax.xlane.f32.xlu1 %v669_v20  ;;  %v941_v6 = vpop.xlane.xlu1 %940 }
 0x653   :  { %v963_v30 = vsub.f32 %v5240_v19, %v941_v6  ;;  %v5358_v19 = vadd.f32 %v1218_v34, %v5040_v17 }
 0x655   :  { %v971_v16 = vmul.f32 1.442695, %v963_v30  ;;  %v1242_v36 = vsel %vm374_vm4, %v5358_v19, -inf  ;;  %v936_v30 = vpop.f32.mrf.mxu2 }
 0x656   :  { %v5373_v53 = vadd.f32 %v936_v30, %v5040_v17 }
 0x657   :  { %4401 = vpow2.f32 %v971_v16  ;;  %1240 = vmax.xlane.f32.xlu2 %v1239_v63 }
 0x658   :  { %4403 = vpow2.f32 %v691_v15 }
 0x65a   :  { %676 = vmax.xlane.f32.xlu1 %v675_v23  ;;  %v5368_v22 = vpop.xlane.xlu0 %943  ;;  %v960_v23 = vsel %vm374_vm4, %v5373_v53, -inf }
 0x65d   :  { %v5355_v57 = vpop.eup %4401 }
 0x65e   :  { %v987_v7 = vsel %vm374_vm4, %v5355_v57, 0.0  ;;  %v5366_v20 = vpop.eup %4403 }
 0x65f   :  { %988 = vadd.xlane.f32.xlu0 %v987_v7  ;;  %v708_v6 = vsel %vm374_vm4, %v5366_v20, 0.0 }
 0x662   :  { %1243 = vmax.xlane.f32.xlu1 %v1242_v36  ;;  %v5364_v3 = vpop.xlane.xlu1 %946 }
 0x667   :  { %709 = vadd.xlane.f32.xlu0 %v708_v6 }
 0x66a   :  { %v5375_v16 = vpop.xlane.xlu1 %949 }
 0x66d   :  { %v4231_v63 = vpop.permute.xlu0 %4230 }
 0x66e   :  { %v4232_v15 = vunpack.i.l.bf16 %v4231_v63  ;;  %v4233_v34 = vunpack.i.h.bf16 %v4231_v63 }
 0x66f   :  { %961 = vmax.xlane.f32.xlu0 %v960_v23 }
 0x670   :  { %1365 = vmatpush.msrb.mxu0 %v4232_v15  ;;  %4159 = vmatpush.msrb.mxu2 %v4232_v15 }
 0x672   :  { %1366 = vmatpush.msrb.mxu0 %v4233_v34  ;;  %4160 = vmatpush.msrb.mxu2 %v4233_v34  ;;  %v659_v7 = vpop.xlane.xlu1 %658 }
 0x673   :  { %v681_v36 = vsub.f32 %v5262_v0, %v659_v7  ;;  %v4237_v0 = vunpack.i.l.bf16 %v5330_v37  ;;  %v4238_v7 = vunpack.i.h.bf16 %v5330_v37 }
 0x675   :  { %v689_v6 = vmul.f32 1.442695, %v681_v36 }
 0x677   :  { %4405 = vpow2.f32 %v689_v6 }
 0x67d   :  { %v5380_v30 = vpop.eup %4405 }
 0x67e   :  { %v705_v51 = vsel %vm374_vm4, %v5380_v30, 0.0 }
 0x67f   :  { %706 = vadd.xlane.f32.xlu1 %v705_v51 }
 0x682   :  { %v5384_v17 = vpop.xlane.xlu2 %958 }
 0x683   :  { %4250 = vrot.lane.b32.xlu0 %v4896_v1, %s4691_s11 }
 0x68a   :  { %v668_v63 = vpop.xlane.xlu2 %667  ;;  %v4226_v15 = vpop.permute.xlu1 %4225 }
 0x68b   :  { %v4227_v23 = vunpack.i.l.bf16 %v4226_v15  ;;  %v4228_v34 = vunpack.i.h.bf16 %v4226_v15  ;;  %v684_v15 = vsub.f32 %v5274_v61, %v668_v63 }
 0x68d   :  { %1083 = vmatpush.msra.mxu1 %v4227_v23  ;;  %v695_v48 = vmul.f32 1.442695, %v684_v15 }
 0x68f   :  { %1084 = vmatpush.msra.mxu1 %v4228_v34 }
 0x691   :  { %1085 = vmatpush.msra.mxu1 %v4237_v0 }
 0x692   :  { %v5390_v36 = vpop.xlane.xlu2 %679 }
 0x693   :  { %1086 = vmatpush.msra.mxu1 %v4238_v7 }
 0x698   :  { %v665_v51 = vpop.xlane.xlu0 %664  ;;  %4245 = vrot.lane.b32.xlu1 %v4896_v1, %s4690_s10 }
 0x699   :  { %v683_v6 = vsub.f32 %v5286_v32, %v665_v51 }
 0x69a   :  { %v5395_v10 = vpop.xlane.xlu2 %1222 }
 0x69b   :  { %v693_v23 = vmul.f32 1.442695, %v683_v6 }
 0x69d   :  { %4407 = vpow2.f32 %v693_v23 }
 0x69e   :  { %4409 = vpow2.f32 %v695_v48 }
 0x6a0   :  { %4255 = vrot.lane.b32.xlu1 %v4920_v4, %s4690_s10  ;;  %v674_v33 = vpop.xlane.xlu0 %673 }
 0x6a2   :  { %v1226_v37 = vpop.xlane.xlu2 %1225 }
 0x6a3   :  { %v5400_v34 = vpop.eup %4407  ;;  %v1246_v51 = vsub.f32 %v5299_v21, %v1226_v37  ;;  %v686_v21 = vsub.f32 %v5296_v8, %v674_v33  ;;  %v964_v8 = vsub.f32 %v5245_v27, %v5368_v22  ;;  %v1245_v22 = vsub.f32 %v5289_v5, %v5395_v10 }
 0x6a4   :  { %v711_v0 = vsel %vm374_vm4, %v5400_v34, 0.0  ;;  %v5404_v1 = vpop.eup %4409 }
 0x6a5   :  { %712 = vadd.xlane.f32.xlu2 %v711_v0  ;;  %v714_v61 = vsel %vm374_vm4, %v5404_v1, 0.0  ;;  %v1255_v48 = vmul.f32 1.442695, %v1246_v51 }
 0x6a7   :  { %4411 = vpow2.f32 %v1255_v48 }
 0x6aa   :  { %v5406_v32 = vpop.xlane.xlu2 %1228 }
 0x6ad   :  { %715 = vadd.xlane.f32.xlu0 %v714_v61  ;;  %v5422_v18 = vpop.eup %4411 }
 0x6b2   :  { %v5410_v63 = vpop.xlane.xlu2 %1231 }
 0x6b5   :  { %v5412_v7 = vpop.xlane.xlu1 %952 }
 0x6ba   :  { %v5415_v6 = vpop.xlane.xlu2 %1234 }
 0x6bd   :  { %4240 = vrot.lane.b32.xlu2 %v4906_v2, %s4691_s11  ;;  %v956_v15 = vpop.xlane.xlu1 %955  ;;  %v1272_v2 = vsel %vm374_vm4, %v5422_v18, 0.0 }
 0x6be   :  { %v968_v23 = vsub.f32 %v5324_v39, %v956_v15  ;;  %v699_v39 = vmul.f32 1.442695, %v686_v21  ;;  %v973_v21 = vmul.f32 1.442695, %v964_v8 }
 0x6c0   :  { %v981_v61 = vmul.f32 1.442695, %v968_v23 }
 0x6c2   :  { %v5420_v0 = vpop.xlane.xlu2 %1237  ;;  %4413 = vpow2.f32 %v981_v61 }
 0x6c5   :  { %v671_v24 = vpop.xlane.xlu1 %670 }
 0x6c6   :  { %v685_v12 = vsub.f32 %v5337_v49, %v671_v24 }
 0x6c8   :  { %v697_v37 = vmul.f32 1.442695, %v685_v12  ;;  %v5429_v59 = vpop.eup %4413 }
 0x6c9   :  { %v1002_v12 = vsel %vm374_vm4, %v5429_v59, 0.0 }
 0x6ca   :  { %4415 = vpow2.f32 %v697_v37  ;;  %v1241_v51 = vpop.xlane.xlu2 %1240  ;;  %1273 = vadd.xlane.f32.xlu1 %v1272_v2 }
 0x6cb   :  { %v1251_v48 = vsub.f32 %v5344_v50, %v1241_v51  ;;  %4417 = vpow2.f32 %v699_v39  ;;  %v1253_v39 = vmul.f32 1.442695, %v1245_v22 }
 0x6cd   :  { %v1265_v15 = vmul.f32 1.442695, %v1251_v48  ;;  %v677_v23 = vpop.xlane.xlu1 %676  ;;  %v965_v48 = vsub.f32 %v5252_v28, %v5364_v3  ;;  %v966_v28 = vsub.f32 %v5257_v9, %v5375_v16 }
 0x6ce   :  { %v687_v24 = vsub.f32 %v5348_v38, %v677_v23  ;;  %v688_v38 = vsub.f32 %v5281_v31, %v5390_v36 }
 0x6cf   :  { %4419 = vpow2.f32 %v1265_v15  ;;  %v975_v10 = vmul.f32 1.442695, %v965_v48  ;;  %v977_v8 = vmul.f32 1.442695, %v966_v28  ;;  %v1250_v28 = vsub.f32 %v5333_v35, %v5420_v0 }
 0x6d0   :  { %v5431_v47 = vpop.eup %4415  ;;  %v701_v49 = vmul.f32 1.442695, %v687_v24  ;;  %v703_v27 = vmul.f32 1.442695, %v688_v38  ;;  %v967_v38 = vsub.f32 %v5314_v56, %v5412_v7 }
 0x6d1   :  { %v717_v33 = vsel %vm374_vm4, %v5431_v47, 0.0  ;;  %v5440_v50 = vpop.eup %4417 }
 0x6d2   :  { %1003 = vadd.xlane.f32.xlu1 %v1002_v12  ;;  %718 = vadd.xlane.f32.xlu0 %v717_v33  ;;  %4421 = vpow2.f32 %v701_v49  ;;  %v720_v2 = vsel %vm374_vm4, %v5440_v50, 0.0  ;;  %v989_v3 = vpop.xlane.xlu0 %988  ;;  %v979_v9 = vmul.f32 1.442695, %v967_v38 }
 0x6d3   :  { %4423 = vpow2.f32 %v973_v21 }
 0x6d4   :  { %4425 = vpow2.f32 %v703_v27 }
 0x6d5   :  { %v5442_v61 = vpop.eup %4419  ;;  %4427 = vpow2.f32 %v1253_v39  ;;  %v5468_v12 = vpop.xlane.xlu1 %1243  ;;  %v1248_v39 = vsub.f32 %v5311_v29, %v5410_v63  ;;  %v1249_v29 = vsub.f32 %v5321_v25, %v5415_v6  ;;  %v1263_v6 = vmul.f32 1.442695, %v1250_v28 }
 0x6d6   :  { %v1287_v37 = vsel %vm374_vm4, %v5442_v61, 0.0  ;;  %4429 = vpow2.f32 %v975_v10 }
 0x6d7   :  { %v1261_v63 = vmul.f32 1.442695, %v1249_v29 }
 0x6d8   :  { %v5452_v51 = vpop.eup %4421 }
 0x6d9   :  { %v723_v31 = vsel %vm374_vm4, %v5452_v51, 0.0  ;;  %v5456_v36 = vpop.eup %4423 }
 0x6da   :  { %1288 = vadd.xlane.f32.xlu1 %v1287_v37  ;;  %721 = vadd.xlane.f32.xlu0 %v720_v2  ;;  %v990_v15 = vsel %vm374_vm4, %v5456_v36, 0.0  ;;  %v5462_v23 = vpop.eup %4425  ;;  %v710_v2 = vpop.xlane.xlu0 %709 }
 0x6db   :  { %v726_v5 = vsel %vm374_vm4, %v5462_v23, 0.0  ;;  %v5466_v24 = vpop.eup %4427 }
 0x6dc   :  { %v1269_v33 = vsel %vm374_vm4, %v5466_v24, 0.0  ;;  %v5474_v49 = vpop.eup %4429 }
 0x6dd   :  { %v993_v37 = vsel %vm374_vm4, %v5474_v49, 0.0 }
 0x6e2   :  { %724 = vadd.xlane.f32.xlu0 %v723_v31  ;;  %v1259_v31 = vmul.f32 1.442695, %v1248_v39 }
 0x6e6   :  { %991 = vadd.xlane.f32.xlu2 %v990_v15 }
 0x6ea   :  { %727 = vadd.xlane.f32.xlu0 %v726_v5 }
 0x6ee   :  { %1270 = vadd.xlane.f32.xlu2 %v1269_v33  ;;  %v962_v33 = vpop.xlane.xlu0 %961 }
 0x6f2   :  { %v707_v21 = vpop.xlane.xlu1 %706 }
 0x6f3   :  { %4431 = vrcp.f32 %v707_v21 }
 0x6f4   :  { %4433 = vpow2.f32 %v977_v8 }
 0x6f5   :  { %4435 = vrcp.f32 %v710_v2  ;;  %v1252_v2 = vsub.f32 %v5358_v19, %v5468_v12 }
 0x6f6   :  { %994 = vadd.xlane.f32.xlu2 %v993_v37  ;;  %4437 = vpow2.f32 %v979_v9 }
 0x6f7   :  { %4439 = vpow2.f32 %v1259_v31 }
 0x6f8   :  { %4441 = vpow2.f32 %v1261_v63 }
 0x6f9   :  { %v4432_v16 = vpop.eup %4431  ;;  %4443 = vrcp.f32 %v989_v3  ;;  %v1247_v3 = vsub.f32 %v5306_v26, %v5406_v32  ;;  %v969_v26 = vsub.f32 %v5269_v52, %v5384_v17 }
 0x6fa   :  { %v5480_v27 = vpop.eup %4433  ;;  %v737_v22 = vmul.f32 %v4432_v16, %v5380_v30  ;;  %4445 = vpow2.f32 %v1263_v6  ;;  %v1267_v16 = vmul.f32 1.442695, %v1252_v2 }
 0x6fb   :  { %v996_v56 = vsel %vm374_vm4, %v5480_v27, 0.0  ;;  %v4436_v7 = vpop.eup %4435  ;;  %v1257_v19 = vmul.f32 1.442695, %v1247_v3 }
 0x6fc   :  { %3958 = vmatmul.msk.f32.vlgmr.msra.gmra.mxu0 %vm374_vm4, %v737_v22  ;;  %v5490_v48 = vpop.eup %4437  ;;  %v738_v15 = vmul.f32 %v4436_v7, %v5366_v20  ;;  %v4251_v22 = vpop.permute.xlu0 %4250 }
 0x6fd   :  { %v999_v30 = vsel %vm374_vm4, %v5490_v48, 0.0  ;;  %v5498_v10 = vpop.eup %4439  ;;  %v4252_v17 = vunpack.i.l.bf16 %v4251_v22  ;;  %v4253_v28 = vunpack.i.h.bf16 %v4251_v22 }
 0x6fe   :  { %997 = vadd.xlane.f32.xlu2 %v996_v56  ;;  %4260 = vrot.lane.b32.xlu0 %v4920_v4, %s4691_s11  ;;  %v1278_v25 = vsel %vm374_vm4, %v5498_v10, 0.0  ;;  %v5504_v8 = vpop.eup %4441 }
 0x6ff   :  { %v4444_v38 = vpop.eup %4443  ;;  %v1281_v0 = vsel %vm374_vm4, %v5504_v8, 0.0 }
 0x700   :  { %v1019_v9 = vmul.f32 %v4444_v38, %v5355_v57  ;;  %v5514_v56 = vpop.eup %4445 }
 0x701   :  { %v1284_v12 = vsel %vm374_vm4, %v5514_v56, 0.0 }
 0x704   :  { %3959 = vmatmul.msk.f32.gmra.mxu0 %vm374_vm4, %v738_v15 }
 0x706   :  { %1000 = vadd.xlane.f32.xlu2 %v999_v30  ;;  %v983_v30 = vmul.f32 1.442695, %v969_v26 }
 0x70a   :  { %v4246_v4 = vpop.permute.xlu1 %4245 }
 0x70b   :  { %v4247_v5 = vunpack.i.l.bf16 %v4246_v4  ;;  %v4248_v20 = vunpack.i.h.bf16 %v4246_v4 }
 0x70d   :  { %1087 = vmatpush.msra.mxu1 %v4247_v5 }
 0x70e   :  { %1279 = vadd.xlane.f32.xlu2 %v1278_v25 }
 0x70f   :  { %1088 = vmatpush.msra.mxu1 %v4248_v20 }
 0x712   :  { %v4256_v21 = vpop.permute.xlu1 %4255 }
 0x713   :  { %v4257_v37 = vunpack.i.l.bf16 %v4256_v21  ;;  %v4258_v35 = vunpack.i.h.bf16 %v4256_v21 }
 0x715   :  { %1089 = vmatpush.msra.mxu1 %v4257_v37 }
 0x716   :  { %1282 = vadd.xlane.f32.xlu2 %v1281_v0 }
 0x717   :  { %1090 = vmatpush.msra.mxu1 %v4258_v35 }
 0x718   :  { %v713_v39 = vpop.xlane.xlu2 %712  ;;  %3982 = vmatmul.msk.f32.vlgmr.msra.gmra.mxu1 %vm374_vm4, %v1019_v9 }
 0x719   :  { %4447 = vrcp.f32 %v713_v39 }
 0x71a   :  { %4449 = vpow2.f32 %v1267_v16 }
 0x71b   :  { %4451 = vpow2.f32 %v1257_v19 }
 0x71e   :  { %1285 = vadd.xlane.f32.xlu2 %v1284_v12 }
 0x71f   :  { %v4448_v57 = vpop.eup %4447 }
 0x720   :  { %v4241_v32 = vpop.permute.xlu2 %4240  ;;  %v716_v7 = vpop.xlane.xlu0 %715  ;;  %v739_v31 = vmul.f32 %v4448_v57, %v5400_v34  ;;  %v970_v34 = vsub.f32 %v5373_v53, %v962_v33 }
 0x721   :  { %v4242_v15 = vunpack.i.l.bf16 %v4241_v32  ;;  %4453 = vrcp.f32 %v716_v7  ;;  %v5521_v29 = vpop.eup %4449  ;;  %v4243_v63 = vunpack.i.h.bf16 %v4241_v32 }
 0x722   :  { %3960 = vmatmul.msk.f32.gmra.mxu0 %vm374_vm4, %v739_v31  ;;  %v5524_v4 = vpop.eup %4451  ;;  %v1290_v52 = vsel %vm374_vm4, %v5521_v29, 0.0  ;;  %4455 = vpow2.f32 %v983_v30  ;;  %v985_v6 = vmul.f32 1.442695, %v970_v34 }
 0x723   :  { %1367 = vmatpush.msrb.mxu0 %v4242_v15  ;;  %4161 = vmatpush.msrb.mxu2 %v4242_v15  ;;  %v1275_v20 = vsel %vm374_vm4, %v5524_v4, 0.0 }
 0x724   :  { %4457 = vpow2.f32 %v985_v6 }
 0x725   :  { %1368 = vmatpush.msrb.mxu0 %v4243_v63  ;;  %4162 = vmatpush.msrb.mxu2 %v4243_v63 }
 0x726   :  { %1291 = vadd.xlane.f32.xlu2 %v1290_v52 }
 0x727   :  { %v4454_v5 = vpop.eup %4453  ;;  %1369 = vmatpush.msrb.mxu0 %v4252_v17  ;;  %4163 = vmatpush.msrb.mxu2 %v4252_v17 }
 0x728   :  { %1276 = vadd.xlane.f32.xlu0 %v1275_v20  ;;  %v740_v25 = vmul.f32 %v4454_v5, %v5404_v1  ;;  %v5533_v21 = vpop.eup %4455 }
 0x729   :  { %1370 = vmatpush.msrb.mxu0 %v4253_v28  ;;  %4164 = vmatpush.msrb.mxu2 %v4253_v28  ;;  %v1005_v53 = vsel %vm374_vm4, %v5533_v21, 0.0 }
 0x72a   :  { %3961 = vmatmul.msk.f32.gmra.mxu0 %vm374_vm4, %v740_v25  ;;  %v5537_v33 = vpop.eup %4457 }
 0x72b   :  { %v1008_v38 = vsel %vm374_vm4, %v5537_v33, 0.0 }
 0x730   :  { %1006 = vadd.xlane.f32.xlu0 %v1005_v53 }
 0x738   :  { %1009 = vadd.xlane.f32.xlu0 %v1008_v38 }
 0x73d   :  { %v1274_v31 = vpop.xlane.xlu1 %1273 }
 0x745   :  { %v719_v37 = vpop.xlane.xlu0 %718 }
 0x746   :  { %4459 = vrcp.f32 %v719_v37 }
 0x74c   :  { %v4460_v1 = vpop.eup %4459 }
 0x74d   :  { %v722_v2 = vpop.xlane.xlu0 %721  ;;  %v741_v35 = vmul.f32 %v4460_v1, %v5431_v47 }
 0x74e   :  { %4461 = vrcp.f32 %v722_v2 }
 0x74f   :  { %3962 = vmatmul.msk.f32.gmra.mxu0 %vm374_vm4, %v741_v35 }
 0x754   :  { %v4462_v0 = vpop.eup %4461 }
 0x755   :  { %v725_v3 = vpop.xlane.xlu0 %724  ;;  %v742_v9 = vmul.f32 %v4462_v0, %v5440_v50 }
 0x756   :  { %4463 = vrcp.f32 %v725_v3 }
 0x757   :  { %3963 = vmatmul.msk.f32.gmra.mxu0 %vm374_vm4, %v742_v9 }
 0x759   :  { %v992_v16 = vpop.xlane.xlu2 %991 }
 0x75a   :  { %4465 = vrcp.f32 %v992_v16 }
 0x75c   :  { %v4464_v22 = vpop.eup %4463 }
 0x75d   :  { %v728_v39 = vpop.xlane.xlu0 %727  ;;  %v743_v19 = vmul.f32 %v4464_v22, %v5452_v51 }
 0x75e   :  { %4467 = vrcp.f32 %v728_v39 }
 0x75f   :  { %3964 = vmatmul.msk.f32.gmra.mxu0 %vm374_vm4, %v743_v19 }
 0x760   :  { %v4466_v47 = vpop.eup %4465 }
 0x761   :  { %v1271_v12 = vpop.xlane.xlu2 %1270  ;;  %v1020_v26 = vmul.f32 %v4466_v47, %v5456_v36 }
 0x763   :  { %3983 = vmatmul.msk.f32.gmra.mxu1 %vm374_vm4, %v1020_v26 }
 0x764   :  { %v4468_v57 = vpop.eup %4467 }
 0x765   :  { %v744_v50 = vmul.f32 %v4468_v57, %v5462_v23 }
 0x767   :  { %3965 = vmatmul.msk.f32.gmra.mxu0 %vm374_vm4, %v744_v50 }
 0x769   :  { %v995_v32 = vpop.xlane.xlu2 %994 }
 0x76a   :  { %4469 = vrcp.f32 %v995_v32 }
 0x76b   :  { %4471 = vrcp.f32 %v1271_v12 }
 0x770   :  { %v4470_v7 = vpop.eup %4469  ;;  %v4261_v51 = vpop.permute.xlu0 %4260 }
 0x771   :  { %v4472_v15 = vpop.eup %4471  ;;  %v4262_v30 = vunpack.i.l.bf16 %v4261_v51  ;;  %v998_v63 = vpop.xlane.xlu2 %997  ;;  %v1021_v17 = vmul.f32 %v4470_v7, %v5474_v49  ;;  %v4263_v36 = vunpack.i.h.bf16 %v4261_v51 }
 0x772   :  { %4473 = vrcp.f32 %v998_v63  ;;  %v1301_v23 = vmul.f32 %v4472_v15, %v5466_v24  ;;  %v1004_v24 = vpop.xlane.xlu1 %1003 }
 0x773   :  { %4475 = vrcp.f32 %v1274_v31  ;;  %3984 = vmatmul.msk.f32.gmra.mxu1 %vm374_vm4, %v1021_v17  ;;  %1371 = vmatpush.msrb.mxu0 %v4262_v30 }
 0x774   :  { %4165 = vmatpush.msrb.mxu2 %v4262_v30 }
 0x775   :  { %1372 = vmatpush.msrb.mxu0 %v4263_v36 }
 0x776   :  { %4166 = vmatpush.msrb.mxu2 %v4263_v36  ;;  %4006 = vmatmul.msk.f32.vlgmr.msrb.gmra.mxu0 %vm374_vm4, %v1301_v23 }
 0x778   :  { %v4474_v52 = vpop.eup %4473 }
 0x779   :  { %v4476_v34 = vpop.eup %4475  ;;  %v1001_v5 = vpop.xlane.xlu2 %1000  ;;  %v1022_v20 = vmul.f32 %v4474_v52, %v5480_v27 }
 0x77a   :  { %v810_v28 = vpop.f32.mrf.mxu0  ;;  %4477 = vrcp.f32 %v1001_v5  ;;  %v1302_v49 = vmul.f32 %v4476_v34, %v5422_v18 }
 0x77b   :  { %1406 = vrot.lane.b32.xlu1 %v810_v28, %s4692_s12  ;;  %3985 = vmatmul.msk.f32.gmra.mxu1 %vm374_vm4, %v1022_v20  ;;  %4479 = vrcp.f32 %v1004_v24  ;;  %v217_v20 = vld [vmem:[%s7033_s2 + $0xe0] sm:$0xff] }
 0x77c   :  { %1556 = vmatpush.msra.mxu2 %v217_v20  ;;  %v215_v24 = vld [vmem:[%s7033_s2 + $0x60] sm:$0xff] }
 0x77e   :  { %4007 = vmatmul.msk.f32.gmra.mxu0 %vm374_vm4, %v1302_v49  ;;  %v216_v49 = vld [vmem:[%s7033_s2 + $0xa0] sm:$0xff] }
 0x77f   :  { %1557 = vmatpush.msra.mxu2 %v216_v49 }
 0x780   :  { %v4478_v25 = vpop.eup %4477 }
 0x781   :  { %v1280_v6 = vpop.xlane.xlu2 %1279  ;;  %v1023_v53 = vmul.f32 %v4478_v25, %v5490_v48  ;;  %v4480_v38 = vpop.eup %4479  ;;  %1558 = vmatpush.msra.mxu2 %v215_v24 }
 0x782   :  { %v1024_v37 = vmul.f32 %v4480_v38, %v5429_v59  ;;  %v813_v35 = vpop.f32.mrf.mxu0 }
 0x783   :  { %3986 = vmatmul.msk.f32.gmra.mxu1 %vm374_vm4, %v1023_v53 }
 0x789   :  { %v1283_v27 = vpop.xlane.xlu2 %1282 }
 0x78b   :  { %3987 = vmatmul.msk.f32.gmra.mxu1 %vm374_vm4, %v1024_v37 }
 0x791   :  { %v1286_v1 = vpop.xlane.xlu2 %1285 }
 0x795   :  { %v1092_v2 = vpop.f32.mrf.mxu1 }
 0x796   :  { %1438 = vrot.lane.b32.xlu2 %v1092_v2, %s4693_s13 }
 0x799   :  { %v1292_v18 = vpop.xlane.xlu2 %1291 }
 0x79a   :  { %4481 = vrcp.f32 %v1292_v18 }
 0x79b   :  { %v1277_v0 = vpop.xlane.xlu0 %1276 }
 0x79c   :  { %4483 = vrcp.f32 %v1277_v0 }
 0x79d   :  { %4485 = vrcp.f32 %v1280_v6 }
 0x79e   :  { %1408 = vrot.lane.b32.xlu2 %v813_v35, %s4692_s12 }
 0x79f   :  { %v816_v59 = vpop.f32.mrf.mxu0 }
 0x7a0   :  { %v4482_v48 = vpop.eup %4481 }
 0x7a1   :  { %v1308_v3 = vmul.f32 %v4482_v48, %v5521_v29 }
 0x7a2   :  { %v4484_v9 = vpop.eup %4483 }
 0x7a3   :  { %v1007_v16 = vpop.xlane.xlu0 %1006  ;;  %4013 = vmatmul.msk.f32.vlgmr.msrb.gmra.mxu2 %vm374_vm4, %v1308_v3  ;;  %v1303_v22 = vmul.f32 %v4484_v9, %v5524_v4  ;;  %v4486_v39 = vpop.eup %4485 }
 0x7a4   :  { %4487 = vrcp.f32 %v1007_v16  ;;  %v1304_v29 = vmul.f32 %v4486_v39, %v5498_v10  ;;  %v1289_v10 = vpop.xlane.xlu1 %1288 }
 0x7a5   :  { %4008 = vmatmul.msk.f32.gmra.mxu0 %vm374_vm4, %v1303_v22  ;;  %4489 = vrcp.f32 %v1283_v27  ;;  %v214_v27 = vld [vmem:[%s7033_s2 + $0x20] sm:$0xff] }
 0x7a6   :  { %1410 = vrot.lane.b32.xlu2 %v816_v59, %s4692_s12  ;;  %1559 = vmatpush.msra.mxu2 %v214_v27 }
 0x7a7   :  { %v819_v26 = vpop.f32.mrf.mxu0 }
 0x7aa   :  { %v4488_v19 = vpop.eup %4487 }
 0x7ab   :  { %v1010_v47 = vpop.xlane.xlu0 %1009  ;;  %v1025_v12 = vmul.f32 %v4488_v19, %v5533_v21  ;;  %v4490_v4 = vpop.eup %4489 }
 0x7ac   :  { %4491 = vrcp.f32 %v1010_v47  ;;  %v1305_v32 = vmul.f32 %v4490_v4, %v5504_v8 }
 0x7ad   :  { %3988 = vmatmul.msk.f32.gmra.mxu1 %vm374_vm4, %v1025_v12  ;;  %4009 = vmatmul.msk.f32.gmra.mxu0 %vm374_vm4, %v1304_v29  ;;  %4493 = vrcp.f32 %v1286_v1 }
 0x7ae   :  { %1412 = vrot.lane.b32.xlu2 %v819_v26, %s4692_s12  ;;  %4495 = vrcp.f32 %v1289_v10 }
 0x7b2   :  { %v4492_v57 = vpop.eup %4491 }
 0x7b3   :  { %v1026_v50 = vmul.f32 %v4492_v57, %v5537_v33  ;;  %v4494_v21 = vpop.eup %4493 }
 0x7b4   :  { %v1306_v7 = vmul.f32 %v4494_v21, %v5514_v56  ;;  %v4496_v31 = vpop.eup %4495 }
 0x7b5   :  { %3989 = vmatmul.msk.f32.gmra.mxu1 %vm374_vm4, %v1026_v50  ;;  %4010 = vmatmul.msk.f32.gmra.mxu0 %vm374_vm4, %v1305_v32  ;;  %v1307_v51 = vmul.f32 %v4496_v31, %v5442_v61 }
 0x7bd   :  { %4011 = vmatmul.msk.f32.gmra.mxu0 %vm374_vm4, %v1306_v7 }
 0x7c5   :  { %4012 = vmatmul.msk.f32.gmra.mxu0 %vm374_vm4, %v1307_v51 }
 0x7cc   :  { %v822_v15 = vpop.f32.mrf.mxu0 }
 0x7cd   :  { %1414 = vrot.lane.b32.xlu2 %v822_v15, %s4692_s12 }
 0x7d4   :  { %v825_v8 = vpop.f32.mrf.mxu0 }
 0x7d5   :  { %1416 = vrot.lane.b32.xlu2 %v825_v8, %s4692_s12 }
 0x7dc   :  { %v828_v33 = vpop.f32.mrf.mxu0 }
 0x7dd   :  { %1418 = vrot.lane.b32.xlu2 %v828_v33, %s4692_s12 }
 0x7e0   :  { %v1095_v63 = vpop.f32.mrf.mxu1 }
 0x7e4   :  { %v831_v30 = vpop.f32.mrf.mxu0 }
 0x7e5   :  { %1420 = vrot.lane.b32.xlu2 %v831_v30, %s4692_s12 }
 0x7ed   :  { %v1407_v2 = vpop.permute.xlu1 %1406 }
 0x7ee   :  { %v1494_v18 = vsel %vm300_vm2, %v5231_v58, %v1407_v2 }
 0x7f0   :  { %v1098_v17 = vpop.f32.mrf.mxu1  ;;  %v1439_v1 = vpop.permute.xlu2 %1438 }
 0x7f1   :  { %v1502_v35 = vsel %vm28_vm0, %v1494_v18, %v1439_v1 }
 0x7f3   :  { %v1374_v56 = vpop.f32.mrf.mxu0 }
 0x7f4   :  { %1470 = vrot.lane.b32.xlu0 %v1374_v56, %s4694_s14 }
 0x7f8   :  { %v1101_v36 = vpop.f32.mrf.mxu1  ;;  %v1409_v3 = vpop.permute.xlu2 %1408 }
 0x7f9   :  { %v1495_v9 = vsel %vm300_vm2, %v5233_v14, %v1409_v3 }
 0x7fb   :  { %v1377_v61 = vpop.f32.mrf.mxu0 }
 0x7fc   :  { %1472 = vrot.lane.b32.xlu1 %v1377_v61, %s4694_s14  ;;  %1440 = vrot.lane.b32.xlu0 %v1095_v63, %s4693_s13 }
 0x800   :  { %v1104_v23 = vpop.f32.mrf.mxu1  ;;  %v1411_v58 = vpop.permute.xlu2 %1410 }
 0x801   :  { %v1496_v12 = vsel %vm300_vm2, %v5235_v11, %v1411_v58 }
 0x804   :  { %1442 = vrot.lane.b32.xlu0 %v1098_v17, %s4693_s13 }
 0x808   :  { %v1107_v52 = vpop.f32.mrf.mxu1  ;;  %v1413_v47 = vpop.permute.xlu2 %1412 }
 0x809   :  { %v1497_v50 = vsel %vm300_vm2, %v5237_v13, %v1413_v47 }
 0x80c   :  { %1444 = vrot.lane.b32.xlu0 %v1101_v36, %s4693_s13 }
 0x814   :  { %1446 = vrot.lane.b32.xlu0 %v1104_v23, %s4693_s13 }
 0x81c   :  { %1448 = vrot.lane.b32.xlu0 %v1107_v52, %s4693_s13 }
 0x822   :  { %v1380_v34 = vpop.f32.mrf.mxu0 }
 0x823   :  { %1474 = vrot.lane.b32.xlu1 %v1380_v34, %s4694_s14 }
 0x826   :  { %v1395_v37 = vpop.f32.mrf.mxu2 }
 0x827   :  { %v1415_v57 = vpop.permute.xlu2 %1414 }
 0x828   :  { %v1498_v11 = vsel %vm300_vm2, %v5210_v62, %v1415_v57 }
 0x82a   :  { %v1110_v5 = vpop.f32.mrf.mxu1  ;;  %v1383_v28 = vpop.f32.mrf.mxu0 }
 0x82b   :  { %1476 = vrot.lane.b32.xlu1 %v1383_v28, %s4694_s14  ;;  %1450 = vrot.lane.b32.xlu0 %v1110_v5, %s4693_s13 }
 0x82f   :  { %v1417_v31 = vpop.permute.xlu2 %1416 }
 0x830   :  { %v1499_v33 = vsel %vm300_vm2, %v5214_v60, %v1417_v31 }
 0x832   :  { %v1113_v25 = vpop.f32.mrf.mxu1  ;;  %v1386_v6 = vpop.f32.mrf.mxu0 }
 0x833   :  { %1478 = vrot.lane.b32.xlu1 %v1386_v6, %s4694_s14  ;;  %1452 = vrot.lane.b32.xlu0 %v1113_v25, %s4693_s13 }
 0x837   :  { %v1419_v61 = vpop.permute.xlu2 %1418 }
 0x838   :  { %v1500_v17 = vsel %vm300_vm2, %v5218_v55, %v1419_v61  ;;  %v4360_v55 = vld [vmem:[%s7031_s1 + $0x56] ss:$0 sm:$0xff] }
 0x83a   :  { %v1389_v53 = vpop.f32.mrf.mxu0 }
 0x83b   :  { %1480 = vrot.lane.b32.xlu1 %v1389_v53, %s4694_s14 }
 0x83f   :  { %v1421_v60 = vpop.permute.xlu2 %1420 }
 0x840   :  { %v1501_v5 = vsel %vm300_vm2, %v5222_v54, %v1421_v60 }
 0x842   :  { %v1392_v38 = vpop.f32.mrf.mxu0 }
 0x843   :  { %1482 = vrot.lane.b32.xlu1 %v1392_v38, %s4694_s14 }
 0x84b   :  { %1484 = vrot.lane.b32.xlu1 %v1395_v37, %s4694_s14 }
 0x866   :  { %v1471_v0 = vpop.permute.xlu0 %1470 }
 0x867   :  { %v1511_v48 = vsel %vm1510_vm12, %v1502_v35, %v1471_v0 }
 0x868   :  { %4014 = vmatmul.msk.f32.vlgmr.msra.gmra.mxu2 %vm65_vm1, %v1511_v48 }
 0x86e   :  { %v1473_v59 = vpop.permute.xlu1 %1472  ;;  %v1441_v16 = vpop.permute.xlu0 %1440 }
 0x86f   :  { %v1503_v22 = vsel %vm28_vm0, %v1495_v9, %v1441_v16 }
 0x870   :  { %v1512_v39 = vsel %vm1510_vm12, %v1503_v22, %v1473_v59 }
 0x871   :  { %4015 = vmatmul.msk.f32.gmra.mxu2 %vm65_vm1, %v1512_v39 }
 0x876   :  { %v1443_v19 = vpop.permute.xlu0 %1442 }
 0x877   :  { %v1504_v26 = vsel %vm28_vm0, %v1496_v12, %v1443_v19 }
 0x87e   :  { %v1445_v29 = vpop.permute.xlu0 %1444 }
 0x87f   :  { %v1505_v32 = vsel %vm28_vm0, %v1497_v50, %v1445_v29  ;;  %v4695_v29 = vmov 32.0  }
 0x880   :  { %4497 = vrcp.f32 %v4695_v29 }
 0x886   :  { %v1447_v21 = vpop.permute.xlu0 %1446 }
 0x887   :  { %v1506_v51 = vsel %vm28_vm0, %v1498_v11, %v1447_v21 }
 0x88e   :  { %v1449_v13 = vpop.permute.xlu0 %1448 }
 0x88f   :  { %v1507_v30 = vsel %vm28_vm0, %v1499_v33, %v1449_v13 }
 0x895   :  { %v1475_v4 = vpop.permute.xlu1 %1474 }
 0x896   :  { %v1513_v14 = vsel %vm1510_vm12, %v1504_v26, %v1475_v4 }
 0x897   :  { %4016 = vmatmul.msk.f32.gmra.mxu2 %vm65_vm1, %v1513_v14 }
 0x89d   :  { %v1477_v10 = vpop.permute.xlu1 %1476  ;;  %v1451_v62 = vpop.permute.xlu0 %1450 }
 0x89e   :  { %v1514_v7 = vsel %vm1510_vm12, %v1505_v32, %v1477_v10  ;;  %v1508_v36 = vsel %vm28_vm0, %v1500_v17, %v1451_v62 }
 0x89f   :  { %4017 = vmatmul.msk.f32.gmra.mxu2 %vm65_vm1, %v1514_v7 }
 0x8a5   :  { %v1479_v15 = vpop.permute.xlu1 %1478  ;;  %v1453_v34 = vpop.permute.xlu0 %1452 }
 0x8a6   :  { %v1515_v8 = vsel %vm1510_vm12, %v1506_v51, %v1479_v15  ;;  %v1509_v28 = vsel %vm28_vm0, %v1501_v5, %v1453_v34  ;;  %v7066_v15 = vld [vmem:[#allocation2_spill] sm:$0xff] }
 0x8a7   :  { %4018 = vmatmul.msk.f32.gmra.mxu2 %vm65_vm1, %v1515_v8 }
 0x8ad   :  { %v1481_v56 = vpop.permute.xlu1 %1480 }
 0x8ae   :  { %v1516_v63 = vsel %vm1510_vm12, %v1507_v30, %v1481_v56 }
 0x8af   :  { %4019 = vmatmul.msk.f32.gmra.mxu2 %vm65_vm1, %v1516_v63 }
 0x8b5   :  { %v1483_v23 = vpop.permute.xlu1 %1482 }
 0x8b6   :  { %v1517_v52 = vsel %vm1510_vm12, %v1508_v36, %v1483_v23 }
 0x8b7   :  { %4020 = vmatmul.msk.f32.gmra.mxu2 %vm65_vm1, %v1517_v52 }
 0x8bd   :  { %v1485_v20 = vpop.permute.xlu1 %1484 }
 0x8be   :  { %v1518_v49 = vsel %vm1510_vm12, %v1509_v28, %v1485_v20 }
 0x8bf   :  { %4021 = vmatmul.msk.f32.gmra.mxu2 %vm65_vm1, %v1518_v49 }
 0x8eb   :  { %v1561_v24 = vpop.f32.mrf.mxu2 }
 0x8ec   :  { %v1562_v25 = vadd.f32 %v4360_v55, %v1561_v24 }
 0x8ee   :  { %v1585_v6 = vadd.f32 %v1562_v25, %v4813_v40 }
 0x8f0   :  { %v1595_v53 = vsel %vm65_vm1, %v1585_v6, 0.0 }
 0x8f1   :  { %1596 = vadd.xlane.f32.xlu2 %v1595_v53 }
 0x8f4   :  { %v1564_v38 = vpop.f32.mrf.mxu2 }
 0x8f5   :  { %v1565_v54 = vadd.f32 %v4360_v55, %v1564_v38 }
 0x8f7   :  { %v1586_v27 = vadd.f32 %v1565_v54, %v4831_v42 }
 0x8f9   :  { %v1598_v37 = vsel %vm65_vm1, %v1586_v27, 0.0 }
 0x8fa   :  { %1599 = vadd.xlane.f32.xlu0 %v1598_v37 }
 0x91a   :  { %v1567_v1 = vpop.f32.mrf.mxu2 }
 0x91b   :  { %v1568_v2 = vadd.f32 %v4360_v55, %v1567_v1 }
 0x91d   :  { %v1587_v18 = vadd.f32 %v1568_v2, %v4835_v43 }
 0x91f   :  { %v1601_v35 = vsel %vm65_vm1, %v1587_v18, 0.0 }
 0x920   :  { %1602 = vadd.xlane.f32.xlu1 %v1601_v35  ;;  %v1799_v35 = vld [vmem:[%s7033_s2 + $0xe8] sm:$0xff] }
 0x921   :  { %1842 = vmatpush.msrb.mxu1 %v1799_v35 }
 0x922   :  { %v1570_v0 = vpop.f32.mrf.mxu2 }
 0x923   :  { %v1571_v48 = vadd.f32 %v4360_v55, %v1570_v0  ;;  %v1798_v0 = vld [vmem:[%s7033_s2 + $0xa8] sm:$0xff] }
 0x924   :  { %1843 = vmatpush.msrb.mxu1 %v1798_v0 }
 0x925   :  { %v1588_v40 = vadd.f32 %v1571_v48, %v4839_v44  ;;  %v1797_v48 = vld [vmem:[%s7033_s2 + $0x68] sm:$0xff] }
 0x926   :  { %1844 = vmatpush.msrb.mxu1 %v1797_v48 }
 0x927   :  { %v1604_v3 = vsel %vm65_vm1, %v1588_v40, 0.0 }
 0x928   :  { %1605 = vadd.xlane.f32.xlu2 %v1604_v3 }
 0x92a   :  { %v1573_v9 = vpop.f32.mrf.mxu2 }
 0x92b   :  { %v1574_v59 = vadd.f32 %v4360_v55, %v1573_v9 }
 0x92d   :  { %v1589_v42 = vadd.f32 %v1574_v59, %v4815_v41  ;;  %v4498_v41 = vpop.eup %4497 }
 0x92e   :  { %v1620_v26 = vmul.f32 32.0, %v4498_v41  ;;  %vm1624_vm13 = vweird.f32 %v4498_v41 }
 0x92f   :  { %v1607_v16 = vsel %vm65_vm1, %v1589_v42, 0.0 }
 0x930   :  { %1608 = vadd.xlane.f32.xlu0 %v1607_v16  ;;  %v1621_v4 = vsub.f32 1.0, %v1620_v26 }
 0x932   :  { %v1576_v22 = vpop.f32.mrf.mxu2  ;;  %v1622_v14 = vmul.f32 %v4498_v41, %v1621_v4 }
 0x933   :  { %v1577_v39 = vadd.f32 %v4360_v55, %v1576_v22 }
 0x934   :  { %v1623_v57 = vadd.f32 %v4498_v41, %v1622_v14 }
 0x935   :  { %v1590_v43 = vadd.f32 %v1577_v39, %v4845_v45 }
 0x936   :  { %v5672_v50 = vsel %vm1624_vm13, %v4498_v41, %v1623_v57  ;;  %v5741_v57 = vld [vmem:[%s7031_s1 + $0x58] ss:$0 sm:$0xff] }
 0x937   :  { %v1610_v58 = vsel %vm65_vm1, %v1590_v43, 0.0 }
 0x938   :  { %1611 = vadd.xlane.f32.xlu1 %v1610_v58 }
 0x93a   :  { %v1579_v19 = vpop.f32.mrf.mxu2 }
 0x93b   :  { %v1580_v47 = vadd.f32 %v4360_v55, %v1579_v19 }
 0x93d   :  { %v1591_v44 = vadd.f32 %v1580_v47, %v4849_v46 }
 0x93f   :  { %v1613_v12 = vsel %vm65_vm1, %v1591_v44, 0.0 }
 0x940   :  { %1614 = vadd.xlane.f32.xlu0 %v1613_v12 }
 0x942   :  { %v1582_v21 = vpop.f32.mrf.mxu2 }
 0x943   :  { %v1583_v7 = vadd.f32 %v4360_v55, %v1582_v21 }
 0x945   :  { %v1592_v8 = vadd.f32 %v1583_v7, %v7066_v15  ;;  %v5747_v7 = vld [vmem:[%s7031_s1 + $0x59] ss:$0 sm:$0xff] }
 0x947   :  { %v1616_v30 = vsel %vm65_vm1, %v1592_v8, 0.0 }
 0x964   :  { %v1597_v45 = vpop.xlane.xlu2 %1596 }
 0x965   :  { %v1626_v32 = vmul.f32 %v5672_v50, %v1597_v45 }
 0x967   :  { %v5675_v10 = vsub.f32 %v1585_v6, %v1626_v32 }
 0x969   :  { %v1642_v46 = vmul.f32 %v5675_v10, %v5675_v10 }
 0x96b   :  { %v1650_v11 = vsel %vm65_vm1, %v1642_v46, 0.0 }
 0x96c   :  { %1651 = vadd.xlane.f32.xlu2 %v1650_v11 }
 0x96d   :  { %v1600_v31 = vpop.xlane.xlu0 %1599 }
 0x96e   :  { %v1627_v51 = vmul.f32 %v5672_v50, %v1600_v31 }
 0x970   :  { %v5682_v13 = vsub.f32 %v1586_v27, %v1627_v51 }
 0x972   :  { %v1643_v33 = vmul.f32 %v5682_v13, %v5682_v13 }
 0x974   :  { %1617 = vadd.xlane.f32.xlu2 %v1616_v30  ;;  %v1653_v56 = vsel %vm65_vm1, %v1643_v33, 0.0 }
 0x975   :  { %1654 = vadd.xlane.f32.xlu1 %v1653_v56 }
 0x993   :  { %v1603_v63 = vpop.xlane.xlu1 %1602 }
 0x994   :  { %v1628_v61 = vmul.f32 %v5672_v50, %v1603_v63 }
 0x996   :  { %v5689_v62 = vsub.f32 %v1587_v18, %v1628_v61 }
 0x998   :  { %v1644_v17 = vmul.f32 %v5689_v62, %v5689_v62 }
 0x99a   :  { %v1656_v36 = vsel %vm65_vm1, %v1644_v17, 0.0 }
 0x99b   :  { %v1606_v23 = vpop.xlane.xlu2 %1605  ;;  %1657 = vadd.xlane.f32.xlu0 %v1656_v36 }
 0x99c   :  { %v1629_v52 = vmul.f32 %v5672_v50, %v1606_v23 }
 0x99e   :  { %v5695_v60 = vsub.f32 %v1588_v40, %v1629_v52  ;;  %v1796_v40 = vld [vmem:[%s7033_s2 + $0x28] sm:$0xff] }
 0x99f   :  { %1845 = vmatpush.msrb.mxu1 %v1796_v40 }
 0x9a0   :  { %v1645_v34 = vmul.f32 %v5695_v60, %v5695_v60 }
 0x9a2   :  { %v1659_v5 = vsel %vm65_vm1, %v1645_v34, 0.0 }
 0x9a3   :  { %1660 = vadd.xlane.f32.xlu1 %v1659_v5  ;;  %v1609_v28 = vpop.xlane.xlu0 %1608 }
 0x9a4   :  { %v1630_v20 = vmul.f32 %v5672_v50, %v1609_v28 }
 0x9a6   :  { %v5701_v49 = vsub.f32 %v1589_v42, %v1630_v20 }
 0x9a8   :  { %v1646_v55 = vmul.f32 %v5701_v49, %v5701_v49 }
 0x9aa   :  { %v1662_v24 = vsel %vm65_vm1, %v1646_v55, 0.0 }
 0x9ab   :  { %v1612_v25 = vpop.xlane.xlu1 %1611  ;;  %1663 = vadd.xlane.f32.xlu2 %v1662_v24 }
 0x9ac   :  { %v1631_v6 = vmul.f32 %v5672_v50, %v1612_v25 }
 0x9ae   :  { %v5707_v53 = vsub.f32 %v1590_v43, %v1631_v6 }
 0x9b0   :  { %v1647_v38 = vmul.f32 %v5707_v53, %v5707_v53 }
 0x9b2   :  { %v1665_v54 = vsel %vm65_vm1, %v1647_v38, 0.0 }
 0x9b3   :  { %1666 = vadd.xlane.f32.xlu0 %v1665_v54  ;;  %v1615_v27 = vpop.xlane.xlu0 %1614 }
 0x9b4   :  { %v1632_v37 = vmul.f32 %v5672_v50, %v1615_v27 }
 0x9b6   :  { %v5713_v1 = vsub.f32 %v1591_v44, %v1632_v37 }
 0x9b8   :  { %v1648_v2 = vmul.f32 %v5713_v1, %v5713_v1 }
 0x9ba   :  { %v1668_v18 = vsel %vm65_vm1, %v1648_v2, 0.0 }
 0x9bb   :  { %1669 = vadd.xlane.f32.xlu1 %v1668_v18 }
 0x9df   :  { %v1652_v3 = vpop.xlane.xlu2 %1651 }
 0x9e0   :  { %v1674_v9 = vmul.f32 %v1652_v3, %v5672_v50 }
 0x9e2   :  { %v1682_v59 = vadd.f32 1e-05, %v1674_v9 }
 0x9e4   :  { %4499 = vrsqrt.f32 %v1682_v59  ;;  %vm1696_vm15 = vweird.f32 %v1682_v59 }
 0x9e7   :  { %v1618_v42 = vpop.xlane.xlu2 %1617 }
 0x9e8   :  { %v1633_v16 = vmul.f32 %v5672_v50, %v1618_v42  ;;  %v1655_v22 = vpop.xlane.xlu1 %1654 }
 0x9e9   :  { %v1675_v39 = vmul.f32 %v1655_v22, %v5672_v50 }
 0x9ea   :  { %v4500_v43 = vpop.eup %4499  ;;  %v5733_v58 = vsub.f32 %v1592_v8, %v1633_v16 }
 0x9eb   :  { %v1691_v19 = vmul.f32 %v4500_v43, %v1682_v59  ;;  %v1683_v47 = vadd.f32 1e-05, %v1675_v39  ;;  %vm1697_vm14 = vweird.f32 %v4500_v43 }
 0x9ec   :  { %v1649_v44 = vmul.f32 %v5733_v58, %v5733_v58  ;;  %vm1698_vm3 = vmor %vm1696_vm15, %vm1697_vm14 }
 0x9ed   :  { %v1692_v12 = vmul.f32 %v4500_v43, %v1691_v19  ;;  %4501 = vrsqrt.f32 %v1683_v47  ;;  %vm1706_vm6 = vweird.f32 %v1683_v47 }
 0x9ee   :  { %v1671_v29 = vsel %vm65_vm1, %v1649_v44, 0.0 }
 0x9ef   :  { %v1693_v41 = vmul.f32 0.5, %v1692_v12  ;;  %1672 = vadd.xlane.f32.xlu2 %v1671_v29 }
 0x9f1   :  { %v1694_v26 = vsub.f32 1.5, %v1693_v41 }
 0x9f3   :  { %v4502_v4 = vpop.eup %4501  ;;  %v1695_v14 = vmul.f32 %v4500_v43, %v1694_v26 }
 0x9f4   :  { %v1701_v45 = vmul.f32 %v4502_v4, %v1683_v47  ;;  %vm1707_vm5 = vweird.f32 %v4502_v4 }
 0x9f5   :  { %v1699_v32 = vsel %vm1698_vm3, %v4500_v43, %v1695_v14  ;;  %vm1708_vm7 = vmor %vm1706_vm6, %vm1707_vm5 }
 0x9f6   :  { %v1770_v21 = vmul.f32 %v1699_v32, %v5675_v10  ;;  %v1702_v46 = vmul.f32 %v4502_v4, %v1701_v45 }
 0x9f8   :  { %v1779_v11 = vmul.f32 %v5741_v57, %v1770_v21  ;;  %v1703_v31 = vmul.f32 0.5, %v1702_v46 }
 0x9fa   :  { %v1704_v51 = vsub.f32 1.5, %v1703_v31  ;;  %v5751_v15 = vadd.f32 %v5747_v7, %v1779_v11 }
 0x9fc   :  { %v1705_v8 = vmul.f32 %v4502_v4, %v1704_v51  ;;  %4022 = vmatmul.msk.f32.vlgmr.msrb.gmra.mxu1 %vm65_vm1, %v5751_v15 }
 0x9fe   :  { %v1709_v10 = vsel %vm1708_vm7, %v4502_v4, %v1705_v8 }
 0x9ff   :  { %v1771_v33 = vmul.f32 %v1709_v10, %v5682_v13 }
 0xa01   :  { %v1780_v30 = vmul.f32 %v5741_v57, %v1771_v33 }
 0xa03   :  { %v5758_v56 = vadd.f32 %v5747_v7, %v1780_v30 }
 0xa05   :  { %4023 = vmatmul.msk.f32.gmra.mxu1 %vm65_vm1, %v5758_v56 }
 0xa0e   :  { %v1658_v63 = vpop.xlane.xlu0 %1657 }
 0xa0f   :  { %v1676_v61 = vmul.f32 %v1658_v63, %v5672_v50 }
 0xa11   :  { %v1684_v17 = vadd.f32 1e-05, %v1676_v61 }
 0xa13   :  { %4503 = vrsqrt.f32 %v1684_v17  ;;  %vm1716_vm9 = vweird.f32 %v1684_v17 }
 0xa16   :  { %v1661_v36 = vpop.xlane.xlu1 %1660 }
 0xa17   :  { %v1677_v23 = vmul.f32 %v1661_v36, %v5672_v50 }
 0xa19   :  { %v4504_v52 = vpop.eup %4503  ;;  %v1685_v34 = vadd.f32 1e-05, %v1677_v23 }
 0xa1a   :  { %v1711_v5 = vmul.f32 %v4504_v52, %v1684_v17  ;;  %vm1717_vm8 = vweird.f32 %v4504_v52 }
 0xa1b   :  { %4505 = vrsqrt.f32 %v1685_v34  ;;  %vm1718_vm10 = vmor %vm1716_vm9, %vm1717_vm8  ;;  %vm1726_vm13 = vweird.f32 %v1685_v34 }
 0xa1c   :  { %v1712_v13 = vmul.f32 %v4504_v52, %v1711_v5 }
 0xa1e   :  { %v1713_v28 = vmul.f32 0.5, %v1712_v13  ;;  %v1664_v20 = vpop.xlane.xlu2 %1663 }
 0xa1f   :  { %v1678_v55 = vmul.f32 %v1664_v20, %v5672_v50 }
 0xa20   :  { %v1714_v24 = vsub.f32 1.5, %v1713_v28 }
 0xa21   :  { %v4506_v25 = vpop.eup %4505  ;;  %v1686_v6 = vadd.f32 1e-05, %v1678_v55 }
 0xa22   :  { %v1715_v38 = vmul.f32 %v4504_v52, %v1714_v24  ;;  %v1721_v54 = vmul.f32 %v4506_v25, %v1685_v34  ;;  %vm1727_vm11 = vweird.f32 %v4506_v25 }
 0xa23   :  { %4507 = vrsqrt.f32 %v1686_v6  ;;  %vm1728_vm14 = vmor %vm1726_vm13, %vm1727_vm11  ;;  %vm1736_vm3 = vweird.f32 %v1686_v6 }
 0xa24   :  { %v1722_v27 = vmul.f32 %v4506_v25, %v1721_v54  ;;  %v1719_v37 = vsel %vm1718_vm10, %v4504_v52, %v1715_v38 }
 0xa25   :  { %v1772_v2 = vmul.f32 %v1719_v37, %v5689_v62 }
 0xa26   :  { %v1723_v18 = vmul.f32 0.5, %v1722_v27  ;;  %v1667_v35 = vpop.xlane.xlu0 %1666 }
 0xa27   :  { %v1679_v0 = vmul.f32 %v1667_v35, %v5672_v50  ;;  %v1781_v48 = vmul.f32 %v5741_v57, %v1772_v2 }
 0xa28   :  { %v1724_v40 = vsub.f32 1.5, %v1723_v18 }
 0xa29   :  { %v4508_v3 = vpop.eup %4507  ;;  %v1687_v9 = vadd.f32 1e-05, %v1679_v0  ;;  %v5769_v59 = vadd.f32 %v5747_v7, %v1781_v48  ;;  %v1800_v0 = vld [vmem:[%s7034_s5 + $0x2] ss:$0 sm:$0xff] }
 0xa2a   :  { %v1725_v42 = vmul.f32 %v4506_v25, %v1724_v40  ;;  %v1731_v16 = vmul.f32 %v4508_v3, %v1686_v6  ;;  %vm1737_vm15 = vweird.f32 %v4508_v3 }
 0xa2b   :  { %4509 = vrsqrt.f32 %v1687_v9  ;;  %4024 = vmatmul.msk.f32.gmra.mxu1 %vm65_vm1, %v5769_v59  ;;  %vm1738_vm5 = vmor %vm1736_vm3, %vm1737_vm15  ;;  %vm1746_vm7 = vweird.f32 %v1687_v9 }
 0xa2c   :  { %v1732_v62 = vmul.f32 %v4508_v3, %v1731_v16  ;;  %v1729_v22 = vsel %vm1728_vm14, %v4506_v25, %v1725_v42 }
 0xa2d   :  { %v1773_v39 = vmul.f32 %v1729_v22, %v5695_v60 }
 0xa2e   :  { %v1733_v43 = vmul.f32 0.5, %v1732_v62  ;;  %v1670_v19 = vpop.xlane.xlu1 %1669 }
 0xa2f   :  { %v1680_v47 = vmul.f32 %v1670_v19, %v5672_v50  ;;  %v1782_v44 = vmul.f32 %v5741_v57, %v1773_v39 }
 0xa30   :  { %v1734_v12 = vsub.f32 1.5, %v1733_v43 }
 0xa31   :  { %v4510_v29 = vpop.eup %4509  ;;  %v1688_v41 = vadd.f32 1e-05, %v1680_v47  ;;  %v5777_v26 = vadd.f32 %v5747_v7, %v1782_v44 }
 0xa32   :  { %v1735_v4 = vmul.f32 %v4508_v3, %v1734_v12  ;;  %v1741_v14 = vmul.f32 %v4510_v29, %v1687_v9  ;;  %vm1747_vm6 = vweird.f32 %v4510_v29 }
 0xa33   :  { %4511 = vrsqrt.f32 %v1688_v41  ;;  %4025 = vmatmul.msk.f32.gmra.mxu1 %vm65_vm1, %v5777_v26  ;;  %vm1748_vm8 = vmor %vm1746_vm7, %vm1747_vm6  ;;  %vm1756_vm10 = vweird.f32 %v1688_v41 }
 0xa34   :  { %v1742_v60 = vmul.f32 %v4510_v29, %v1741_v14  ;;  %v1739_v45 = vsel %vm1738_vm5, %v4508_v3, %v1735_v4 }
 0xa35   :  { %v1774_v32 = vmul.f32 %v1739_v45, %v5701_v49 }
 0xa36   :  { %v1743_v21 = vmul.f32 0.5, %v1742_v60 }
 0xa37   :  { %v1783_v46 = vmul.f32 %v5741_v57, %v1774_v32 }
 0xa38   :  { %v1744_v11 = vsub.f32 1.5, %v1743_v21 }
 0xa39   :  { %v4512_v31 = vpop.eup %4511  ;;  %v5784_v51 = vadd.f32 %v5747_v7, %v1783_v46 }
 0xa3a   :  { %v1745_v8 = vmul.f32 %v4510_v29, %v1744_v11  ;;  %v1751_v10 = vmul.f32 %v4512_v31, %v1688_v41  ;;  %vm1757_vm9 = vweird.f32 %v4512_v31 }
 0xa3b   :  { %4026 = vmatmul.msk.f32.gmra.mxu1 %vm65_vm1, %v5784_v51  ;;  %vm1758_vm11 = vmor %vm1756_vm10, %vm1757_vm9 }
 0xa3c   :  { %v1752_v33 = vmul.f32 %v4512_v31, %v1751_v10  ;;  %v1749_v30 = vsel %vm1748_vm8, %v4510_v29, %v1745_v8 }
 0xa3d   :  { %v1775_v49 = vmul.f32 %v1749_v30, %v5707_v53 }
 0xa3e   :  { %v1753_v63 = vmul.f32 0.5, %v1752_v33 }
 0xa3f   :  { %v1784_v61 = vmul.f32 %v5741_v57, %v1775_v49 }
 0xa40   :  { %v1754_v17 = vsub.f32 1.5, %v1753_v63 }
 0xa41   :  { %v5791_v36 = vadd.f32 %v5747_v7, %v1784_v61 }
 0xa42   :  { %v1755_v23 = vmul.f32 %v4512_v31, %v1754_v17 }
 0xa43   :  { %4027 = vmatmul.msk.f32.gmra.mxu1 %vm65_vm1, %v5791_v36 }
 0xa44   :  { %v1759_v52 = vsel %vm1758_vm11, %v4512_v31, %v1755_v23 }
 0xa45   :  { %v1776_v34 = vmul.f32 %v1759_v52, %v5713_v1 }
 0xa47   :  { %v1785_v5 = vmul.f32 %v5741_v57, %v1776_v34 }
 0xa49   :  { %v5798_v53 = vadd.f32 %v5747_v7, %v1785_v5 }
 0xa4b   :  { %4028 = vmatmul.msk.f32.gmra.mxu1 %vm65_vm1, %v5798_v53 }
 0xa62   :  { %v1673_v13 = vpop.xlane.xlu2 %1672 }
 0xa63   :  { %v1681_v28 = vmul.f32 %v1673_v13, %v5672_v50 }
 0xa65   :  { %v1689_v20 = vadd.f32 1e-05, %v1681_v28 }
 0xa67   :  { %4513 = vrsqrt.f32 %v1689_v20  ;;  %vm1766_vm14 = vweird.f32 %v1689_v20 }
 0xa6d   :  { %v4514_v55 = vpop.eup %4513 }
 0xa6e   :  { %v1761_v24 = vmul.f32 %v4514_v55, %v1689_v20  ;;  %vm1767_vm13 = vweird.f32 %v4514_v55 }
 0xa6f   :  { %vm1768_vm15 = vmor %vm1766_vm14, %vm1767_vm13 }
 0xa70   :  { %v1762_v25 = vmul.f32 %v4514_v55, %v1761_v24 }
 0xa72   :  { %v1763_v6 = vmul.f32 0.5, %v1762_v25 }
 0xa74   :  { %v1764_v38 = vsub.f32 1.5, %v1763_v6 }
 0xa76   :  { %v1765_v1 = vmul.f32 %v4514_v55, %v1764_v38 }
 0xa78   :  { %v1769_v54 = vsel %vm1768_vm15, %v4514_v55, %v1765_v1 }
 0xa79   :  { %v1777_v27 = vmul.f32 %v1769_v54, %v5733_v58  ;;  %v1847_v18 = vpop.f32.mrf.mxu1 }
 0xa7a   :  { %v5845_v39 = vadd.f32 %v1847_v18, %v1800_v0 }
 0xa7b   :  { %v1786_v37 = vmul.f32 %v5741_v57, %v1777_v27 }
 0xa7d   :  { %v5806_v2 = vadd.f32 %v5747_v7, %v1786_v37 }
 0xa7f   :  { %4029 = vmatmul.msk.f32.gmra.mxu1 %vm65_vm1, %v5806_v2 }
 0xa82   :  { %v1850_v35 = vpop.f32.mrf.mxu1 }
 0xa83   :  { %v5837_v22 = vadd.f32 %v1850_v35, %v1800_v0 }
 0xa85   :  { %v5998_v24 = vpack.i.bf16 %v5845_v39, %v5837_v22 }
 0xaa8   :  { %v1853_v48 = vpop.f32.mrf.mxu1 }
 0xaa9   :  { %v5813_v40 = vadd.f32 %v1853_v48, %v1800_v0 }
 0xaab   :  { %1883 = vrot.lane.b32.xlu1 %v5813_v40, %s4681_s25 }
 0xab0   :  { %v1856_v58 = vpop.f32.mrf.mxu1 }
 0xab1   :  { %v5817_v57 = vadd.f32 %v1856_v58, %v1800_v0 }
 0xab3   :  { %2167 = vrot.lane.b32.xlu2 %v5817_v57, %s4682_s28  ;;  %1885 = vrot.lane.b32.xlu0 %v5817_v57, %s4681_s25  ;;  %v4274_v32 = vpack.i.bf16 %v5813_v40, %v5817_v57 }
 0xab8   :  { %v1859_v7 = vpop.f32.mrf.mxu1 }
 0xab9   :  { %v5823_v3 = vadd.f32 %v1859_v7, %v1800_v0 }
 0xabb   :  { %1887 = vrot.lane.b32.xlu2 %v5823_v3, %s4681_s25  ;;  %2169 = vrot.lane.b32.xlu1 %v5823_v3, %s4682_s28 }
 0xac0   :  { %v1862_v9 = vpop.f32.mrf.mxu1 }
 0xac1   :  { %v5829_v42 = vadd.f32 %v1862_v9, %v1800_v0 }
 0xac3   :  { %2171 = vrot.lane.b32.xlu0 %v5829_v42, %s4682_s28  ;;  %1889 = vrot.lane.b32.xlu1 %v5829_v42, %s4681_s25  ;;  %v5927_v14 = vpack.i.bf16 %v5823_v3, %v5829_v42 }
 0xac8   :  { %v1865_v16 = vpop.f32.mrf.mxu1 }
 0xac9   :  { %v5835_v62 = vadd.f32 %v1865_v16, %v1800_v0 }
 0xacb   :  { %1891 = vrot.lane.b32.xlu2 %v5835_v62, %s4681_s25  ;;  %2173 = vrot.lane.b32.xlu0 %v5835_v62, %s4682_s28 }
 0xacc   :  { %2163 = vrot.lane.b32.xlu1 %v5837_v22, %s4682_s28 }
 0xad3   :  { %1881 = vrot.lane.b32.xlu2 %v5837_v22, %s4681_s25 }
 0xad4   :  { %2145 = vrot.lane.b32.xlu1 %v5845_v39, %s4683_s29 }
 0xadb   :  { %2161 = vrot.lane.b32.xlu2 %v5845_v39, %s4682_s28 }
 0xae3   :  { %2149 = vrot.lane.b32.xlu2 %v5813_v40, %s4683_s29 }
 0xaeb   :  { %2737 = vrot.lane.b32.xlu2 %v5835_v62, %s4684_s30 }
 0xaf3   :  { %2735 = vrot.lane.b32.xlu2 %v5829_v42, %s4684_s30 }
 0xafb   :  { %2157 = vrot.lane.b32.xlu2 %v5835_v62, %s4683_s29 }
 0xafc   :  { %v1868_v43 = vpop.f32.mrf.mxu1 }
 0xafd   :  { %v5861_v19 = vadd.f32 %v1868_v43, %v1800_v0 }
 0xaff   :  { %1893 = vrot.lane.b32.xlu0 %v5861_v19, %s4681_s25  ;;  %2175 = vrot.lane.b32.xlu1 %v5861_v19, %s4682_s28  ;;  %v4324_v30 = vpack.i.bf16 %v5835_v62, %v5861_v19 }
 0xb03   :  { %2447 = vrot.lane.b32.xlu2 %v5813_v40, %s4685_s7 }
 0xb07   :  { %2165 = vrot.lane.b32.xlu0 %v5813_v40, %s4682_s28  ;;  %2151 = vrot.lane.b32.xlu1 %v5817_v57, %s4683_s29 }
 0xb0b   :  { %2445 = vrot.lane.b32.xlu2 %v5837_v22, %s4685_s7 }
 0xb0d   :  { %v5879_v47 = vpop.permute.xlu2 %2167 }
 0xb0f   :  { %2155 = vrot.lane.b32.xlu1 %v5829_v42, %s4683_s29  ;;  %1879 = vrot.lane.b32.xlu0 %v5845_v39, %s4681_s25 }
 0xb13   :  { %2725 = vrot.lane.b32.xlu2 %v5845_v39, %s4684_s30 }
 0xb15   :  { %v5889_v44 = vpop.permute.xlu2 %1887 }
 0xb17   :  { %2451 = vrot.lane.b32.xlu1 %v5823_v3, %s4685_s7  ;;  %2147 = vrot.lane.b32.xlu0 %v5837_v22, %s4683_s29 }
 0xb1b   :  { %2429 = vrot.lane.b32.xlu2 %v5837_v22, %s4688_s9 }
 0xb1d   :  { %v1884_v60 = vpop.permute.xlu1 %1883 }
 0xb1f   :  { %2449 = vrot.lane.b32.xlu1 %v5817_v57, %s4685_s7  ;;  %2153 = vrot.lane.b32.xlu0 %v5823_v3, %s4683_s29 }
 0xb23   :  { %2457 = vrot.lane.b32.xlu2 %v5861_v19, %s4685_s7 }
 0xb25   :  { %v1892_v12 = vpop.permute.xlu2 %1891  ;;  %v1886_v31 = vpop.permute.xlu0 %1885 }
 0xb27   :  { %2729 = vrot.lane.b32.xlu1 %v5813_v40, %s4684_s30  ;;  %2455 = vrot.lane.b32.xlu0 %v5835_v62, %s4685_s7 }
 0xb2b   :  { %2713 = vrot.lane.b32.xlu2 %v5813_v40, %s4687_s8 }
 0xb2d   :  { %v5903_v29 = vpop.permute.xlu2 %1881  ;;  %v2170_v21 = vpop.permute.xlu1 %2169 }
 0xb2f   :  { %2727 = vrot.lane.b32.xlu1 %v5837_v22, %s4684_s30  ;;  %2453 = vrot.lane.b32.xlu0 %v5829_v42, %s4685_s7 }
 0xb33   :  { %2435 = vrot.lane.b32.xlu2 %v5823_v3, %s4688_s9 }
 0xb35   :  { %v5911_v41 = vpop.permute.xlu2 %2161  ;;  %v1890_v11 = vpop.permute.xlu1 %1889 }
 0xb36   :  { %v2172_v10 = vpop.permute.xlu0 %2171 }
 0xb37   :  { %2427 = vrot.lane.b32.xlu1 %v5845_v39, %s4688_s9  ;;  %2733 = vrot.lane.b32.xlu0 %v5823_v3, %s4684_s30 }
 0xb3b   :  { %2719 = vrot.lane.b32.xlu2 %v5829_v42, %s4687_s8 }
 0xb3d   :  { %v5919_v4 = vpop.permute.xlu2 %2149 }
 0xb3e   :  { %v2164_v33 = vpop.permute.xlu1 %2163  ;;  %v2174_v63 = vpop.permute.xlu0 %2173 }
 0xb3f   :  { %2739 = vrot.lane.b32.xlu1 %v5861_v19, %s4684_s30  ;;  %2731 = vrot.lane.b32.xlu0 %v5817_v57, %s4684_s30 }
 0xb43   :  { %4265 = vrot.lane.b32.xlu2 %v5927_v14, %s4679_s23 }
 0xb45   :  { %v5935_v45 = vpop.permute.xlu2 %2737 }
 0xb46   :  { %v2146_v61 = vpop.permute.xlu1 %2145 }
 0xb47   :  { %2711 = vrot.lane.b32.xlu1 %v5837_v22, %s4687_s8  ;;  %2443 = vrot.lane.b32.xlu0 %v5845_v39, %s4685_s7 }
 0xb4b   :  { %4275 = vrot.lane.b32.xlu2 %v4274_v32, %s4679_s23 }
 0xb4d   :  { %v5944_v46 = vpop.permute.xlu2 %2735 }
 0xb4f   :  { %2433 = vrot.lane.b32.xlu1 %v5817_v57, %s4688_s9  ;;  %2709 = vrot.lane.b32.xlu0 %v5845_v39, %s4687_s8 }
 0xb53   :  { %4310 = vrot.lane.b32.xlu2 %v4274_v32, %s4691_s11 }
 0xb55   :  { %v5953_v8 = vpop.permute.xlu2 %2157 }
 0xb57   :  { %2717 = vrot.lane.b32.xlu1 %v5823_v3, %s4687_s8  ;;  %2159 = vrot.lane.b32.xlu0 %v5861_v19, %s4683_s29 }
 0xb5b   :  { %2441 = vrot.lane.b32.xlu2 %v5861_v19, %s4688_s9 }
 0xb5d   :  { %v5962_v49 = vpop.permute.xlu2 %2447 }
 0xb5f   :  { %2439 = vrot.lane.b32.xlu1 %v5835_v62, %s4688_s9  ;;  %2431 = vrot.lane.b32.xlu0 %v5813_v40, %s4688_s9 }
 0xb63   :  { %4325 = vrot.lane.b32.xlu2 %v4324_v30, %s4690_s10 }
 0xb65   :  { %v5972_v17 = vpop.permute.xlu2 %2445 }
 0xb67   :  { %4270 = vrot.lane.b32.xlu1 %v5927_v14, %s4689_s0  ;;  %2715 = vrot.lane.b32.xlu0 %v5817_v57, %s4687_s8 }
 0xb6d   :  { %v5983_v13 = vpop.permute.xlu2 %2725 }
 0xb6f   :  { %4300 = vrot.lane.b32.xlu1 %v5927_v14, %s4691_s11  ;;  %2437 = vrot.lane.b32.xlu0 %v5829_v42, %s4688_s9 }
 0xb71   :  { %v1894_v23 = vpop.permute.xlu0 %1893  ;;  %v2176_v52 = vpop.permute.xlu1 %2175 }
 0xb72   :  { %4030 = vmatpush.xpose.msk.msra.mxu3 %vm300_vm2, %v1894_v23  ;;  %4054 = vmatpush.xpose.msk.msrb.mxu2 %vm300_vm2, %v2176_v52 }
 0xb75   :  { %v5994_v55 = vpop.permute.xlu2 %2429 }
 0xb76   :  { %4031 = vmatpush.xpose.msk.msra.mxu3 %vm300_vm2, %v1892_v12  ;;  %4055 = vmatpush.xpose.msk.msrb.mxu2 %vm300_vm2, %v2174_v63 }
 0xb77   :  { %4305 = vrot.lane.b32.xlu1 %v4274_v32, %s4690_s10  ;;  %2721 = vrot.lane.b32.xlu0 %v5835_v62, %s4687_s8 }
 0xb79   :  { %v2166_v34 = vpop.permute.xlu0 %2165  ;;  %v2152_v5 = vpop.permute.xlu1 %2151 }
 0xb7a   :  { %4032 = vmatpush.xpose.msk.msra.mxu3 %vm300_vm2, %v1890_v11  ;;  %4056 = vmatpush.xpose.msk.msrb.mxu2 %vm300_vm2, %v2172_v10 }
 0xb7d   :  { %v2458_v38 = vpop.permute.xlu2 %2457 }
 0xb7e   :  { %4033 = vmatpush.xpose.msk.msra.mxu3 %vm300_vm2, %v5889_v44  ;;  %4057 = vmatpush.xpose.msk.msrb.mxu2 %vm300_vm2, %v2170_v21 }
 0xb7f   :  { %2723 = vrot.lane.b32.xlu1 %v5861_v19, %s4687_s8  ;;  %4280 = vrot.lane.b32.xlu0 %v4274_v32, %s4689_s0 }
 0xb81   :  { %v2156_v28 = vpop.permute.xlu1 %2155  ;;  %v1880_v20 = vpop.permute.xlu0 %1879 }
 0xb82   :  { %4034 = vmatpush.xpose.msk.msra.mxu3 %vm300_vm2, %v1886_v31  ;;  %4058 = vmatpush.xpose.msk.msrb.mxu2 %vm300_vm2, %v5879_v47 }
 0xb86   :  { %4035 = vmatpush.xpose.msk.msra.mxu3 %vm300_vm2, %v1884_v60  ;;  %4059 = vmatpush.xpose.msk.msrb.mxu2 %vm300_vm2, %v2166_v34 }
 0xb87   :  { %4320 = vrot.lane.b32.xlu1 %v4324_v30, %s4689_s0  ;;  %4285 = vrot.lane.b32.xlu0 %v5998_v24, %s4679_s23 }
 0xb89   :  { %v2452_v25 = vpop.permute.xlu1 %2451  ;;  %v2148_v6 = vpop.permute.xlu0 %2147 }
 0xb8a   :  { %4036 = vmatpush.xpose.msk.msra.mxu3 %vm300_vm2, %v5903_v29  ;;  %4060 = vmatpush.xpose.msk.msrb.mxu2 %vm300_vm2, %v2164_v33 }
 0xb8e   :  { %4037 = vmatpush.xpose.msk.msra.mxu3 %vm300_vm2, %v1880_v20  ;;  %4061 = vmatpush.xpose.msk.msrb.mxu2 %vm300_vm2, %v5911_v41 }
 0xb8f   :  { %4330 = vrot.lane.b32.xlu1 %v4324_v30, %s4691_s11  ;;  %4290 = vrot.lane.b32.xlu0 %v5998_v24, %s4689_s0 }
 0xb91   :  { %v2450_v1 = vpop.permute.xlu1 %2449  ;;  %4038 = vmatmul.msk.f32.vlgmr.msra.gmra.mxu3 %vm300_vm2, %v5845_v39  ;;  %4062 = vmatmul.msk.f32.vlgmr.msrb.gmra.mxu2 %vm300_vm2, %v2146_v61  ;;  %v2154_v54 = vpop.permute.xlu0 %2153 }
 0xb92   :  { %4078 = vmatpush.xpose.msk.msrb.mxu3 %vm300_vm2, %v2458_v38 }
 0xb97   :  { %4295 = vrot.lane.b32.xlu0 %v5927_v14, %s4690_s10 }
 0xb99   :  { %v2730_v27 = vpop.permute.xlu1 %2729  ;;  %4039 = vmatmul.msk.f32.gmra.mxu3 %vm300_vm2, %v5837_v22  ;;  %4063 = vmatmul.msk.f32.gmra.mxu2 %vm300_vm2, %v2148_v6  ;;  %v2456_v37 = vpop.permute.xlu0 %2455 }
 0xb9a   :  { %4079 = vmatpush.xpose.msk.msrb.mxu3 %vm300_vm2, %v2456_v37  ;;  %v2714_v22 = vpop.permute.xlu2 %2713  ;;  %v7067_v37 = vld [vmem:[#allocation4_spill] sm:$0xff] }
 0xb9f   :  { %4315 = vrot.lane.b32.xlu0 %v4324_v30, %s4679_s23 }
 0xba1   :  { %v2728_v18 = vpop.permute.xlu1 %2727  ;;  %4040 = vmatmul.msk.f32.gmra.mxu3 %vm300_vm2, %v5813_v40  ;;  %4064 = vmatmul.msk.f32.gmra.mxu2 %vm300_vm2, %v5919_v4  ;;  %v2454_v35 = vpop.permute.xlu0 %2453 }
 0xba2   :  { %4080 = vmatpush.xpose.msk.msrb.mxu3 %vm300_vm2, %v2454_v35  ;;  %v2436_v43 = vpop.permute.xlu2 %2435 }
 0xba6   :  { %4081 = vmatpush.xpose.msk.msrb.mxu3 %vm300_vm2, %v2452_v25 }
 0xba9   :  { %v2428_v0 = vpop.permute.xlu1 %2427  ;;  %4041 = vmatmul.msk.f32.gmra.mxu3 %vm300_vm2, %v5817_v57  ;;  %4065 = vmatmul.msk.f32.gmra.mxu2 %vm300_vm2, %v2152_v5  ;;  %v2734_v48 = vpop.permute.xlu0 %2733 }
 0xbaa   :  { %4082 = vmatpush.xpose.msk.msrb.mxu3 %vm300_vm2, %v2450_v1  ;;  %v2720_v44 = vpop.permute.xlu2 %2719 }
 0xbae   :  { %4083 = vmatpush.xpose.msk.msrb.mxu3 %vm300_vm2, %v5962_v49 }
 0xbb1   :  { %v2740_v40 = vpop.permute.xlu1 %2739  ;;  %4042 = vmatmul.msk.f32.gmra.mxu3 %vm300_vm2, %v5823_v3  ;;  %4066 = vmatmul.msk.f32.gmra.mxu2 %vm300_vm2, %v2154_v54  ;;  %v2732_v58 = vpop.permute.xlu0 %2731 }
 0xbb2   :  { %4084 = vmatpush.xpose.msk.msrb.mxu3 %vm300_vm2, %v5972_v17  ;;  %4102 = vmatpush.xpose.msk.msra.mxu2 %vm300_vm2, %v2740_v40  ;;  %v6074_v14 = vpop.permute.xlu2 %4265 }
 0xbb6   :  { %4103 = vmatpush.xpose.msk.msra.mxu2 %vm300_vm2, %v5935_v45 }
 0xbb9   :  { %v2712_v57 = vpop.permute.xlu1 %2711  ;;  %4043 = vmatmul.msk.f32.gmra.mxu3 %vm300_vm2, %v5829_v42  ;;  %4067 = vmatmul.msk.f32.gmra.mxu2 %vm300_vm2, %v2156_v28  ;;  %v2444_v7 = vpop.permute.xlu0 %2443 }
 0xbba   :  { %4085 = vmatpush.xpose.msk.msrb.mxu3 %vm300_vm2, %v2444_v7  ;;  %4104 = vmatpush.xpose.msk.msra.mxu2 %vm300_vm2, %v5944_v46  ;;  %v6079_v32 = vpop.permute.xlu2 %4275 }
 0xbbe   :  { %4105 = vmatpush.xpose.msk.msra.mxu2 %vm300_vm2, %v2734_v48 }
 0xbc1   :  { %v2434_v3 = vpop.permute.xlu1 %2433  ;;  %4044 = vmatmul.msk.f32.gmra.mxu3 %vm300_vm2, %v5835_v62  ;;  %4068 = vmatmul.msk.f32.gmra.mxu2 %vm300_vm2, %v5953_v8  ;;  %v2710_v9 = vpop.permute.xlu0 %2709 }
 0xbc2   :  { %4106 = vmatpush.xpose.msk.msra.mxu2 %vm300_vm2, %v2732_v58  ;;  %v4311_v8 = vpop.permute.xlu2 %4310  ;;  %v4268_v58 = vunpack.i.h.bf16 %v6074_v14 }
 0xbc3   :  { %v4313_v38 = vunpack.i.h.bf16 %v4311_v8 }
 0xbc6   :  { %4107 = vmatpush.xpose.msk.msra.mxu2 %vm300_vm2, %v2730_v27 }
 0xbc9   :  { %v2718_v42 = vpop.permute.xlu1 %2717  ;;  %4045 = vmatmul.msk.f32.gmra.mxu3 %vm300_vm2, %v5861_v19  ;;  %v2160_v16 = vpop.permute.xlu0 %2159 }
 0xbca   :  { %4069 = vmatmul.msk.f32.gmra.mxu2 %vm300_vm2, %v2160_v16  ;;  %v2442_v23 = vpop.permute.xlu2 %2441 }
 0xbcb   :  { %4108 = vmatpush.xpose.msk.msra.mxu2 %vm300_vm2, %v2728_v18 }
 0xbcf   :  { %4109 = vmatpush.xpose.msk.msra.mxu2 %vm300_vm2, %v5983_v13 }
 0xbd1   :  { %v2440_v62 = vpop.permute.xlu1 %2439  ;;  %4086 = vmatmul.msk.f32.vlgmr.msrb.gmra.mxu3 %vm300_vm2, %v2428_v0  ;;  %v2432_v39 = vpop.permute.xlu0 %2431  ;;  %v4267_v0 = vunpack.i.l.bf16 %v6074_v14  ;;  %v7069_v14 = vld [vmem:[#allocation6_spill] sm:$0xff] }
 0xbd2   :  { %4110 = vmatmul.msk.f32.vlgmr.msra.gmra.mxu2 %vm300_vm2, %v2710_v9  ;;  %v4278_v9 = vunpack.i.h.bf16 %v6079_v32 }
 0xbd9   :  { %v4271_v47 = vpop.permute.xlu1 %4270  ;;  %4087 = vmatmul.msk.f32.gmra.mxu3 %vm300_vm2, %v5994_v55  ;;  %v2716_v19 = vpop.permute.xlu0 %2715  ;;  %v4312_v55 = vunpack.i.l.bf16 %v4311_v8 }
 0xbda   :  { %4111 = vmatmul.msk.f32.gmra.mxu2 %vm300_vm2, %v2712_v57  ;;  %v4272_v10 = vunpack.i.l.bf16 %v4271_v47  ;;  %v4273_v33 = vunpack.i.h.bf16 %v4271_v47  ;;  %v4277_v57 = vunpack.i.l.bf16 %v6079_v32 }
 0xbe1   :  { %v4301_v12 = vpop.permute.xlu1 %4300  ;;  %4088 = vmatmul.msk.f32.gmra.mxu3 %vm300_vm2, %v2432_v39  ;;  %v2438_v29 = vpop.permute.xlu0 %2437 }
 0xbe2   :  { %4112 = vmatmul.msk.f32.gmra.mxu2 %vm300_vm2, %v2714_v22  ;;  %v4302_v28 = vunpack.i.l.bf16 %v4301_v12  ;;  %v4303_v20 = vunpack.i.h.bf16 %v4301_v12 }
 0xbe9   :  { %v6071_v41 = vpop.permute.xlu1 %4305  ;;  %4089 = vmatmul.msk.f32.gmra.mxu3 %vm300_vm2, %v2434_v3  ;;  %v2722_v4 = vpop.permute.xlu0 %2721 }
 0xbea   :  { %4113 = vmatmul.msk.f32.gmra.mxu2 %vm300_vm2, %v2716_v19  ;;  %v4308_v8 = vunpack.i.h.bf16 %v6071_v41 }
 0xbf1   :  { %v2724_v60 = vpop.permute.xlu1 %2723  ;;  %4090 = vmatmul.msk.f32.gmra.mxu3 %vm300_vm2, %v2436_v43  ;;  %v4281_v45 = vpop.permute.xlu0 %4280 }
 0xbf2   :  { %4114 = vmatmul.msk.f32.gmra.mxu2 %vm300_vm2, %v2718_v42  ;;  %v4282_v49 = vunpack.i.l.bf16 %v4281_v45  ;;  %v4283_v63 = vunpack.i.h.bf16 %v4281_v45  ;;  %v7068_v42 = vld [vmem:[#allocation5_spill] sm:$0xff] }
 0xbf9   :  { %v4321_v21 = vpop.permute.xlu1 %4320  ;;  %4091 = vmatmul.msk.f32.gmra.mxu3 %vm300_vm2, %v2438_v29  ;;  %v6082_v46 = vpop.permute.xlu0 %4285 }
 0xbfa   :  { %v4322_v11 = vunpack.i.l.bf16 %v4321_v21  ;;  %4115 = vmatmul.msk.f32.gmra.mxu2 %vm300_vm2, %v2720_v44  ;;  %v4323_v31 = vunpack.i.h.bf16 %v4321_v21  ;;  %v4287_v39 = vunpack.i.l.bf16 %v6082_v46  ;;  %v4288_v19 = vunpack.i.h.bf16 %v6082_v46 }
 0xbfc   :  { %2394 = vmatpush.msra.mxu1 %v4322_v11 }
 0xbfe   :  { %2395 = vmatpush.msra.mxu1 %v4323_v31  ;;  %v4307_v31 = vunpack.i.l.bf16 %v6071_v41 }
 0xc00   :  { %2396 = vmatpush.msra.mxu1 %v4272_v10 }
 0xc01   :  { %4092 = vmatmul.msk.f32.gmra.mxu3 %vm300_vm2, %v2440_v62  ;;  %v4291_v30 = vpop.permute.xlu0 %4290  ;;  %v4331_v61 = vpop.permute.xlu1 %4330 }
 0xc02   :  { %2397 = vmatpush.msra.mxu1 %v4273_v33  ;;  %4116 = vmatmul.msk.f32.gmra.mxu2 %vm300_vm2, %v2722_v4  ;;  %v4292_v17 = vunpack.i.l.bf16 %v4291_v30  ;;  %v4293_v52 = vunpack.i.h.bf16 %v4291_v30  ;;  %v4332_v34 = vunpack.i.l.bf16 %v4331_v61  ;;  %v4333_v13 = vunpack.i.h.bf16 %v4331_v61  ;;  %v4326_v62 = vpop.permute.xlu2 %4325  ;;  %v7070_v30 = vld [vmem:[#allocation7_spill] sm:$0xff] }
 0xc03   :  { %v4327_v44 = vunpack.i.l.bf16 %v4326_v62  ;;  %v4328_v12 = vunpack.i.h.bf16 %v4326_v62 }
 0xc04   :  { %2398 = vmatpush.msra.mxu1 %v4282_v49 }
 0xc06   :  { %2399 = vmatpush.msra.mxu1 %v4283_v63 }
 0xc08   :  { %2400 = vmatpush.msra.mxu1 %v4292_v17 }
 0xc09   :  { %4093 = vmatmul.msk.f32.gmra.mxu3 %vm300_vm2, %v2442_v23  ;;  %v6088_v5 = vpop.permute.xlu0 %4295 }
 0xc0a   :  { %2401 = vmatpush.msra.mxu1 %v4293_v52  ;;  %4117 = vmatmul.msk.f32.gmra.mxu2 %vm300_vm2, %v2724_v60  ;;  %v4297_v32 = vunpack.i.l.bf16 %v6088_v5  ;;  %v4298_v11 = vunpack.i.h.bf16 %v6088_v5  ;;  %v7071_v52 = vld [vmem:[#allocation8_spill] sm:$0xff] }
 0xc0c   :  { %2958 = vmatpush.msrb.mxu1 %v4332_v34 }
 0xc0e   :  { %2959 = vmatpush.msrb.mxu1 %v4333_v13 }
 0xc10   :  { %2960 = vmatpush.msrb.mxu1 %v4302_v28 }
 0xc11   :  { %v4316_v25 = vpop.permute.xlu0 %4315 }
 0xc12   :  { %2961 = vmatpush.msrb.mxu1 %v4303_v20  ;;  %v4317_v6 = vunpack.i.l.bf16 %v4316_v25  ;;  %v4318_v1 = vunpack.i.h.bf16 %v4316_v25  ;;  %v7072_v25 = vld [vmem:[#allocation9_spill] sm:$0xff] }
 0xc14   :  { %2962 = vmatpush.msrb.mxu1 %v4312_v55  ;;  %v1944_v54 = vpop.f32.mrf.mxu3  ;;  %2112 = vmatpush.msra.mxu0 %v4317_v6  ;;  %v2226_v27 = vpop.f32.mrf.mxu2 }
 0xc15   :  { %v6092_v18 = vadd.f32 %v1944_v54, %v7067_v37  ;;  %v6095_v35 = vadd.f32 %v2226_v27, %v7067_v37 }
 0xc16   :  { %2963 = vmatpush.msrb.mxu1 %v4313_v38  ;;  %2113 = vmatpush.msra.mxu0 %v4318_v1 }
 0xc17   :  { %v2250_v48 = vsel %vm374_vm4, %v6095_v35, -inf  ;;  %v1968_v40 = vsel %vm374_vm4, %v6092_v18, -inf }
 0xc18   :  { %2251 = vmax.xlane.f32.xlu2 %v2250_v48  ;;  %1969 = vmax.xlane.f32.xlu0 %v1968_v40  ;;  %v7073_v48 = vld [vmem:[#allocation10_spill] sm:$0xff] }
 0xc19   :  { %2114 = vmatpush.msra.mxu0 %v4267_v0 }
 0xc1b   :  { %2115 = vmatpush.msra.mxu0 %v4268_v58 }
 0xc1c   :  { %v1947_v7 = vpop.f32.mrf.mxu3  ;;  %v2229_v3 = vpop.f32.mrf.mxu2 }
 0xc1d   :  { %v6106_v16 = vadd.f32 %v1947_v7, %v7068_v42  ;;  %2116 = vmatpush.msra.mxu0 %v4277_v57  ;;  %v6109_v22 = vadd.f32 %v2229_v3, %v7068_v42 }
 0xc1f   :  { %2117 = vmatpush.msra.mxu0 %v4278_v9  ;;  %v1971_v43 = vsel %vm374_vm4, %v6106_v16, -inf  ;;  %v2253_v47 = vsel %vm374_vm4, %v6109_v22, -inf  ;;  %v7074_v9 = vld [vmem:[#allocation11_spill] sm:$0xff] }
 0xc20   :  { %1972 = vmax.xlane.f32.xlu1 %v1971_v43  ;;  %2254 = vmax.xlane.f32.xlu0 %v2253_v47 }
 0xc21   :  { %2118 = vmatpush.msra.mxu0 %v4287_v39 }
 0xc23   :  { %2119 = vmatpush.msra.mxu0 %v4288_v19 }
 0xc24   :  { %v1950_v29 = vpop.f32.mrf.mxu3  ;;  %v2232_v4 = vpop.f32.mrf.mxu2 }
 0xc25   :  { %2676 = vmatpush.msrb.mxu0 %v4327_v44  ;;  %v6118_v60 = vadd.f32 %v1950_v29, %v7069_v14  ;;  %v6121_v45 = vadd.f32 %v2232_v4, %v7069_v14 }
 0xc27   :  { %2677 = vmatpush.msrb.mxu0 %v4328_v12  ;;  %v1974_v21 = vsel %vm374_vm4, %v6118_v60, -inf  ;;  %v2256_v46 = vsel %vm374_vm4, %v6121_v45, -inf }
 0xc28   :  { %1975 = vmax.xlane.f32.xlu2 %v1974_v21  ;;  %2257 = vmax.xlane.f32.xlu1 %v2256_v46 }
 0xc29   :  { %2678 = vmatpush.msrb.mxu0 %v4297_v32 }
 0xc2b   :  { %2679 = vmatpush.msrb.mxu0 %v4298_v11 }
 0xc2c   :  { %v1953_v10 = vpop.f32.mrf.mxu3  ;;  %v2235_v33 = vpop.f32.mrf.mxu2 }
 0xc2d   :  { %2680 = vmatpush.msrb.mxu0 %v4307_v31  ;;  %v6132_v49 = vadd.f32 %v1953_v10, %v7070_v30  ;;  %v6135_v63 = vadd.f32 %v2235_v33, %v7070_v30 }
 0xc2f   :  { %2681 = vmatpush.msrb.mxu0 %v4308_v8  ;;  %v2259_v61 = vsel %vm374_vm4, %v6135_v63, -inf  ;;  %v1977_v17 = vsel %vm374_vm4, %v6132_v49, -inf }
 0xc30   :  { %2260 = vmax.xlane.f32.xlu2 %v2259_v61  ;;  %1978 = vmax.xlane.f32.xlu0 %v1977_v17 }
 0xc34   :  { %v1956_v23 = vpop.f32.mrf.mxu3  ;;  %v2238_v41 = vpop.f32.mrf.mxu2 }
 0xc35   :  { %v6142_v34 = vadd.f32 %v1956_v23, %v7071_v52  ;;  %v6145_v5 = vadd.f32 %v2238_v41, %v7071_v52 }
 0xc37   :  { %v1980_v13 = vsel %vm374_vm4, %v6142_v34, -inf  ;;  %v2262_v28 = vsel %vm374_vm4, %v6145_v5, -inf }
 0xc38   :  { %1981 = vmax.xlane.f32.xlu1 %v1980_v13  ;;  %2263 = vmax.xlane.f32.xlu0 %v2262_v28 }
 0xc3c   :  { %v1959_v20 = vpop.f32.mrf.mxu3  ;;  %v2241_v55 = vpop.f32.mrf.mxu2 }
 0xc3d   :  { %v6152_v6 = vadd.f32 %v1959_v20, %v7072_v25  ;;  %v6155_v38 = vadd.f32 %v2241_v55, %v7072_v25 }
 0xc3f   :  { %v1983_v1 = vsel %vm374_vm4, %v6152_v6, -inf  ;;  %v2265_v54 = vsel %vm374_vm4, %v6155_v38, -inf }
 0xc40   :  { %1984 = vmax.xlane.f32.xlu2 %v1983_v1  ;;  %2266 = vmax.xlane.f32.xlu1 %v2265_v54 }
 0xc44   :  { %v1962_v27 = vpop.f32.mrf.mxu3  ;;  %v2244_v0 = vpop.f32.mrf.mxu2 }
 0xc45   :  { %v6162_v40 = vadd.f32 %v1962_v27, %v7073_v48  ;;  %v6167_v57 = vadd.f32 %v2244_v0, %v7073_v48 }
 0xc47   :  { %v1986_v58 = vsel %vm374_vm4, %v6162_v40, -inf  ;;  %v2268_v39 = vsel %vm374_vm4, %v6167_v57, -inf }
 0xc48   :  { %1987 = vmax.xlane.f32.xlu2 %v1986_v58 }
 0xc4c   :  { %v1965_v7 = vpop.f32.mrf.mxu3 }
 0xc4d   :  { %v2247_v3 = vpop.f32.mrf.mxu2  ;;  %v6177_v47 = vadd.f32 %v1965_v7, %v7074_v9 }
 0xc4e   :  { %v6170_v62 = vadd.f32 %v2247_v3, %v7074_v9 }
 0xc4f   :  { %v1989_v4 = vsel %vm374_vm4, %v6177_v47, -inf }
 0xc50   :  { %2269 = vmax.xlane.f32.xlu2 %v2268_v39  ;;  %v2271_v43 = vsel %vm374_vm4, %v6170_v62, -inf }
 0xc51   :  { %2272 = vmax.xlane.f32.xlu1 %v2271_v43 }
 0xc54   :  { %v2508_v19 = vpop.f32.mrf.mxu3 }
 0xc55   :  { %v6180_v44 = vadd.f32 %v2508_v19, %v7067_v37  ;;  %v2790_v12 = vpop.f32.mrf.mxu2 }
 0xc56   :  { %v6183_v29 = vadd.f32 %v2790_v12, %v7067_v37 }
 0xc57   :  { %v2532_v32 = vsel %vm374_vm4, %v6180_v44, -inf }
 0xc58   :  { %1990 = vmax.xlane.f32.xlu2 %v1989_v4  ;;  %v2814_v21 = vsel %vm374_vm4, %v6183_v29, -inf }
 0xc59   :  { %2815 = vmax.xlane.f32.xlu0 %v2814_v21  ;;  %2533 = vmax.xlane.f32.xlu1 %v2532_v32 }
 0xc5c   :  { %v2511_v46 = vpop.f32.mrf.mxu3 }
 0xc5d   :  { %v6192_v11 = vadd.f32 %v2511_v46, %v7068_v42  ;;  %v2793_v31 = vpop.f32.mrf.mxu2 }
 0xc5e   :  { %v6195_v37 = vadd.f32 %v2793_v31, %v7068_v42 }
 0xc5f   :  { %v2535_v8 = vsel %vm374_vm4, %v6192_v11, -inf }
 0xc60   :  { %2536 = vmax.xlane.f32.xlu2 %v2535_v8  ;;  %v2817_v10 = vsel %vm374_vm4, %v6195_v37, -inf }
 0xc61   :  { %2818 = vmax.xlane.f32.xlu1 %v2817_v10 }
 0xc64   :  { %v2514_v33 = vpop.f32.mrf.mxu3 }
 0xc65   :  { %v6202_v61 = vadd.f32 %v2514_v33, %v7069_v14  ;;  %v2796_v17 = vpop.f32.mrf.mxu2 }
 0xc66   :  { %v6205_v23 = vadd.f32 %v2796_v17, %v7069_v14 }
 0xc67   :  { %v2538_v42 = vsel %vm374_vm4, %v6202_v61, -inf }
 0xc68   :  { %2539 = vmax.xlane.f32.xlu2 %v2538_v42  ;;  %v2820_v41 = vsel %vm374_vm4, %v6205_v23, -inf }
 0xc69   :  { %2821 = vmax.xlane.f32.xlu1 %v2820_v41 }
 0xc6c   :  { %v2517_v13 = vpop.f32.mrf.mxu3 }
 0xc6d   :  { %v6212_v28 = vadd.f32 %v2517_v13, %v7070_v30  ;;  %v2799_v20 = vpop.f32.mrf.mxu2 }
 0xc6e   :  { %v6215_v55 = vadd.f32 %v2799_v20, %v7070_v30 }
 0xc6f   :  { %v2541_v14 = vsel %vm374_vm4, %v6212_v28, -inf }
 0xc70   :  { %2542 = vmax.xlane.f32.xlu2 %v2541_v14  ;;  %v2823_v1 = vsel %vm374_vm4, %v6215_v55, -inf }
 0xc71   :  { %2824 = vmax.xlane.f32.xlu0 %v2823_v1 }
 0xc74   :  { %v2520_v54 = vpop.f32.mrf.mxu3 }
 0xc75   :  { %v6222_v27 = vadd.f32 %v2520_v54, %v7071_v52  ;;  %v2802_v0 = vpop.f32.mrf.mxu2 }
 0xc76   :  { %v6225_v58 = vadd.f32 %v2802_v0, %v7071_v52 }
 0xc77   :  { %v2544_v30 = vsel %vm374_vm4, %v6222_v27, -inf }
 0xc78   :  { %v2826_v7 = vsel %vm374_vm4, %v6225_v58, -inf }
 0xc79   :  { %2827 = vmax.xlane.f32.xlu1 %v2826_v7  ;;  %2545 = vmax.xlane.f32.xlu0 %v2544_v30 }
 0xc7c   :  { %v2523_v3 = vpop.f32.mrf.mxu3 }
 0xc7d   :  { %v6232_v39 = vadd.f32 %v2523_v3, %v7072_v25  ;;  %v2805_v43 = vpop.f32.mrf.mxu2 }
 0xc7e   :  { %v6235_v19 = vadd.f32 %v2805_v43, %v7072_v25 }
 0xc7f   :  { %v2547_v52 = vsel %vm374_vm4, %v6232_v39, -inf }
 0xc80   :  { %v2829_v12 = vsel %vm374_vm4, %v6235_v19, -inf }
 0xc81   :  { %2830 = vmax.xlane.f32.xlu2 %v2829_v12  ;;  %2548 = vmax.xlane.f32.xlu1 %v2547_v52 }
 0xc84   :  { %v2526_v4 = vpop.f32.mrf.mxu3 }
 0xc85   :  { %v6242_v32 = vadd.f32 %v2526_v4, %v7073_v48  ;;  %v2808_v46 = vpop.f32.mrf.mxu2 }
 0xc86   :  { %v6247_v25 = vadd.f32 %v2808_v46, %v7073_v48 }
 0xc87   :  { %v2550_v21 = vsel %vm374_vm4, %v6242_v32, -inf }
 0xc88   :  { %2551 = vmax.xlane.f32.xlu0 %v2550_v21  ;;  %v2832_v14 = vsel %vm374_vm4, %v6247_v25, -inf }
 0xc8b   :  { %v2252_v31 = vpop.xlane.xlu2 %2251  ;;  %v1970_v8 = vpop.xlane.xlu0 %1969 }
 0xc8c   :  { %v2274_v10 = vsub.f32 %v6095_v35, %v2252_v31  ;;  %v1992_v33 = vsub.f32 %v6092_v18, %v1970_v8  ;;  %v2529_v17 = vpop.f32.mrf.mxu3 }
 0xc8d   :  { %v6252_v42 = vadd.f32 %v2529_v17, %v7074_v9  ;;  %v2811_v52 = vpop.f32.mrf.mxu2 }
 0xc8e   :  { %v2282_v41 = vmul.f32 1.442695, %v2274_v10  ;;  %v2000_v13 = vmul.f32 1.442695, %v1992_v33 }
 0xc8f   :  { %v2553_v20 = vsel %vm374_vm4, %v6252_v42, -inf }
 0xc90   :  { %4515 = vpow2.f32 %v2282_v41  ;;  %2554 = vmax.xlane.f32.xlu1 %v2553_v20  ;;  %2833 = vmax.xlane.f32.xlu0 %v2832_v14 }
 0xc91   :  { %4517 = vpow2.f32 %v2000_v13 }
 0xc93   :  { %v1973_v48 = vpop.xlane.xlu1 %1972  ;;  %v2255_v35 = vpop.xlane.xlu0 %2254 }
 0xc94   :  { %v1993_v18 = vsub.f32 %v6106_v16, %v1973_v48  ;;  %v2275_v1 = vsub.f32 %v6109_v22, %v2255_v35  ;;  %v6269_v22 = vadd.f32 %v2811_v52, %v7074_v9 }
 0xc96   :  { %v6260_v54 = vpop.eup %4515  ;;  %v2002_v0 = vmul.f32 1.442695, %v1993_v18  ;;  %v2284_v30 = vmul.f32 1.442695, %v2275_v1  ;;  %v2835_v9 = vsel %vm374_vm4, %v6269_v22, -inf }
 0xc97   :  { %v6262_v7 = vpop.eup %4517  ;;  %v2298_v3 = vsel %vm374_vm4, %v6260_v54, 0.0 }
 0xc98   :  { %4519 = vpow2.f32 %v2002_v0  ;;  %2299 = vadd.xlane.f32.xlu1 %v2298_v3  ;;  %v2016_v43 = vsel %vm374_vm4, %v6262_v7, 0.0 }
 0xc99   :  { %4521 = vpow2.f32 %v2284_v30  ;;  %2017 = vadd.xlane.f32.xlu0 %v2016_v43 }
 0xc9b   :  { %v1976_v16 = vpop.xlane.xlu2 %1975  ;;  %v2258_v4 = vpop.xlane.xlu1 %2257 }
 0xc9c   :  { %v1994_v12 = vsub.f32 %v6118_v60, %v1976_v16  ;;  %v2276_v21 = vsub.f32 %v6121_v45, %v2258_v4 }
 0xc9e   :  { %v6273_v46 = vpop.eup %4519  ;;  %v2004_v31 = vmul.f32 1.442695, %v1994_v12  ;;  %v2286_v10 = vmul.f32 1.442695, %v2276_v21 }
 0xc9f   :  { %v6275_v8 = vpop.eup %4521  ;;  %v2019_v33 = vsel %vm374_vm4, %v6273_v46, 0.0 }
 0xca0   :  { %4523 = vpow2.f32 %v2004_v31  ;;  %2020 = vadd.xlane.f32.xlu1 %v2019_v33  ;;  %v2301_v60 = vsel %vm374_vm4, %v6275_v8, 0.0 }
 0xca1   :  { %4525 = vpow2.f32 %v2286_v10  ;;  %2836 = vmax.xlane.f32.xlu0 %v2835_v9  ;;  %2302 = vadd.xlane.f32.xlu2 %v2301_v60 }
 0xca3   :  { %v2261_v45 = vpop.xlane.xlu2 %2260  ;;  %v1979_v17 = vpop.xlane.xlu0 %1978 }
 0xca4   :  { %v2277_v41 = vsub.f32 %v6135_v63, %v2261_v45  ;;  %v1995_v13 = vsub.f32 %v6132_v49, %v1979_v17 }
 0xca6   :  { %v6285_v20 = vpop.eup %4523  ;;  %v2288_v14 = vmul.f32 1.442695, %v2277_v41  ;;  %v2006_v48 = vmul.f32 1.442695, %v1995_v13 }
 0xca7   :  { %v6287_v35 = vpop.eup %4525  ;;  %v2022_v18 = vsel %vm374_vm4, %v6285_v20, 0.0 }
 0xca8   :  { %4527 = vpow2.f32 %v2288_v14  ;;  %v2304_v1 = vsel %vm374_vm4, %v6287_v35, 0.0 }
 0xca9   :  { %4529 = vpow2.f32 %v2006_v48  ;;  %2305 = vadd.xlane.f32.xlu1 %v2304_v1  ;;  %2023 = vadd.xlane.f32.xlu2 %v2022_v18 }
 0xcab   :  { %v1982_v0 = vpop.xlane.xlu1 %1981  ;;  %v2264_v63 = vpop.xlane.xlu0 %2263 }
 0xcac   :  { %v1996_v49 = vsub.f32 %v6142_v34, %v1982_v0  ;;  %v2278_v30 = vsub.f32 %v6145_v5, %v2264_v63 }
 0xcae   :  { %v6295_v3 = vpop.eup %4527  ;;  %v2008_v43 = vmul.f32 1.442695, %v1996_v49  ;;  %v2290_v52 = vmul.f32 1.442695, %v2278_v30 }
 0xcaf   :  { %v6297_v16 = vpop.eup %4529  ;;  %v2307_v12 = vsel %vm374_vm4, %v6295_v3, 0.0 }
 0xcb0   :  { %4531 = vpow2.f32 %v2008_v43  ;;  %v2025_v4 = vsel %vm374_vm4, %v6297_v16, 0.0 }
 0xcb1   :  { %4533 = vpow2.f32 %v2290_v52  ;;  %2308 = vadd.xlane.f32.xlu1 %v2307_v12  ;;  %2026 = vadd.xlane.f32.xlu2 %v2025_v4 }
 0xcb3   :  { %v1985_v21 = vpop.xlane.xlu2 %1984  ;;  %v2267_v34 = vpop.xlane.xlu1 %2266 }
 0xcb4   :  { %v1997_v5 = vsub.f32 %v6152_v6, %v1985_v21  ;;  %v2279_v31 = vsub.f32 %v6155_v38, %v2267_v34 }
 0xcb6   :  { %v6305_v10 = vpop.eup %4531  ;;  %v2010_v33 = vmul.f32 1.442695, %v1997_v5  ;;  %v2292_v9 = vmul.f32 1.442695, %v2279_v31 }
 0xcb7   :  { %v6307_v60 = vpop.eup %4533  ;;  %v2028_v45 = vsel %vm374_vm4, %v6305_v10, 0.0 }
 0xcb8   :  { %4535 = vpow2.f32 %v2010_v33  ;;  %v2310_v17 = vsel %vm374_vm4, %v6307_v60, 0.0 }
 0xcb9   :  { %4537 = vpow2.f32 %v2292_v9  ;;  %2029 = vadd.xlane.f32.xlu2 %v2028_v45  ;;  %2311 = vadd.xlane.f32.xlu1 %v2310_v17 }
 0xcbb   :  { %v1988_v41 = vpop.xlane.xlu2 %1987 }
 0xcbc   :  { %v1998_v6 = vsub.f32 %v6162_v40, %v1988_v41 }
 0xcbe   :  { %v6314_v38 = vpop.eup %4535  ;;  %v2012_v13 = vmul.f32 1.442695, %v1998_v6 }
 0xcbf   :  { %v6316_v14 = vpop.eup %4537  ;;  %v2031_v48 = vsel %vm374_vm4, %v6314_v38, 0.0 }
 0xcc0   :  { %4539 = vpow2.f32 %v2012_v13  ;;  %v2313_v18 = vsel %vm374_vm4, %v6316_v14, 0.0 }
 0xcc1   :  { %2314 = vadd.xlane.f32.xlu2 %v2313_v18  ;;  %2032 = vadd.xlane.f32.xlu1 %v2031_v48 }
 0xcc3   :  { %v2270_v1 = vpop.xlane.xlu2 %2269 }
 0xcc4   :  { %v2280_v0 = vsub.f32 %v6167_v57, %v2270_v1  ;;  %v2273_v63 = vpop.xlane.xlu1 %2272 }
 0xcc5   :  { %v2281_v40 = vsub.f32 %v6170_v62, %v2273_v63 }
 0xcc6   :  { %v6324_v49 = vpop.eup %4539  ;;  %v2294_v30 = vmul.f32 1.442695, %v2280_v0 }
 0xcc7   :  { %v2296_v43 = vmul.f32 1.442695, %v2281_v40  ;;  %v2034_v52 = vsel %vm374_vm4, %v6324_v49, 0.0 }
 0xcc8   :  { %4541 = vpow2.f32 %v2294_v30 }
 0xcc9   :  { %4543 = vpow2.f32 %v2296_v43  ;;  %2035 = vadd.xlane.f32.xlu2 %v2034_v52 }
 0xccb   :  { %v1991_v12 = vpop.xlane.xlu2 %1990 }
 0xccc   :  { %v1999_v4 = vsub.f32 %v6177_v47, %v1991_v12  ;;  %v2534_v21 = vpop.xlane.xlu1 %2533  ;;  %v2816_v34 = vpop.xlane.xlu0 %2815 }
 0xccd   :  { %v2556_v57 = vsub.f32 %v6180_v44, %v2534_v21  ;;  %v2838_v31 = vsub.f32 %v6183_v29, %v2816_v34 }
 0xcce   :  { %v6330_v5 = vpop.eup %4541  ;;  %v2014_v62 = vmul.f32 1.442695, %v1999_v4 }
 0xccf   :  { %v6333_v33 = vpop.eup %4543  ;;  %v2564_v9 = vmul.f32 1.442695, %v2556_v57  ;;  %v2316_v45 = vsel %vm374_vm4, %v6330_v5, 0.0  ;;  %v2846_v17 = vmul.f32 1.442695, %v2838_v31 }
 0xcd0   :  { %4545 = vpow2.f32 %v2014_v62  ;;  %2317 = vadd.xlane.f32.xlu0 %v2316_v45  ;;  %v2319_v47 = vsel %vm374_vm4, %v6333_v33, 0.0 }
 0xcd1   :  { %4547 = vpow2.f32 %v2564_v9  ;;  %2320 = vadd.xlane.f32.xlu1 %v2319_v47 }
 0xcd2   :  { %4549 = vpow2.f32 %v2846_v17 }
 0xcd3   :  { %v2537_v44 = vpop.xlane.xlu2 %2536 }
 0xcd4   :  { %v2557_v41 = vsub.f32 %v6192_v11, %v2537_v44  ;;  %v2819_v6 = vpop.xlane.xlu1 %2818 }
 0xcd5   :  { %v2839_v48 = vsub.f32 %v6195_v37, %v2819_v6 }
 0xcd6   :  { %v6340_v13 = vpop.eup %4545  ;;  %v2566_v29 = vmul.f32 1.442695, %v2557_v41 }
 0xcd7   :  { %v6343_v18 = vpop.eup %4547  ;;  %v2037_v1 = vsel %vm374_vm4, %v6340_v13, 0.0  ;;  %v2848_v63 = vmul.f32 1.442695, %v2839_v48 }
 0xcd8   :  { %4551 = vpow2.f32 %v2566_v29  ;;  %2038 = vadd.xlane.f32.xlu0 %v2037_v1  ;;  %v2580_v0 = vsel %vm374_vm4, %v6343_v18, 0.0  ;;  %v6349_v11 = vpop.eup %4549 }
 0xcd9   :  { %2581 = vadd.xlane.f32.xlu2 %v2580_v0  ;;  %4553 = vpow2.f32 %v2848_v63  ;;  %v2862_v52 = vsel %vm374_vm4, %v6349_v11, 0.0 }
 0xcdb   :  { %v2540_v41 = vpop.xlane.xlu2 %2539 }
 0xcdc   :  { %v2822_v40 = vpop.xlane.xlu1 %2821 }
 0xcdd   :  { %v2840_v37 = vsub.f32 %v6205_v23, %v2822_v40 }
 0xcde   :  { %v6351_v30 = vpop.eup %4551 }
 0xcdf   :  { %v2583_v43 = vsel %vm374_vm4, %v6351_v30, 0.0  ;;  %v2850_v12 = vmul.f32 1.442695, %v2840_v37  ;;  %v6358_v4 = vpop.eup %4553 }
 0xce0   :  { %2584 = vadd.xlane.f32.xlu1 %v2583_v43  ;;  %2863 = vadd.xlane.f32.xlu0 %v2862_v52  ;;  %v2865_v57 = vsel %vm374_vm4, %v6358_v4, 0.0 }
 0xce1   :  { %4555 = vpow2.f32 %v2850_v12 }
 0xce3   :  { %v2543_v43 = vpop.xlane.xlu2 %2542 }
 0xce4   :  { %v2825_v21 = vpop.xlane.xlu0 %2824 }
 0xce5   :  { %v2841_v34 = vsub.f32 %v6215_v55, %v2825_v21  ;;  %v2558_v21 = vsub.f32 %v6202_v61, %v2540_v41 }
 0xce7   :  { %v2852_v23 = vmul.f32 1.442695, %v2841_v34  ;;  %v6363_v62 = vpop.eup %4555  ;;  %v2559_v34 = vsub.f32 %v6212_v28, %v2543_v43 }
 0xce8   :  { %2866 = vadd.xlane.f32.xlu1 %v2865_v57  ;;  %v2868_v45 = vsel %vm374_vm4, %v6363_v62, 0.0 }
 0xce9   :  { %4557 = vpow2.f32 %v2852_v23 }
 0xcec   :  { %v2546_v31 = vpop.xlane.xlu0 %2545  ;;  %v2828_v47 = vpop.xlane.xlu1 %2827 }
 0xced   :  { %v2560_v9 = vsub.f32 %v6222_v27, %v2546_v31  ;;  %v2842_v44 = vsub.f32 %v6225_v58, %v2828_v47  ;;  %v2568_v31 = vmul.f32 1.442695, %v2558_v21  ;;  %v2570_v47 = vmul.f32 1.442695, %v2559_v34 }
 0xcef   :  { %v2572_v55 = vmul.f32 1.442695, %v2560_v9  ;;  %v6370_v17 = vpop.eup %4557  ;;  %v2854_v6 = vmul.f32 1.442695, %v2842_v44 }
 0xcf0   :  { %2869 = vadd.xlane.f32.xlu1 %v2868_v45  ;;  %v2871_v27 = vsel %vm374_vm4, %v6370_v17, 0.0 }
 0xcf1   :  { %4340 = vrot.lane.b32.xlu2 %v5998_v24, %s4691_s11  ;;  %4559 = vpow2.f32 %v2572_v55 }
 0xcf2   :  { %4561 = vpow2.f32 %v2854_v6 }
 0xcf4   :  { %4335 = vrot.lane.b32.xlu0 %v5998_v24, %s4690_s10  ;;  %v2549_v29 = vpop.xlane.xlu1 %2548  ;;  %v2831_v9 = vpop.xlane.xlu2 %2830 }
 0xcf5   :  { %v2561_v0 = vsub.f32 %v6232_v39, %v2549_v29  ;;  %v2843_v61 = vsub.f32 %v6235_v19, %v2831_v9 }
 0xcf7   :  { %v6377_v1 = vpop.eup %4559  ;;  %v2574_v24 = vmul.f32 1.442695, %v2561_v0  ;;  %v2856_v6 = vmul.f32 1.442695, %v2843_v61 }
 0xcf8   :  { %2872 = vadd.xlane.f32.xlu1 %v2871_v27  ;;  %v2592_v63 = vsel %vm374_vm4, %v6377_v1, 0.0  ;;  %v6382_v37 = vpop.eup %4561 }
 0xcf9   :  { %4563 = vpow2.f32 %v2574_v24  ;;  %v2874_v12 = vsel %vm374_vm4, %v6382_v37, 0.0 }
 0xcfb   :  { %v2552_v48 = vpop.xlane.xlu0 %2551 }
 0xcfc   :  { %v2562_v52 = vsub.f32 %v6242_v32, %v2552_v48 }
 0xcfe   :  { %v2576_v39 = vmul.f32 1.442695, %v2562_v52 }
 0xcff   :  { %v6389_v23 = vpop.eup %4563 }
 0xd00   :  { %2593 = vadd.xlane.f32.xlu1 %v2592_v63  ;;  %v2595_v32 = vsel %vm374_vm4, %v6389_v23, 0.0 }
 0xd03   :  { %v2555_v58 = vpop.xlane.xlu1 %2554  ;;  %v2834_v40 = vpop.xlane.xlu0 %2833 }
 0xd04   :  { %v2563_v29 = vsub.f32 %v6252_v42, %v2555_v58 }
 0xd06   :  { %v2578_v42 = vmul.f32 1.442695, %v2563_v29 }
 0xd08   :  { %2875 = vadd.xlane.f32.xlu1 %v2874_v12 }
 0xd0b   :  { %v2300_v57 = vpop.xlane.xlu1 %2299 }
 0xd0c   :  { %4565 = vrcp.f32 %v2300_v57  ;;  %v2018_v45 = vpop.xlane.xlu0 %2017 }
 0xd0d   :  { %4567 = vrcp.f32 %v2018_v45 }
 0xd0e   :  { %4569 = vpow2.f32 %v2576_v39 }
 0xd0f   :  { %4571 = vpow2.f32 %v2568_v31 }
 0xd10   :  { %2596 = vadd.xlane.f32.xlu1 %v2595_v32  ;;  %4573 = vpow2.f32 %v2570_v47 }
 0xd12   :  { %v4566_v55 = vpop.eup %4565 }
 0xd13   :  { %v4568_v44 = vpop.eup %4567  ;;  %v2330_v28 = vmul.f32 %v4566_v55, %v6260_v54  ;;  %v2021_v27 = vpop.xlane.xlu1 %2020 }
 0xd14   :  { %v6395_v41 = vpop.eup %4569  ;;  %v2048_v48 = vmul.f32 %v4568_v44, %v6262_v7  ;;  %4575 = vrcp.f32 %v2021_v27  ;;  %v2303_v0 = vpop.xlane.xlu2 %2302  ;;  %v2844_v7 = vsub.f32 %v6247_v25, %v2834_v40 }
 0xd15   :  { %v2837_v63 = vpop.xlane.xlu0 %2836  ;;  %4577 = vrcp.f32 %v2303_v0  ;;  %4070 = vmatmul.msk.f32.vlgmr.msra.gmra.mxu1 %vm374_vm4, %v2330_v28  ;;  %v6401_v24 = vpop.eup %4571  ;;  %v2598_v43 = vsel %vm374_vm4, %v6395_v41, 0.0 }
 0xd16   :  { %v2845_v19 = vsub.f32 %v6269_v22, %v2837_v63  ;;  %4046 = vmatmul.msk.f32.vlgmr.msra.gmra.mxu0 %vm374_vm4, %v2048_v48  ;;  %4579 = vpow2.f32 %v2856_v6  ;;  %v6407_v58 = vpop.eup %4573  ;;  %v2586_v22 = vsel %vm374_vm4, %v6401_v24, 0.0  ;;  %v2858_v39 = vmul.f32 1.442695, %v2844_v7 }
 0xd17   :  { %v2589_v40 = vsel %vm374_vm4, %v6407_v58, 0.0 }
 0xd18   :  { %v2860_v54 = vmul.f32 1.442695, %v2845_v19  ;;  %2599 = vadd.xlane.f32.xlu1 %v2598_v43 }
 0xd1a   :  { %4581 = vpow2.f32 %v2860_v54  ;;  %v4576_v52 = vpop.eup %4575  ;;  %2587 = vadd.xlane.f32.xlu2 %v2586_v22 }
 0xd1b   :  { %v4578_v12 = vpop.eup %4577  ;;  %v2049_v21 = vmul.f32 %v4576_v52, %v6273_v46  ;;  %4583 = vpow2.f32 %v2578_v42 }
 0xd1c   :  { %v2306_v34 = vpop.xlane.xlu1 %2305  ;;  %v2024_v57 = vpop.xlane.xlu2 %2023  ;;  %v2331_v31 = vmul.f32 %v4578_v12, %v6275_v8 }
 0xd1d   :  { %4585 = vrcp.f32 %v2306_v34  ;;  %v6413_v25 = vpop.eup %4579 }
 0xd1e   :  { %4587 = vrcp.f32 %v2024_v57  ;;  %4047 = vmatmul.msk.f32.gmra.mxu0 %vm374_vm4, %v2049_v21  ;;  %4071 = vmatmul.msk.f32.gmra.mxu1 %vm374_vm4, %v2331_v31  ;;  %v2877_v8 = vsel %vm374_vm4, %v6413_v25, 0.0 }
 0xd1f   :  { %2590 = vadd.xlane.f32.xlu0 %v2589_v40  ;;  %4589 = vpow2.f32 %v2858_v39 }
 0xd20   :  { %v6419_v9 = vpop.eup %4581 }
 0xd21   :  { %v2883_v46 = vsel %vm374_vm4, %v6419_v9, 0.0  ;;  %v6425_v45 = vpop.eup %4583 }
 0xd22   :  { %2884 = vadd.xlane.f32.xlu1 %v2883_v46  ;;  %2878 = vadd.xlane.f32.xlu2 %v2877_v8  ;;  %v2601_v6 = vsel %vm374_vm4, %v6425_v45, 0.0 }
 0xd23   :  { %v4586_v47 = vpop.eup %4585 }
 0xd24   :  { %v4588_v32 = vpop.eup %4587  ;;  %v2309_v61 = vpop.xlane.xlu1 %2308  ;;  %v2332_v44 = vmul.f32 %v4586_v47, %v6287_v35 }
 0xd25   :  { %v2027_v55 = vpop.xlane.xlu2 %2026  ;;  %4591 = vrcp.f32 %v2309_v61  ;;  %v2050_v28 = vmul.f32 %v4588_v32, %v6285_v20  ;;  %v6429_v27 = vpop.eup %4589 }
 0xd26   :  { %4593 = vrcp.f32 %v2027_v55  ;;  %4072 = vmatmul.msk.f32.gmra.mxu1 %vm374_vm4, %v2332_v44  ;;  %v2880_v29 = vsel %vm374_vm4, %v6429_v27, 0.0 }
 0xd27   :  { %4048 = vmatmul.msk.f32.gmra.mxu0 %vm374_vm4, %v2050_v28  ;;  %2602 = vadd.xlane.f32.xlu0 %v2601_v6 }
 0xd2a   :  { %2881 = vadd.xlane.f32.xlu2 %v2880_v29 }
 0xd2b   :  { %v4592_v48 = vpop.eup %4591 }
 0xd2c   :  { %v4594_v35 = vpop.eup %4593  ;;  %v2312_v63 = vpop.xlane.xlu1 %2311  ;;  %v2333_v20 = vmul.f32 %v4592_v48, %v6295_v3 }
 0xd2d   :  { %v2030_v0 = vpop.xlane.xlu2 %2029  ;;  %v2051_v19 = vmul.f32 %v4594_v35, %v6297_v16 }
 0xd2e   :  { %4595 = vrcp.f32 %v2030_v0  ;;  %4073 = vmatmul.msk.f32.gmra.mxu1 %vm374_vm4, %v2333_v20 }
 0xd2f   :  { %4597 = vrcp.f32 %v2312_v63  ;;  %4049 = vmatmul.msk.f32.gmra.mxu0 %vm374_vm4, %v2051_v19 }
 0xd34   :  { %v4596_v54 = vpop.eup %4595  ;;  %v2033_v7 = vpop.xlane.xlu1 %2032 }
 0xd35   :  { %v4598_v43 = vpop.eup %4597  ;;  %v2315_v42 = vpop.xlane.xlu2 %2314  ;;  %v2052_v22 = vmul.f32 %v4596_v54, %v6305_v10 }
 0xd36   :  { %4599 = vrcp.f32 %v2315_v42  ;;  %v2334_v52 = vmul.f32 %v4598_v43, %v6307_v60 }
 0xd37   :  { %4601 = vrcp.f32 %v2033_v7  ;;  %4050 = vmatmul.msk.f32.gmra.mxu0 %vm374_vm4, %v2052_v22 }
 0xd38   :  { %4074 = vmatmul.msk.f32.gmra.mxu1 %vm374_vm4, %v2334_v52 }
 0xd3c   :  { %v4600_v3 = vpop.eup %4599 }
 0xd3d   :  { %v4602_v16 = vpop.eup %4601  ;;  %v2036_v12 = vpop.xlane.xlu2 %2035  ;;  %v2335_v21 = vmul.f32 %v4600_v3, %v6316_v14 }
 0xd3e   :  { %4603 = vrcp.f32 %v2036_v12  ;;  %v2053_v39 = vmul.f32 %v4602_v16, %v6314_v38 }
 0xd40   :  { %4051 = vmatmul.msk.f32.gmra.mxu0 %vm374_vm4, %v2053_v39  ;;  %4075 = vmatmul.msk.f32.gmra.mxu1 %vm374_vm4, %v2335_v21 }
 0xd43   :  { %v2318_v34 = vpop.xlane.xlu0 %2317 }
 0xd44   :  { %v4604_v10 = vpop.eup %4603  ;;  %4605 = vrcp.f32 %v2318_v34  ;;  %v2321_v57 = vpop.xlane.xlu1 %2320 }
 0xd45   :  { %v2054_v60 = vmul.f32 %v4604_v10, %v6324_v49  ;;  %4607 = vrcp.f32 %v2321_v57 }
 0xd48   :  { %4052 = vmatmul.msk.f32.gmra.mxu0 %vm374_vm4, %v2054_v60 }
 0xd4a   :  { %v4606_v31 = vpop.eup %4605 }
 0xd4b   :  { %v2039_v40 = vpop.xlane.xlu0 %2038  ;;  %v2336_v14 = vmul.f32 %v4606_v31, %v6330_v5  ;;  %v4608_v38 = vpop.eup %4607 }
 0xd4c   :  { %4609 = vrcp.f32 %v2039_v40  ;;  %v2582_v46 = vpop.xlane.xlu2 %2581  ;;  %v2337_v49 = vmul.f32 %v4608_v38, %v6333_v33 }
 0xd4d   :  { %4076 = vmatmul.msk.f32.gmra.mxu1 %vm374_vm4, %v2336_v14 }
 0xd52   :  { %v4610_v8 = vpop.eup %4609 }
 0xd53   :  { %v2585_v47 = vpop.xlane.xlu1 %2584  ;;  %v2864_v32 = vpop.xlane.xlu0 %2863  ;;  %v2055_v61 = vmul.f32 %v4610_v8, %v6340_v13 }
 0xd54   :  { %v4341_v55 = vpop.permute.xlu2 %4340  ;;  %4611 = vrcp.f32 %v2864_v32 }
 0xd55   :  { %v4342_v44 = vunpack.i.l.bf16 %v4341_v55  ;;  %4053 = vmatmul.msk.f32.gmra.mxu0 %vm374_vm4, %v2055_v61  ;;  %4077 = vmatmul.msk.f32.gmra.mxu1 %vm374_vm4, %v2337_v49  ;;  %v4343_v5 = vunpack.i.h.bf16 %v4341_v55 }
 0xd57   :  { %2964 = vmatpush.msrb.mxu1 %v4342_v44 }
 0xd59   :  { %2965 = vmatpush.msrb.mxu1 %v4343_v5 }
 0xd5a   :  { %v4612_v28 = vpop.eup %4611 }
 0xd5b   :  { %v2867_v6 = vpop.xlane.xlu1 %2866  ;;  %v2894_v29 = vmul.f32 %v4612_v28, %v6349_v11 }
 0xd5c   :  { %4613 = vrcp.f32 %v2867_v6 }
 0xd5d   :  { %4118 = vmatmul.msk.f32.vlgmr.msrb.gmra.mxu1 %vm374_vm4, %v2894_v29  ;;  %4615 = vrcp.f32 %v2582_v46 }
 0xd62   :  { %v4614_v13 = vpop.eup %4613 }
 0xd63   :  { %v2870_v33 = vpop.xlane.xlu1 %2869  ;;  %v2895_v48 = vmul.f32 %v4614_v13, %v6358_v4  ;;  %v4616_v0 = vpop.eup %4615 }
 0xd64   :  { %4617 = vrcp.f32 %v2870_v33  ;;  %v2612_v11 = vmul.f32 %v4616_v0, %v6343_v18 }
 0xd65   :  { %4119 = vmatmul.msk.f32.gmra.mxu1 %vm374_vm4, %v2895_v48  ;;  %4619 = vrcp.f32 %v2585_v47 }
 0xd66   :  { %v4336_v35 = vpop.permute.xlu0 %4335 }
 0xd67   :  { %v4337_v63 = vunpack.i.l.bf16 %v4336_v35  ;;  %v4338_v20 = vunpack.i.h.bf16 %v4336_v35 }
 0xd69   :  { %2682 = vmatpush.msrb.mxu0 %v4337_v63 }
 0xd6a   :  { %v4618_v19 = vpop.eup %4617 }
 0xd6b   :  { %v2873_v54 = vpop.xlane.xlu1 %2872  ;;  %2683 = vmatpush.msrb.mxu0 %v4338_v20  ;;  %v2896_v43 = vmul.f32 %v4618_v19, %v6363_v62  ;;  %v4620_v4 = vpop.eup %4619 }
 0xd6c   :  { %4621 = vrcp.f32 %v2873_v54  ;;  %4094 = vmatmul.msk.f32.vlgmr.msrb.gmra.mxu0 %vm374_vm4, %v2612_v11  ;;  %v2613_v7 = vmul.f32 %v4620_v4, %v6351_v30 }
 0xd6d   :  { %4120 = vmatmul.msk.f32.gmra.mxu1 %vm374_vm4, %v2896_v43 }
 0xd72   :  { %v4622_v42 = vpop.eup %4621 }
 0xd73   :  { %v2594_v22 = vpop.xlane.xlu1 %2593  ;;  %v2897_v52 = vmul.f32 %v4622_v42, %v6370_v17 }
 0xd74   :  { %4095 = vmatmul.msk.f32.gmra.mxu0 %vm374_vm4, %v2613_v7 }
 0xd75   :  { %4121 = vmatmul.msk.f32.gmra.mxu1 %vm374_vm4, %v2897_v52 }
 0xd7b   :  { %v2876_v18 = vpop.xlane.xlu1 %2875 }
 0xd7c   :  { %4623 = vrcp.f32 %v2876_v18  ;;  %v1804_v18 = vld [vmem:[%s7033_s2 + $0xf0] sm:$0xff] }
 0xd7d   :  { %3148 = vmatpush.msra.mxu3 %v1804_v18 }
 0xd82   :  { %v4624_v3 = vpop.eup %4623 }
 0xd83   :  { %v2898_v62 = vmul.f32 %v4624_v3, %v6382_v37  ;;  %v2597_v16 = vpop.xlane.xlu1 %2596 }
 0xd85   :  { %4122 = vmatmul.msk.f32.gmra.mxu1 %vm374_vm4, %v2898_v62 }
 0xd8b   :  { %v2600_v34 = vpop.xlane.xlu1 %2599 }
 0xd8d   :  { %v2588_v12 = vpop.xlane.xlu2 %2587 }
 0xd8e   :  { %4625 = vrcp.f32 %v2588_v12 }
 0xd92   :  { %v2591_v21 = vpop.xlane.xlu0 %2590  ;;  %v2403_v39 = vpop.f32.mrf.mxu1 }
 0xd93   :  { %2999 = vrot.lane.b32.xlu2 %v2403_v39, %s4692_s12  ;;  %4627 = vrcp.f32 %v2591_v21  ;;  %v6474_v31 = vpop.f32.mrf.mxu0  ;;  %v1803_v21 = vld [vmem:[%s7033_s2 + $0xb0] sm:$0xff] }
 0xd94   :  { %v4626_v30 = vpop.eup %4625  ;;  %3149 = vmatpush.msra.mxu3 %v1803_v21 }
 0xd95   :  { %v2879_v17 = vpop.xlane.xlu2 %2878  ;;  %v2614_v10 = vmul.f32 %v4626_v30, %v6401_v24  ;;  %v2885_v24 = vpop.xlane.xlu1 %2884  ;;  %v1802_v30 = vld [vmem:[%s7033_s2 + $0x70] sm:$0xff] }
 0xd96   :  { %4629 = vrcp.f32 %v2879_v17  ;;  %3150 = vmatpush.msra.mxu3 %v1802_v30 }
 0xd97   :  { %4096 = vmatmul.msk.f32.gmra.mxu0 %vm374_vm4, %v2614_v10  ;;  %4631 = vrcp.f32 %v2594_v22  ;;  %v1801_v10 = vld [vmem:[%s7033_s2 + $0x30] sm:$0xff] }
 0xd98   :  { %3151 = vmatpush.msra.mxu3 %v1801_v10 }
 0xd99   :  { %v4628_v60 = vpop.eup %4627 }
 0xd9a   :  { %v2615_v14 = vmul.f32 %v4628_v60, %v6407_v58 }
 0xd9b   :  { %v2406_v37 = vpop.f32.mrf.mxu1  ;;  %v6482_v49 = vpop.f32.mrf.mxu0 }
 0xd9c   :  { %v4630_v57 = vpop.eup %4629 }
 0xd9d   :  { %v2882_v40 = vpop.xlane.xlu2 %2881  ;;  %v2899_v46 = vmul.f32 %v4630_v57, %v6413_v25  ;;  %v4632_v38 = vpop.eup %4631 }
 0xd9e   :  { %4633 = vrcp.f32 %v2882_v40  ;;  %v2616_v32 = vmul.f32 %v4632_v38, %v6377_v1  ;;  %v2603_v1 = vpop.xlane.xlu0 %2602 }
 0xd9f   :  { %4097 = vmatmul.msk.f32.gmra.mxu0 %vm374_vm4, %v2615_v14  ;;  %4123 = vmatmul.msk.f32.gmra.mxu1 %vm374_vm4, %v2899_v46  ;;  %4635 = vrcp.f32 %v2597_v16 }
 0xda0   :  { %4637 = vrcp.f32 %v2885_v24 }
 0xda1   :  { %4639 = vrcp.f32 %v2600_v34 }
 0xda2   :  { %4641 = vrcp.f32 %v2603_v1 }
 0xda3   :  { %v2409_v47 = vpop.f32.mrf.mxu1 }
 0xda4   :  { %v4634_v8 = vpop.eup %4633 }
 0xda5   :  { %v2900_v61 = vmul.f32 %v4634_v8, %v6429_v27  ;;  %v4636_v58 = vpop.eup %4635  ;;  %v6490_v27 = vpop.f32.mrf.mxu0 }
 0xda6   :  { %v4638_v25 = vpop.eup %4637  ;;  %v2617_v55 = vmul.f32 %v4636_v58, %v6389_v23 }
 0xda7   :  { %4098 = vmatmul.msk.f32.gmra.mxu0 %vm374_vm4, %v2616_v32  ;;  %4124 = vmatmul.msk.f32.gmra.mxu1 %vm374_vm4, %v2900_v61  ;;  %v2901_v44 = vmul.f32 %v4638_v25, %v6419_v9  ;;  %v4640_v28 = vpop.eup %4639 }
 0xda8   :  { %v2618_v6 = vmul.f32 %v4640_v28, %v6395_v41  ;;  %v4642_v13 = vpop.eup %4641 }
 0xda9   :  { %v2619_v23 = vmul.f32 %v4642_v13, %v6425_v45 }
 0xdab   :  { %v2412_v5 = vpop.f32.mrf.mxu1 }
 0xdad   :  { %v6494_v33 = vpop.f32.mrf.mxu0 }
 0xdaf   :  { %4099 = vmatmul.msk.f32.gmra.mxu0 %vm374_vm4, %v2617_v55  ;;  %4125 = vmatmul.msk.f32.gmra.mxu1 %vm374_vm4, %v2901_v44 }
 0xdb5   :  { %v2415_v29 = vpop.f32.mrf.mxu1  ;;  %v6498_v48 = vpop.f32.mrf.mxu0 }
 0xdb7   :  { %4100 = vmatmul.msk.f32.gmra.mxu0 %vm374_vm4, %v2618_v6 }
 0xdbd   :  { %v2418_v9 = vpop.f32.mrf.mxu1  ;;  %v6500_v0 = vpop.f32.mrf.mxu0 }
 0xdbf   :  { %4101 = vmatmul.msk.f32.gmra.mxu0 %vm374_vm4, %v2619_v23 }
 0xdc5   :  { %v6502_v20 = vpop.f32.mrf.mxu0 }
 0xdca   :  { %v2421_v35 = vpop.f32.mrf.mxu1 }
 0xdd2   :  { %v2424_v63 = vpop.f32.mrf.mxu1  ;;  %v6505_v19 = vpop.f32.mrf.mxu0 }
 0xdda   :  { %v2967_v41 = vpop.f32.mrf.mxu1 }
 0xddb   :  { %3063 = vrot.lane.b32.xlu1 %v2967_v41, %s4694_s14 }
 0xde2   :  { %v2970_v54 = vpop.f32.mrf.mxu1 }
 0xde3   :  { %3003 = vrot.lane.b32.xlu1 %v2409_v47, %s4692_s12 }
 0xde9   :  { %v2685_v11 = vpop.f32.mrf.mxu0 }
 0xdea   :  { %3031 = vrot.lane.b32.xlu0 %v2685_v11, %s4693_s13  ;;  %v2973_v43 = vpop.f32.mrf.mxu1 }
 0xdeb   :  { %3005 = vrot.lane.b32.xlu1 %v2412_v5, %s4692_s12 }
 0xded   :  { %v3000_v34 = vpop.permute.xlu2 %2999 }
 0xdee   :  { %v3087_v60 = vsel %vm300_vm2, %v6474_v31, %v3000_v34 }
 0xdf1   :  { %v2688_v45 = vpop.f32.mrf.mxu0 }
 0xdf2   :  { %3033 = vrot.lane.b32.xlu2 %v2688_v45, %s4693_s13  ;;  %3001 = vrot.lane.b32.xlu0 %v2406_v37, %s4692_s12  ;;  %v2976_v4 = vpop.f32.mrf.mxu1 }
 0xdf3   :  { %3007 = vrot.lane.b32.xlu1 %v2415_v29, %s4692_s12 }
 0xdfa   :  { %3065 = vrot.lane.b32.xlu0 %v2970_v54, %s4694_s14 }
 0xdfb   :  { %3009 = vrot.lane.b32.xlu1 %v2418_v9, %s4692_s12 }
 0xe02   :  { %3067 = vrot.lane.b32.xlu0 %v2973_v43, %s4694_s14  ;;  %v2979_v42 = vpop.f32.mrf.mxu1 }
 0xe03   :  { %3011 = vrot.lane.b32.xlu1 %v2421_v35, %s4692_s12 }
 0xe0a   :  { %3069 = vrot.lane.b32.xlu0 %v2976_v4, %s4694_s14 }
 0xe0b   :  { %3013 = vrot.lane.b32.xlu1 %v2424_v63, %s4692_s12 }
 0xe12   :  { %3071 = vrot.lane.b32.xlu0 %v2979_v42, %s4694_s14 }
 0xe14   :  { %v2691_v7 = vpop.f32.mrf.mxu0 }
 0xe15   :  { %3035 = vrot.lane.b32.xlu2 %v2691_v7, %s4693_s13 }
 0xe1c   :  { %v2694_v22 = vpop.f32.mrf.mxu0  ;;  %v2982_v52 = vpop.f32.mrf.mxu1 }
 0xe1d   :  { %3037 = vrot.lane.b32.xlu2 %v2694_v22, %s4693_s13  ;;  %3073 = vrot.lane.b32.xlu0 %v2982_v52, %s4694_s14 }
 0xe24   :  { %v2697_v3 = vpop.f32.mrf.mxu0  ;;  %v2985_v62 = vpop.f32.mrf.mxu1 }
 0xe25   :  { %3039 = vrot.lane.b32.xlu2 %v2697_v3, %s4693_s13  ;;  %3075 = vrot.lane.b32.xlu0 %v2985_v62, %s4694_s14 }
 0xe2c   :  { %v2700_v16 = vpop.f32.mrf.mxu0  ;;  %v2988_v12 = vpop.f32.mrf.mxu1 }
 0xe2d   :  { %3041 = vrot.lane.b32.xlu2 %v2700_v16, %s4693_s13  ;;  %3077 = vrot.lane.b32.xlu0 %v2988_v12, %s4694_s14 }
 0xe34   :  { %v2703_v39 = vpop.f32.mrf.mxu0 }
 0xe35   :  { %3043 = vrot.lane.b32.xlu2 %v2703_v39, %s4693_s13 }
 0xe3c   :  { %v2706_v17 = vpop.f32.mrf.mxu0 }
 0xe3d   :  { %3045 = vrot.lane.b32.xlu2 %v2706_v17, %s4693_s13 }
 0xe4c   :  { %v3034_v24 = vpop.permute.xlu2 %3033 }
 0xe4d   :  { %v3064_v57 = vpop.permute.xlu1 %3063 }
 0xe55   :  { %v3004_v38 = vpop.permute.xlu1 %3003 }
 0xe56   :  { %v3089_v58 = vsel %vm300_vm2, %v6490_v27, %v3004_v38 }
 0xe5c   :  { %v3032_v37 = vpop.permute.xlu0 %3031 }
 0xe5d   :  { %v3095_v40 = vsel %vm28_vm0, %v3087_v60, %v3032_v37  ;;  %v3006_v25 = vpop.permute.xlu1 %3005 }
 0xe5e   :  { %v3103_v14 = vsel %vm1510_vm12, %v3095_v40, %v3064_v57  ;;  %v3090_v1 = vsel %vm300_vm2, %v6494_v33, %v3006_v25 }
 0xe5f   :  { %4126 = vmatmul.msk.f32.vlgmr.msra.gmra.mxu3 %vm65_vm1, %v3103_v14 }
 0xe64   :  { %v3002_v46 = vpop.permute.xlu0 %3001 }
 0xe65   :  { %v3088_v8 = vsel %vm300_vm2, %v6482_v49, %v3002_v46  ;;  %v3008_v29 = vpop.permute.xlu1 %3007 }
 0xe66   :  { %v3096_v47 = vsel %vm28_vm0, %v3088_v8, %v3034_v24  ;;  %v3091_v23 = vsel %vm300_vm2, %v6498_v48, %v3008_v29 }
 0xe6c   :  { %v3066_v32 = vpop.permute.xlu0 %3065 }
 0xe6d   :  { %v3104_v61 = vsel %vm1510_vm12, %v3096_v47, %v3066_v32  ;;  %v3010_v33 = vpop.permute.xlu1 %3009 }
 0xe6e   :  { %4127 = vmatmul.msk.f32.gmra.mxu3 %vm65_vm1, %v3104_v61  ;;  %v3092_v11 = vsel %vm300_vm2, %v6500_v0, %v3010_v33 }
 0xe6f   :  { %v3036_v31 = vpop.permute.xlu2 %3035 }
 0xe70   :  { %v3097_v55 = vsel %vm28_vm0, %v3089_v58, %v3036_v31 }
 0xe74   :  { %v3068_v44 = vpop.permute.xlu0 %3067 }
 0xe75   :  { %v3105_v5 = vsel %vm1510_vm12, %v3097_v55, %v3068_v44  ;;  %v3012_v4 = vpop.permute.xlu1 %3011 }
 0xe76   :  { %4128 = vmatmul.msk.f32.gmra.mxu3 %vm65_vm1, %v3105_v5  ;;  %v3093_v42 = vsel %vm300_vm2, %v6502_v20, %v3012_v4  ;;  %v4363_v20 = vld [vmem:[%s7031_s1 + $0x57] ss:$0 sm:$0xff] }
 0xe77   :  { %v3038_v49 = vpop.permute.xlu2 %3037 }
 0xe78   :  { %v3098_v28 = vsel %vm28_vm0, %v3090_v1, %v3038_v49 }
 0xe7c   :  { %v3070_v6 = vpop.permute.xlu0 %3069 }
 0xe7d   :  { %v3106_v13 = vsel %vm1510_vm12, %v3098_v28, %v3070_v6  ;;  %v3014_v0 = vpop.permute.xlu1 %3013 }
 0xe7e   :  { %4129 = vmatmul.msk.f32.gmra.mxu3 %vm65_vm1, %v3106_v13  ;;  %v3094_v3 = vsel %vm300_vm2, %v6505_v19, %v3014_v0 }
 0xe7f   :  { %v3040_v27 = vpop.permute.xlu2 %3039 }
 0xe80   :  { %v3099_v9 = vsel %vm28_vm0, %v3091_v23, %v3040_v27 }
 0xe84   :  { %v3072_v35 = vpop.permute.xlu0 %3071 }
 0xe85   :  { %v3107_v63 = vsel %vm1510_vm12, %v3099_v9, %v3072_v35 }
 0xe86   :  { %4130 = vmatmul.msk.f32.gmra.mxu3 %vm65_vm1, %v3107_v63 }
 0xe87   :  { %v3042_v41 = vpop.permute.xlu2 %3041 }
 0xe88   :  { %v3100_v45 = vsel %vm28_vm0, %v3092_v11, %v3042_v41 }
 0xe8f   :  { %v3074_v54 = vpop.permute.xlu0 %3073  ;;  %v3044_v48 = vpop.permute.xlu2 %3043 }
 0xe90   :  { %v3108_v43 = vsel %vm1510_vm12, %v3100_v45, %v3074_v54  ;;  %v3101_v7 = vsel %vm28_vm0, %v3093_v42, %v3044_v48 }
 0xe91   :  { %4131 = vmatmul.msk.f32.gmra.mxu3 %vm65_vm1, %v3108_v43 }
 0xe97   :  { %v3076_v22 = vpop.permute.xlu0 %3075  ;;  %v3046_v18 = vpop.permute.xlu2 %3045 }
 0xe98   :  { %v3109_v52 = vsel %vm1510_vm12, %v3101_v7, %v3076_v22  ;;  %v3102_v62 = vsel %vm28_vm0, %v3094_v3, %v3046_v18 }
 0xe99   :  { %4132 = vmatmul.msk.f32.gmra.mxu3 %vm65_vm1, %v3109_v52 }
 0xe9f   :  { %v3078_v16 = vpop.permute.xlu0 %3077 }
 0xea0   :  { %v3110_v12 = vsel %vm1510_vm12, %v3102_v62, %v3078_v16 }
 0xea1   :  { %4133 = vmatmul.msk.f32.gmra.mxu3 %vm65_vm1, %v3110_v12 }
 0xee2   :  { %v3153_v21 = vpop.f32.mrf.mxu3 }
 0xee3   :  { %v3154_v39 = vadd.f32 %v4363_v20, %v3153_v21 }
 0xee5   :  { %v3177_v30 = vadd.f32 %v3154_v39, %v5751_v15 }
 0xee7   :  { %v3187_v17 = vsel %vm65_vm1, %v3177_v30, 0.0 }
 0xee8   :  { %3188 = vadd.xlane.f32.xlu1 %v3187_v17 }
 0xef1   :  { %v3156_v10 = vpop.f32.mrf.mxu3 }
 0xef2   :  { %v3157_v19 = vadd.f32 %v4363_v20, %v3156_v10  ;;  %v3384_v10 = vld [vmem:[%s7033_s2 + $0xf8] sm:$0xff] }
 0xef3   :  { %3422 = vmatpush.msra.mxu0 %v3384_v10 }
 0xef4   :  { %v3178_v34 = vadd.f32 %v3157_v19, %v5758_v56  ;;  %v3383_v19 = vld [vmem:[%s7033_s2 + $0xb8] sm:$0xff] }
 0xef5   :  { %3423 = vmatpush.msra.mxu0 %v3383_v19 }
 0xef6   :  { %v3190_v60 = vsel %vm65_vm1, %v3178_v34, 0.0 }
 0xef7   :  { %3191 = vadd.xlane.f32.xlu2 %v3190_v60  ;;  %v3381_v60 = vld [vmem:[%s7033_s2 + $0x38] sm:$0xff] }
 0xef9   :  { %v3159_v37 = vpop.f32.mrf.mxu3 }
 0xefa   :  { %v3160_v57 = vadd.f32 %v4363_v20, %v3159_v37 }
 0xefc   :  { %v3179_v40 = vadd.f32 %v3160_v57, %v5769_v59 }
 0xefe   :  { %v3193_v14 = vsel %vm65_vm1, %v3179_v40, 0.0 }
 0xeff   :  { %3194 = vadd.xlane.f32.xlu0 %v3193_v14 }
 0xf01   :  { %v3162_v46 = vpop.f32.mrf.mxu3 }
 0xf02   :  { %v3163_v24 = vadd.f32 %v4363_v20, %v3162_v46 }
 0xf04   :  { %v3180_v15 = vadd.f32 %v3163_v24, %v5777_v26 }
 0xf06   :  { %v3196_v38 = vsel %vm65_vm1, %v3180_v15, 0.0 }
 0xf07   :  { %3197 = vadd.xlane.f32.xlu2 %v3196_v38 }
 0xf09   :  { %v3165_v8 = vpop.f32.mrf.mxu3 }
 0xf0a   :  { %v3166_v47 = vadd.f32 %v4363_v20, %v3165_v8 }
 0xf0c   :  { %v3181_v56 = vadd.f32 %v3166_v47, %v5784_v51 }
 0xf0e   :  { %v3199_v32 = vsel %vm65_vm1, %v3181_v56, 0.0 }
 0xf0f   :  { %3200 = vadd.xlane.f32.xlu1 %v3199_v32 }
 0xf14   :  { %v3168_v61 = vpop.f32.mrf.mxu3 }
 0xf15   :  { %v3169_v31 = vadd.f32 %v4363_v20, %v3168_v61 }
 0xf17   :  { %v3182_v59 = vadd.f32 %v3169_v31, %v5791_v36 }
 0xf19   :  { %v3202_v58 = vsel %vm65_vm1, %v3182_v59, 0.0 }
 0xf1a   :  { %3203 = vadd.xlane.f32.xlu2 %v3202_v58 }
 0xf1c   :  { %v3171_v25 = vpop.f32.mrf.mxu3 }
 0xf1d   :  { %v3172_v55 = vadd.f32 %v4363_v20, %v3171_v25 }
 0xf1f   :  { %v3183_v26 = vadd.f32 %v3172_v55, %v5798_v53  ;;  %v6665_v55 = vld [vmem:[%s7031_s1 + $0x5a] ss:$0 sm:$0xff] }
 0xf21   :  { %v3205_v44 = vsel %vm65_vm1, %v3183_v26, 0.0 }
 0xf22   :  { %3206 = vadd.xlane.f32.xlu1 %v3205_v44  ;;  %v6670_v44 = vld [vmem:[%s7031_s1 + $0x5b] ss:$0 sm:$0xff] }
 0xf24   :  { %v3174_v1 = vpop.f32.mrf.mxu3 }
 0xf25   :  { %v3175_v36 = vadd.f32 %v4363_v20, %v3174_v1 }
 0xf27   :  { %v3184_v29 = vadd.f32 %v3175_v36, %v5806_v2 }
 0xf29   :  { %v3208_v53 = vsel %vm65_vm1, %v3184_v29, 0.0 }
 0xf5b   :  { %v3189_v5 = vpop.xlane.xlu1 %3188 }
 0xf5c   :  { %v3211_v51 = vmul.f32 %v3189_v5, %v5672_v50 }
 0xf5e   :  { %v6599_v49 = vsub.f32 %v3177_v30, %v3211_v51 }
 0xf60   :  { %v3227_v28 = vmul.f32 %v6599_v49, %v6599_v49 }
 0xf62   :  { %v3235_v6 = vsel %vm65_vm1, %v3227_v28, 0.0 }
 0xf63   :  { %3236 = vadd.xlane.f32.xlu0 %v3235_v6 }
 0xf6a   :  { %v3192_v13 = vpop.xlane.xlu2 %3191 }
 0xf6b   :  { %v3212_v27 = vmul.f32 %v3192_v13, %v5672_v50  ;;  %3209 = vadd.xlane.f32.xlu0 %v3208_v53 }
 0xf6d   :  { %v6607_v23 = vsub.f32 %v3178_v34, %v3212_v27  ;;  %v3382_v34 = vld [vmem:[%s7033_s2 + $0x78] sm:$0xff] }
 0xf6e   :  { %3424 = vmatpush.msra.mxu0 %v3382_v34 }
 0xf6f   :  { %v3228_v9 = vmul.f32 %v6607_v23, %v6607_v23 }
 0xf70   :  { %3425 = vmatpush.msra.mxu0 %v3381_v60 }
 0xf71   :  { %v3238_v35 = vsel %vm65_vm1, %v3228_v9, 0.0 }
 0xf72   :  { %3239 = vadd.xlane.f32.xlu2 %v3238_v35  ;;  %v3195_v63 = vpop.xlane.xlu0 %3194 }
 0xf73   :  { %v3213_v33 = vmul.f32 %v3195_v63, %v5672_v50 }
 0xf75   :  { %v6613_v41 = vsub.f32 %v3179_v40, %v3213_v33 }
 0xf77   :  { %v3229_v2 = vmul.f32 %v6613_v41, %v6613_v41 }
 0xf79   :  { %v3241_v11 = vsel %vm65_vm1, %v3229_v2, 0.0 }
 0xf7a   :  { %v3198_v45 = vpop.xlane.xlu2 %3197  ;;  %3242 = vadd.xlane.f32.xlu1 %v3241_v11 }
 0xf7b   :  { %v3214_v54 = vmul.f32 %v3198_v45, %v5672_v50 }
 0xf7d   :  { %v6619_v43 = vsub.f32 %v3180_v15, %v3214_v54 }
 0xf7f   :  { %v3230_v4 = vmul.f32 %v6619_v43, %v6619_v43 }
 0xf81   :  { %v3244_v48 = vsel %vm65_vm1, %v3230_v4, 0.0 }
 0xf82   :  { %v3201_v42 = vpop.xlane.xlu1 %3200  ;;  %3245 = vadd.xlane.f32.xlu2 %v3244_v48 }
 0xf83   :  { %v3215_v7 = vmul.f32 %v3201_v42, %v5672_v50 }
 0xf85   :  { %v6625_v22 = vsub.f32 %v3181_v56, %v3215_v7 }
 0xf87   :  { %v3231_v52 = vmul.f32 %v6625_v22, %v6625_v22 }
 0xf89   :  { %v3247_v0 = vsel %vm65_vm1, %v3231_v52, 0.0 }
 0xf8a   :  { %3248 = vadd.xlane.f32.xlu0 %v3247_v0 }
 0xf8d   :  { %v3204_v18 = vpop.xlane.xlu2 %3203 }
 0xf8e   :  { %v3216_v3 = vmul.f32 %v3204_v18, %v5672_v50 }
 0xf90   :  { %v6631_v62 = vsub.f32 %v3182_v59, %v3216_v3 }
 0xf92   :  { %v3232_v16 = vmul.f32 %v6631_v62, %v6631_v62 }
 0xf94   :  { %v3250_v12 = vsel %vm65_vm1, %v3232_v16, 0.0 }
 0xf95   :  { %v3207_v20 = vpop.xlane.xlu1 %3206  ;;  %3251 = vadd.xlane.f32.xlu1 %v3250_v12 }
 0xf96   :  { %v3217_v21 = vmul.f32 %v3207_v20, %v5672_v50 }
 0xf98   :  { %v6637_v39 = vsub.f32 %v3183_v26, %v3217_v21 }
 0xf9a   :  { %v3233_v30 = vmul.f32 %v6637_v39, %v6637_v39 }
 0xf9c   :  { %v3253_v17 = vsel %vm65_vm1, %v3233_v30, 0.0 }
 0xf9d   :  { %3254 = vadd.xlane.f32.xlu2 %v3253_v17 }
 0xfd6   :  { %v3237_v37 = vpop.xlane.xlu0 %3236 }
 0xfd7   :  { %v3259_v57 = vmul.f32 %v3237_v37, %v5672_v50 }
 0xfd9   :  { %v3267_v40 = vadd.f32 1e-05, %v3259_v57 }
 0xfdb   :  { %4643 = vrsqrt.f32 %v3267_v40  ;;  %vm3281_vm2 = vweird.f32 %v3267_v40 }
 0xfde   :  { %v3210_v14 = vpop.xlane.xlu0 %3209 }
 0xfdf   :  { %v3218_v46 = vmul.f32 %v3210_v14, %v5672_v50 }
 0xfe1   :  { %v4644_v24 = vpop.eup %4643  ;;  %v6656_v15 = vsub.f32 %v3184_v29, %v3218_v46 }
 0xfe2   :  { %v3276_v38 = vmul.f32 %v4644_v24, %v3267_v40  ;;  %vm3282_vm0 = vweird.f32 %v4644_v24 }
 0xfe3   :  { %v3234_v8 = vmul.f32 %v6656_v15, %v6656_v15  ;;  %vm3283_vm12 = vmor %vm3281_vm2, %vm3282_vm0 }
 0xfe4   :  { %v3277_v47 = vmul.f32 %v4644_v24, %v3276_v38 }
 0xfe5   :  { %v3240_v56 = vpop.xlane.xlu2 %3239  ;;  %v3256_v32 = vsel %vm65_vm1, %v3234_v8, 0.0 }
 0xfe6   :  { %v3278_v61 = vmul.f32 0.5, %v3277_v47  ;;  %v3260_v31 = vmul.f32 %v3240_v56, %v5672_v50  ;;  %3257 = vadd.xlane.f32.xlu0 %v3256_v32 }
 0xfe8   :  { %v3279_v59 = vsub.f32 1.5, %v3278_v61  ;;  %v3268_v58 = vadd.f32 1e-05, %v3260_v31 }
 0xfea   :  { %v3280_v25 = vmul.f32 %v4644_v24, %v3279_v59  ;;  %4645 = vrsqrt.f32 %v3268_v58  ;;  %vm3291_vm5 = vweird.f32 %v3268_v58 }
 0xfec   :  { %v3284_v26 = vsel %vm3283_vm12, %v4644_v24, %v3280_v25 }
 0xfed   :  { %v3355_v5 = vmul.f32 %v3284_v26, %v6599_v49  ;;  %v3243_v51 = vpop.xlane.xlu1 %3242 }
 0xfee   :  { %v3261_v1 = vmul.f32 %v3243_v51, %v5672_v50 }
 0xfef   :  { %v3364_v28 = vmul.f32 %v6665_v55, %v3355_v5 }
 0xff0   :  { %v4646_v36 = vpop.eup %4645  ;;  %v3269_v6 = vadd.f32 1e-05, %v3261_v1 }
 0xff1   :  { %v6676_v29 = vadd.f32 %v6670_v44, %v3364_v28  ;;  %v3286_v13 = vmul.f32 %v4646_v36, %v3268_v58  ;;  %vm3292_vm3 = vweird.f32 %v4646_v36 }
 0xff2   :  { %4647 = vrsqrt.f32 %v3269_v6  ;;  %vm3293_vm6 = vmor %vm3291_vm5, %vm3292_vm3  ;;  %vm3301_vm8 = vweird.f32 %v3269_v6 }
 0xff3   :  { %v3287_v53 = vmul.f32 %v4646_v36, %v3286_v13  ;;  %4134 = vmatmul.msk.f32.vlgmr.msra.gmra.mxu0 %vm65_vm1, %v6676_v29 }
 0xff5   :  { %v3288_v27 = vmul.f32 0.5, %v3287_v53  ;;  %v3246_v9 = vpop.xlane.xlu2 %3245 }
 0xff6   :  { %v3262_v49 = vmul.f32 %v3246_v9, %v5672_v50 }
 0xff7   :  { %v3289_v35 = vsub.f32 1.5, %v3288_v27 }
 0xff8   :  { %v4648_v63 = vpop.eup %4647  ;;  %v3270_v33 = vadd.f32 1e-05, %v3262_v49 }
 0xff9   :  { %v3290_v2 = vmul.f32 %v4646_v36, %v3289_v35  ;;  %v3296_v11 = vmul.f32 %v4648_v63, %v3269_v6  ;;  %vm3302_vm7 = vweird.f32 %v4648_v63 }
 0xffa   :  { %4649 = vrsqrt.f32 %v3270_v33  ;;  %vm3303_vm9 = vmor %vm3301_vm8, %vm3302_vm7  ;;  %vm3311_vm11 = vweird.f32 %v3270_v33 }
 0xffb   :  { %v3294_v45 = vsel %vm3293_vm6, %v4646_v36, %v3290_v2  ;;  %v3297_v54 = vmul.f32 %v4648_v63, %v3296_v11 }
 0xffc   :  { %v3356_v4 = vmul.f32 %v3294_v45, %v6607_v23 }
 0xffd   :  { %v3298_v48 = vmul.f32 0.5, %v3297_v54  ;;  %v3249_v42 = vpop.xlane.xlu0 %3248 }
 0xffe   :  { %v3263_v7 = vmul.f32 %v3249_v42, %v5672_v50  ;;  %v3365_v52 = vmul.f32 %v6665_v55, %v3356_v4  ;;  %v3465_v42 = vld [vmem:[%s7031_s1 + $0x40] sm:$0xff] }
 0xfff   :  { %v3299_v0 = vsub.f32 1.5, %v3298_v48  ;;  %v3466_v48 = vld [vmem:[%s7031_s1 + $0x48] sm:$0xff] }
0x1000   :  { %v4650_v18 = vpop.eup %4649  ;;  %v3271_v3 = vadd.f32 1e-05, %v3263_v7  ;;  %v6685_v16 = vadd.f32 %v6670_v44, %v3365_v52  ;;  %3501 = vmatpush.msrb.mxu2 %v3466_v48  ;;  %v3463_v7 = vld [vmem:[%s7031_s1 + $0x30] sm:$0xff]  ;;  %v3462_v52 = vld [vmem:[%s7031_s1 + $0x28] sm:$0xff] }
0x1001   :  { %v3300_v12 = vmul.f32 %v4648_v63, %v3299_v0  ;;  %v3306_v20 = vmul.f32 %v4650_v18, %v3270_v33  ;;  %vm3312_vm10 = vweird.f32 %v4650_v18  ;;  %v3461_v0 = vld [vmem:[%s7031_s1 + $0x20] sm:$0xff] }
0x1002   :  { %4651 = vrsqrt.f32 %v3271_v3  ;;  %4135 = vmatmul.msk.f32.gmra.mxu0 %vm65_vm1, %v6685_v16  ;;  %vm3313_vm13 = vmor %vm3311_vm11, %vm3312_vm10  ;;  %vm3321_vm15 = vweird.f32 %v3271_v3  ;;  %3502 = vmatpush.msrb.mxu2 %v3465_v42 }
0x1003   :  { %v3304_v23 = vsel %vm3303_vm9, %v4648_v63, %v3300_v12  ;;  %v3307_v21 = vmul.f32 %v4650_v18, %v3306_v20 }
0x1004   :  { %v3357_v30 = vmul.f32 %v3304_v23, %v6613_v41 }
0x1005   :  { %v3308_v17 = vmul.f32 0.5, %v3307_v21 }
0x1006   :  { %v3366_v10 = vmul.f32 %v6665_v55, %v3357_v30 }
0x1007   :  { %v3309_v19 = vsub.f32 1.5, %v3308_v17 }
0x1008   :  { %v4652_v34 = vpop.eup %4651  ;;  %v3252_v60 = vpop.xlane.xlu1 %3251  ;;  %v6692_v37 = vadd.f32 %v6670_v44, %v3366_v10 }
0x1009   :  { %v3310_v57 = vmul.f32 %v4650_v18, %v3309_v19  ;;  %v3316_v40 = vmul.f32 %v4652_v34, %v3271_v3  ;;  %v3264_v14 = vmul.f32 %v3252_v60, %v5672_v50  ;;  %vm3322_vm14 = vweird.f32 %v4652_v34  ;;  %v3459_v3 = vld [vmem:[%s7031_s1 + $0x10] sm:$0xff]  ;;  %v3385_v60 = vld [vmem:[%s7034_s5 + $0x3] ss:$0 sm:$0xff] }
0x100a   :  { %4136 = vmatmul.msk.f32.gmra.mxu0 %vm65_vm1, %v6692_v37  ;;  %vm3323_vm0 = vmor %vm3321_vm15, %vm3322_vm14 }
0x100b   :  { %v3314_v41 = vsel %vm3313_vm13, %v4650_v18, %v3310_v57  ;;  %v3317_v46 = vmul.f32 %v4652_v34, %v3316_v40  ;;  %v3272_v24 = vadd.f32 1e-05, %v3264_v14  ;;  %v3460_v18 = vld [vmem:[%s7031_s1 + $0x18] sm:$0xff] }
0x100c   :  { %v3358_v38 = vmul.f32 %v3314_v41, %v6619_v43 }
0x100d   :  { %v3318_v8 = vmul.f32 0.5, %v3317_v46  ;;  %4653 = vrsqrt.f32 %v3272_v24  ;;  %vm3331_vm12 = vweird.f32 %v3272_v24 }
0x100e   :  { %v3367_v47 = vmul.f32 %v6665_v55, %v3358_v38 }
0x100f   :  { %v3319_v56 = vsub.f32 1.5, %v3318_v8 }
0x1010   :  { %v3255_v32 = vpop.xlane.xlu2 %3254  ;;  %v6700_v61 = vadd.f32 %v6670_v44, %v3367_v47 }
0x1011   :  { %v3320_v31 = vmul.f32 %v4652_v34, %v3319_v56  ;;  %v3265_v59 = vmul.f32 %v3255_v32, %v5672_v50 }
0x1012   :  { %4137 = vmatmul.msk.f32.gmra.mxu0 %vm65_vm1, %v6700_v61 }
0x1013   :  { %v4654_v58 = vpop.eup %4653  ;;  %v3324_v43 = vsel %vm3323_vm0, %v4652_v34, %v3320_v31  ;;  %v3273_v25 = vadd.f32 1e-05, %v3265_v59 }
0x1014   :  { %v3359_v26 = vmul.f32 %v3324_v43, %v6625_v22  ;;  %v3326_v5 = vmul.f32 %v4654_v58, %v3272_v24  ;;  %vm3332_vm2 = vweird.f32 %v4654_v58 }
0x1015   :  { %4655 = vrsqrt.f32 %v3273_v25  ;;  %vm3333_vm3 = vmor %vm3331_vm12, %vm3332_vm2  ;;  %vm3341_vm6 = vweird.f32 %v3273_v25 }
0x1016   :  { %v3327_v51 = vmul.f32 %v4654_v58, %v3326_v5  ;;  %v3368_v1 = vmul.f32 %v6665_v55, %v3359_v26 }
0x1018   :  { %v3328_v28 = vmul.f32 0.5, %v3327_v51  ;;  %v6708_v36 = vadd.f32 %v6670_v44, %v3368_v1 }
0x101a   :  { %v3329_v6 = vsub.f32 1.5, %v3328_v28  ;;  %4138 = vmatmul.msk.f32.gmra.mxu0 %vm65_vm1, %v6708_v36 }
0x101b   :  { %v4656_v13 = vpop.eup %4655 }
0x101c   :  { %v3330_v53 = vmul.f32 %v4654_v58, %v3329_v6  ;;  %v3336_v27 = vmul.f32 %v4656_v13, %v3273_v25  ;;  %vm3342_vm5 = vweird.f32 %v4656_v13 }
0x101d   :  { %vm3343_vm7 = vmor %vm3341_vm6, %vm3342_vm5 }
0x101e   :  { %v3334_v22 = vsel %vm3333_vm3, %v4654_v58, %v3330_v53  ;;  %v3337_v9 = vmul.f32 %v4656_v13, %v3336_v27 }
0x101f   :  { %v3360_v49 = vmul.f32 %v3334_v22, %v6631_v62 }
0x1020   :  { %v3338_v35 = vmul.f32 0.5, %v3337_v9 }
0x1021   :  { %v3369_v63 = vmul.f32 %v6665_v55, %v3360_v49 }
0x1022   :  { %v3339_v33 = vsub.f32 1.5, %v3338_v35 }
0x1023   :  { %v6715_v2 = vadd.f32 %v6670_v44, %v3369_v63 }
0x1024   :  { %v3340_v11 = vmul.f32 %v4656_v13, %v3339_v33  ;;  %v4366_v33 = vld [vmem:[%s7031_s1 + $0x5e] ss:$0 sm:$0xff] }
0x1025   :  { %4139 = vmatmul.msk.f32.gmra.mxu0 %vm65_vm1, %v6715_v2 }
0x1026   :  { %v3344_v45 = vsel %vm3343_vm7, %v4656_v13, %v3340_v11 }
0x1027   :  { %v3361_v54 = vmul.f32 %v3344_v45, %v6637_v39  ;;  %v3464_v39 = vld [vmem:[%s7031_s1 + $0x38] sm:$0xff] }
0x1028   :  { %3503 = vmatpush.msrb.mxu2 %v3464_v39 }
0x1029   :  { %v3370_v4 = vmul.f32 %v6665_v55, %v3361_v54 }
0x102a   :  { %3504 = vmatpush.msrb.mxu2 %v3463_v7 }
0x102b   :  { %v6722_v62 = vadd.f32 %v6670_v44, %v3370_v4 }
0x102c   :  { %3505 = vmatpush.msrb.mxu2 %v3462_v52 }
0x102d   :  { %4140 = vmatmul.msk.f32.gmra.mxu0 %vm65_vm1, %v6722_v62 }
0x102e   :  { %3506 = vmatpush.msrb.mxu2 %v3461_v0 }
0x1030   :  { %3507 = vmatpush.msrb.mxu2 %v3460_v18 }
0x1032   :  { %3508 = vmatpush.msrb.mxu2 %v3459_v3 }
0x1059   :  { %v3258_v12 = vpop.xlane.xlu0 %3257 }
0x105a   :  { %v3266_v20 = vmul.f32 %v3258_v12, %v5672_v50 }
0x105c   :  { %v3274_v23 = vadd.f32 1e-05, %v3266_v20 }
0x105e   :  { %4657 = vrsqrt.f32 %v3274_v23  ;;  %vm3351_vm9 = vweird.f32 %v3274_v23 }
0x1064   :  { %v4658_v21 = vpop.eup %4657 }
0x1065   :  { %v3346_v30 = vmul.f32 %v4658_v21, %v3274_v23  ;;  %vm3352_vm8 = vweird.f32 %v4658_v21 }
0x1066   :  { %vm3353_vm10 = vmor %vm3351_vm9, %vm3352_vm8 }
0x1067   :  { %v3347_v17 = vmul.f32 %v4658_v21, %v3346_v30 }
0x1069   :  { %v3348_v10 = vmul.f32 0.5, %v3347_v17 }
0x106b   :  { %v3349_v19 = vsub.f32 1.5, %v3348_v10 }
0x106d   :  { %v3350_v34 = vmul.f32 %v4658_v21, %v3349_v19 }
0x106f   :  { %v3354_v57 = vsel %vm3353_vm10, %v4658_v21, %v3350_v34 }
0x1070   :  { %v3362_v40 = vmul.f32 %v3354_v57, %v6656_v15  ;;  %v3427_v14 = vpop.f32.mrf.mxu0 }
0x1071   :  { %v3428_v41 = vadd.f32 %v3427_v14, %v3385_v60 }
0x1072   :  { %v3371_v46 = vmul.f32 %v6665_v55, %v3362_v40 }
0x1073   :  { %v3451_v24 = vmax.f32 %v3428_v41, 0.0 }
0x1074   :  { %v6757_v38 = vadd.f32 %v6670_v44, %v3371_v46 }
0x1075   :  { %4142 = vmatmul.msk.f32.vlgmr.msrb.gmra.mxu2 %vm374_vm4, %v3451_v24 }
0x1076   :  { %4141 = vmatmul.msk.f32.gmra.mxu0 %vm65_vm1, %v6757_v38 }
0x107f   :  { %v3430_v8 = vpop.f32.mrf.mxu0 }
0x1080   :  { %v3431_v47 = vadd.f32 %v3430_v8, %v3385_v60 }
0x1082   :  { %v3452_v56 = vmax.f32 %v3431_v47, 0.0 }
0x1084   :  { %4143 = vmatmul.msk.f32.gmra.mxu2 %vm374_vm4, %v3452_v56 }
0x1087   :  { %v3433_v32 = vpop.f32.mrf.mxu0 }
0x1088   :  { %v3434_v15 = vadd.f32 %v3433_v32, %v3385_v60 }
0x108a   :  { %v3453_v31 = vmax.f32 %v3434_v15, 0.0 }
0x108c   :  { %4144 = vmatmul.msk.f32.gmra.mxu2 %vm374_vm4, %v3453_v31 }
0x108f   :  { %v3436_v55 = vpop.f32.mrf.mxu0 }
0x1090   :  { %v3437_v59 = vadd.f32 %v3436_v55, %v3385_v60 }
0x1092   :  { %v3454_v58 = vmax.f32 %v3437_v59, 0.0 }
0x1094   :  { %4145 = vmatmul.msk.f32.gmra.mxu2 %vm374_vm4, %v3454_v58 }
0x1097   :  { %v3439_v44 = vpop.f32.mrf.mxu0 }
0x1098   :  { %v3440_v43 = vadd.f32 %v3439_v44, %v3385_v60 }
0x109a   :  { %v3455_v25 = vmax.f32 %v3440_v43, 0.0 }
0x109c   :  { %4146 = vmatmul.msk.f32.gmra.mxu2 %vm374_vm4, %v3455_v25 }
0x10a2   :  { %v3442_v26 = vpop.f32.mrf.mxu0 }
0x10a3   :  { %v3443_v5 = vadd.f32 %v3442_v26, %v3385_v60 }
0x10a5   :  { %v3456_v51 = vmax.f32 %v3443_v5, 0.0 }
0x10a7   :  { %4147 = vmatmul.msk.f32.gmra.mxu2 %vm374_vm4, %v3456_v51 }
0x10aa   :  { %v3445_v1 = vpop.f32.mrf.mxu0 }
0x10ab   :  { %v3446_v28 = vadd.f32 %v3445_v1, %v3385_v60 }
0x10ad   :  { %v3457_v6 = vmax.f32 %v3446_v28, 0.0 }
0x10af   :  { %4148 = vmatmul.msk.f32.gmra.mxu2 %vm374_vm4, %v3457_v6 }
0x10f3   :  { %v3448_v13 = vpop.f32.mrf.mxu0 }
0x10f4   :  { %v3449_v53 = vadd.f32 %v3448_v13, %v3385_v60 }
0x10f6   :  { %v3458_v27 = vmax.f32 %v3449_v53, 0.0 }
0x10f8   :  { %4149 = vmatmul.msk.f32.gmra.mxu2 %vm374_vm4, %v3458_v27  ;;  %v3510_v22 = vpop.f32.mrf.mxu2 }
0x10f9   :  { %v3511_v23 = vadd.f32 %v4366_v33, %v3510_v22 }
0x1107   :  { %v3513_v9 = vpop.f32.mrf.mxu2 }
0x1108   :  { %v3514_v4 = vadd.f32 %v4366_v33, %v3513_v9 }
0x110a   :  { %v3535_v39 = vadd.f32 %v3514_v4, %v6685_v16 }
0x110c   :  { %v3547_v12 = vsel %vm65_vm1, %v3535_v39, 0.0 }
0x110f   :  { %v3516_v49 = vpop.f32.mrf.mxu2 }
0x1110   :  { %v3517_v0 = vadd.f32 %v4366_v33, %v3516_v49 }
0x1117   :  { %v3519_v35 = vpop.f32.mrf.mxu2 }
0x1118   :  { %v3520_v34 = vadd.f32 %v4366_v33, %v3519_v35 }
0x111f   :  { %v3522_v63 = vpop.f32.mrf.mxu2 }
0x1120   :  { %v3523_v18 = vadd.f32 %v4366_v33, %v3522_v63 }
0x1122   :  { %v3538_v20 = vadd.f32 %v3523_v18, %v6708_v36  ;;  %v3537_v36 = vadd.f32 %v3520_v34, %v6700_v61 }
0x1124   :  { %v3556_v16 = vsel %vm65_vm1, %v3538_v20, 0.0  ;;  %v3553_v60 = vsel %vm65_vm1, %v3537_v36, 0.0 }
0x112a   :  { %v3525_v11 = vpop.f32.mrf.mxu2 }
0x112b   :  { %v3526_v45 = vadd.f32 %v4366_v33, %v3525_v11 }
0x112d   :  { %v3539_v54 = vadd.f32 %v3526_v45, %v6715_v2  ;;  %v3536_v2 = vadd.f32 %v3517_v0, %v6692_v37 }
0x112f   :  { %v3559_v48 = vsel %vm65_vm1, %v3539_v54, 0.0  ;;  %v3550_v21 = vsel %vm65_vm1, %v3536_v2, 0.0 }
0x1130   :  { %3560 = vadd.xlane.f32.xlu1 %v3559_v48 }
0x1132   :  { %v3528_v42 = vpop.f32.mrf.mxu2 }
0x1133   :  { %v3529_v7 = vadd.f32 %v4366_v33, %v3528_v42 }
0x1135   :  { %v3540_v52 = vadd.f32 %v3529_v7, %v6722_v62  ;;  %v3534_v62 = vadd.f32 %v3511_v23, %v6676_v29 }
0x1137   :  { %v3562_v3 = vsel %vm65_vm1, %v3540_v52, 0.0  ;;  %v3544_v30 = vsel %vm65_vm1, %v3534_v62, 0.0 }
0x1138   :  { %3563 = vadd.xlane.f32.xlu2 %v3562_v3  ;;  %3548 = vadd.xlane.f32.xlu1 %v3547_v12 }
0x1140   :  { %3551 = vadd.xlane.f32.xlu2 %v3550_v21  ;;  %3557 = vadd.xlane.f32.xlu1 %v3556_v16 }
0x1148   :  { %3545 = vadd.xlane.f32.xlu2 %v3544_v30 }
0x117b   :  { %v3531_v17 = vpop.f32.mrf.mxu2 }
0x117c   :  { %v3532_v10 = vadd.f32 %v4366_v33, %v3531_v17 }
0x117e   :  { %v3541_v19 = vadd.f32 %v3532_v10, %v6757_v38 }
0x1180   :  { %v3565_v37 = vsel %vm65_vm1, %v3541_v19, 0.0 }
0x1181   :  { %3566 = vadd.xlane.f32.xlu0 %v3565_v37 }
0x1189   :  { %3554 = vadd.xlane.f32.xlu0 %v3553_v60 }
0x11a3   :  { %v3561_v57 = vpop.xlane.xlu1 %3560 }
0x11a4   :  { %v3573_v40 = vmul.f32 %v3561_v57, %v5672_v50 }
0x11a6   :  { %v6789_v29 = vsub.f32 %v3539_v54, %v3573_v40 }
0x11a8   :  { %v3589_v14 = vmul.f32 %v6789_v29, %v6789_v29 }
0x11aa   :  { %v3607_v41 = vsel %vm65_vm1, %v3589_v14, 0.0 }
0x11ab   :  { %v3564_v46 = vpop.xlane.xlu2 %3563  ;;  %v3549_v24 = vpop.xlane.xlu1 %3548  ;;  %3608 = vadd.xlane.f32.xlu0 %v3607_v41 }
0x11ac   :  { %v3574_v38 = vmul.f32 %v3564_v46, %v5672_v50  ;;  %v3569_v61 = vmul.f32 %v3549_v24, %v5672_v50 }
0x11ae   :  { %v6796_v8 = vsub.f32 %v3540_v52, %v3574_v38  ;;  %v6798_v47 = vsub.f32 %v3535_v39, %v3569_v61 }
0x11b0   :  { %v3590_v56 = vmul.f32 %v6796_v8, %v6796_v8  ;;  %v3585_v32 = vmul.f32 %v6798_v47, %v6798_v47 }
0x11b2   :  { %v3610_v15 = vsel %vm65_vm1, %v3590_v56, 0.0  ;;  %v3595_v31 = vsel %vm65_vm1, %v3585_v32, 0.0 }
0x11b3   :  { %v3552_v55 = vpop.xlane.xlu2 %3551  ;;  %3611 = vadd.xlane.f32.xlu1 %v3610_v15  ;;  %v3558_v59 = vpop.xlane.xlu1 %3557  ;;  %3596 = vadd.xlane.f32.xlu0 %v3595_v31  ;;  %v6844_v15 = vld [vmem:[%s7031_s1 + $0x5c] ss:$0 sm:$0xff] }
0x11b4   :  { %v3570_v58 = vmul.f32 %v3552_v55, %v5672_v50  ;;  %v3572_v44 = vmul.f32 %v3558_v59, %v5672_v50 }
0x11b6   :  { %v6808_v43 = vsub.f32 %v3536_v2, %v3570_v58  ;;  %v6810_v25 = vsub.f32 %v3538_v20, %v3572_v44 }
0x11b8   :  { %v3586_v26 = vmul.f32 %v6808_v43, %v6808_v43  ;;  %v3588_v5 = vmul.f32 %v6810_v25, %v6810_v25 }
0x11ba   :  { %v3598_v51 = vsel %vm65_vm1, %v3586_v26, 0.0  ;;  %v3604_v1 = vsel %vm65_vm1, %v3588_v5, 0.0  ;;  %v6851_v5 = vld [vmem:[%s7031_s1 + $0x5d] ss:$0 sm:$0xff] }
0x11bb   :  { %v3546_v28 = vpop.xlane.xlu2 %3545  ;;  %3599 = vadd.xlane.f32.xlu1 %v3598_v51  ;;  %3605 = vadd.xlane.f32.xlu0 %v3604_v1 }
0x11bc   :  { %v3568_v6 = vmul.f32 %v3546_v28, %v5672_v50 }
0x11be   :  { %v6819_v13 = vsub.f32 %v3534_v62, %v3568_v6 }
0x11c0   :  { %v3584_v53 = vmul.f32 %v6819_v13, %v6819_v13 }
0x11c2   :  { %v3592_v27 = vsel %vm65_vm1, %v3584_v53, 0.0 }
0x11c3   :  { %3593 = vadd.xlane.f32.xlu1 %v3592_v27 }
0x11f4   :  { %v3567_v22 = vpop.xlane.xlu0 %3566 }
0x11f5   :  { %v3575_v9 = vmul.f32 %v3567_v22, %v5672_v50 }
0x11f7   :  { %v6825_v49 = vsub.f32 %v3541_v19, %v3575_v9 }
0x11f9   :  { %v3591_v35 = vmul.f32 %v6825_v49, %v6825_v49 }
0x11fb   :  { %v3613_v63 = vsel %vm65_vm1, %v3591_v35, 0.0 }
0x11fc   :  { %3614 = vadd.xlane.f32.xlu2 %v3613_v63  ;;  %v3555_v33 = vpop.xlane.xlu0 %3554 }
0x11fd   :  { %v3571_v11 = vmul.f32 %v3555_v33, %v5672_v50 }
0x11ff   :  { %v6831_v45 = vsub.f32 %v3537_v36, %v3571_v11 }
0x1201   :  { %v3587_v54 = vmul.f32 %v6831_v45, %v6831_v45 }
0x1203   :  { %v3601_v4 = vsel %vm65_vm1, %v3587_v54, 0.0 }
0x1204   :  { %3602 = vadd.xlane.f32.xlu2 %v3601_v4 }
0x121e   :  { %v3609_v48 = vpop.xlane.xlu0 %3608 }
0x121f   :  { %v3621_v42 = vmul.f32 %v3609_v48, %v5672_v50 }
0x1221   :  { %v3629_v39 = vadd.f32 1e-05, %v3621_v42 }
0x1223   :  { %4659 = vrsqrt.f32 %v3629_v39  ;;  %vm3688_vm13 = vweird.f32 %v3629_v39 }
0x1226   :  { %v3612_v7 = vpop.xlane.xlu1 %3611  ;;  %v3597_v52 = vpop.xlane.xlu0 %3596 }
0x1227   :  { %v3622_v0 = vmul.f32 %v3612_v7, %v5672_v50  ;;  %v3617_v18 = vmul.f32 %v3597_v52, %v5672_v50 }
0x1229   :  { %v4660_v3 = vpop.eup %4659  ;;  %v3630_v12 = vadd.f32 1e-05, %v3622_v0  ;;  %v3625_v2 = vadd.f32 1e-05, %v3617_v18 }
0x122a   :  { %v3683_v20 = vmul.f32 %v4660_v3, %v3629_v39  ;;  %vm3689_vm11 = vweird.f32 %v4660_v3 }
0x122b   :  { %4661 = vrsqrt.f32 %v3630_v12  ;;  %vm3690_vm14 = vmor %vm3688_vm13, %vm3689_vm11  ;;  %vm3648_vm2 = vweird.f32 %v3625_v2  ;;  %vm3698_vm12 = vweird.f32 %v3630_v12 }
0x122c   :  { %v3684_v23 = vmul.f32 %v4660_v3, %v3683_v20  ;;  %4663 = vrsqrt.f32 %v3625_v2 }
0x122e   :  { %v3685_v21 = vmul.f32 0.5, %v3684_v23  ;;  %v3600_v16 = vpop.xlane.xlu1 %3599 }
0x122f   :  { %v3618_v62 = vmul.f32 %v3600_v16, %v5672_v50 }
0x1230   :  { %v3686_v30 = vsub.f32 1.5, %v3685_v21 }
0x1231   :  { %v4662_v17 = vpop.eup %4661  ;;  %v3626_v10 = vadd.f32 1e-05, %v3618_v62 }
0x1232   :  { %v4664_v19 = vpop.eup %4663  ;;  %v3693_v34 = vmul.f32 %v4662_v17, %v3630_v12  ;;  %v3687_v37 = vmul.f32 %v4660_v3, %v3686_v30  ;;  %vm3699_vm0 = vweird.f32 %v4662_v17 }
0x1233   :  { %v3643_v36 = vmul.f32 %v4664_v19, %v3625_v2  ;;  %4665 = vrsqrt.f32 %v3626_v10  ;;  %vm3649_vm15 = vweird.f32 %v4664_v19  ;;  %vm3700_vm5 = vmor %vm3698_vm12, %vm3699_vm0  ;;  %vm3658_vm7 = vweird.f32 %v3626_v10 }
0x1234   :  { %v3694_v60 = vmul.f32 %v4662_v17, %v3693_v34  ;;  %v3691_v14 = vsel %vm3690_vm14, %v4660_v3, %v3687_v37  ;;  %vm3650_vm3 = vmor %vm3648_vm2, %vm3649_vm15 }
0x1235   :  { %v3644_v57 = vmul.f32 %v4664_v19, %v3643_v36  ;;  %v3717_v61 = vmul.f32 %v3691_v14, %v6789_v29  ;;  %v3783_v14 = vld [vmem:[%s7035_s3 + $0x70] sm:$0xff] }
0x1236   :  { %v3695_v40 = vmul.f32 0.5, %v3694_v60 }
0x1237   :  { %v3645_v41 = vmul.f32 0.5, %v3644_v57  ;;  %v3726_v29 = vmul.f32 %v6844_v15, %v3717_v61  ;;  %v3799_v57 = vld [vmem:[%s7035_s3 + $0xf0] sm:$0xff]  ;;  %v3780_v61 = vld [vmem:[%s7035_s3 + $0x58] sm:$0xff] }
0x1238   :  { %v3696_v46 = vsub.f32 1.5, %v3695_v40  ;;  %v3784_v40 = vld [vmem:[%s7035_s3 + $0x78] sm:$0xff] }
0x1239   :  { %v4666_v24 = vpop.eup %4665  ;;  %v3646_v38 = vsub.f32 1.5, %v3645_v41  ;;  %3802 = vmatpush.msra.mxu1 %v3784_v40  ;;  %v3782_v41 = vld [vmem:[%s7035_s3 + $0x68] sm:$0xff] }
0x123a   :  { %v3697_v56 = vmul.f32 %v4662_v17, %v3696_v46  ;;  %v3653_v32 = vmul.f32 %v4666_v24, %v3626_v10  ;;  %vm3659_vm6 = vweird.f32 %v4666_v24  ;;  %v3797_v46 = vld [vmem:[%s7035_s3 + $0xe0] sm:$0xff] }
0x123b   :  { %v3647_v31 = vmul.f32 %v4664_v19, %v3646_v38  ;;  %vm3660_vm8 = vmor %vm3658_vm7, %vm3659_vm6  ;;  %3803 = vmatpush.msra.mxu1 %v3783_v14  ;;  %v3796_v38 = vld [vmem:[%s7035_s3 + $0xd8] sm:$0xff]  ;;  %vm3764_vm7 = vcmask 785408  }
0x123c   :  { %v3654_v55 = vmul.f32 %v4666_v24, %v3653_v32  ;;  %v3701_v58 = vsel %vm3700_vm5, %v4662_v17, %v3697_v56  ;;  %v3795_v56 = vld [vmem:[%s7035_s3 + $0xd0] sm:$0xff] }
0x123d   :  { %v3651_v59 = vsel %vm3650_vm3, %v4664_v19, %v3647_v31  ;;  %v3718_v28 = vmul.f32 %v3701_v58, %v6796_v8  ;;  %3804 = vmatpush.msra.mxu1 %v3782_v41  ;;  %v3779_v32 = vld [vmem:[%s7035_s3 + $0x50] sm:$0xff]  ;;  %v3794_v31 = vld [vmem:[%s7035_s3 + $0xc8] sm:$0xff]  ;;  %v3777_v58 = vld [vmem:[%s7035_s3 + $0x40] sm:$0xff] }
0x123e   :  { %v3713_v44 = vmul.f32 %v3651_v59, %v6798_v47  ;;  %v3655_v26 = vmul.f32 0.5, %v3654_v55  ;;  %v3735_v47 = vadd.f32 %v6851_v5, %v3726_v29  ;;  %v3778_v55 = vld [vmem:[%s7035_s3 + $0x48] sm:$0xff]  ;;  %v3793_v59 = vld [vmem:[%s7035_s3 + $0xc0] sm:$0xff]  ;;  %v3791_v29 = vld [vmem:[%s7035_s3 + $0xb0] sm:$0xff] }
0x123f   :  { %v3727_v35 = vmul.f32 %v6844_v15, %v3718_v28  ;;  %v3774_v28 = vld [vmem:[%s7035_s3 + $0x28] sm:$0xff] }
0x1240   :  { %v3656_v51 = vsub.f32 1.5, %v3655_v26  ;;  %v3722_v1 = vmul.f32 %v6844_v15, %v3713_v44  ;;  %v3792_v44 = vld [vmem:[%s7035_s3 + $0xb8] sm:$0xff] }
0x1241   :  { %v3736_v8 = vadd.f32 %v6851_v5, %v3727_v35  ;;  %v3776_v26 = vld [vmem:[%s7035_s3 + $0x38] sm:$0xff] }
0x1242   :  { %v3657_v6 = vmul.f32 %v4666_v24, %v3656_v51  ;;  %v3731_v53 = vadd.f32 %v6851_v5, %v3722_v1  ;;  %v3775_v51 = vld [vmem:[%s7035_s3 + $0x30] sm:$0xff]  ;;  %v3790_v1 = vld [vmem:[%s7035_s3 + $0xa8] sm:$0xff] }
0x1244   :  { %v3661_v27 = vsel %vm3660_vm8, %v4666_v24, %v3657_v6  ;;  %v4344_v22 = vpack.i.bf16 %v3731_v53, %v3735_v47  ;;  %v3781_v24 = vld [vmem:[%s7035_s3 + $0x60] sm:$0xff]  ;;  %v3788_v53 = vld [vmem:[%s7035_s3 + $0x98] sm:$0xff]  ;;  %v3787_v47 = vld [vmem:[%s7035_s3 + $0x90] sm:$0xff] }
0x1245   :  { %v3714_v9 = vmul.f32 %v3661_v27, %v6808_v43  ;;  %3805 = vmatpush.msra.mxu1 %v3781_v24  ;;  %v3789_v6 = vld [vmem:[%s7035_s3 + $0xa0] sm:$0xff]  ;;  %v3786_v27 = vld [vmem:[%s7035_s3 + $0x88] sm:$0xff] }
0x1246   :  { %4345 = vrot.lane.b32.xlu2 %v4344_v22, %s4680_s24  ;;  %v3606_v22 = vpop.xlane.xlu0 %3605 }
0x1247   :  { %v3723_v63 = vmul.f32 %v6844_v15, %v3714_v9  ;;  %3806 = vmatpush.msra.mxu1 %v3780_v61  ;;  %v3620_v9 = vmul.f32 %v3606_v22, %v5672_v50  ;;  %v3855_v22 = vld [vmem:[%s7034_s5 + $0x5] ss:$0 sm:$0xff] }
0x1249   :  { %v3732_v33 = vadd.f32 %v6851_v5, %v3723_v63  ;;  %3807 = vmatpush.msra.mxu1 %v3779_v32  ;;  %v3628_v35 = vadd.f32 1e-05, %v3620_v9  ;;  %v3594_v63 = vpop.xlane.xlu1 %3593 }
0x124b   :  { %v4349_v11 = vpack.i.bf16 %v3732_v33, %v3736_v8  ;;  %3808 = vmatpush.msra.mxu1 %v3778_v55  ;;  %v3616_v33 = vmul.f32 %v3594_v63, %v5672_v50  ;;  %vm3678_vm2 = vweird.f32 %v3628_v35 }
0x124d   :  { %4350 = vrot.lane.b32.xlu0 %v4349_v11, %s4679_s23  ;;  %3809 = vmatpush.msra.mxu1 %v3777_v58  ;;  %v3624_v8 = vadd.f32 1e-05, %v3616_v33 }
0x124f   :  { %3810 = vmatpush.msra.mxu1 %v3776_v26  ;;  %vm3638_vm5 = vweird.f32 %v3624_v8  ;;  %v3847_v26 = vld [vmem:[%s7036_s4 + $0x20] sm:$0xff] }
0x1251   :  { %3811 = vmatpush.msra.mxu1 %v3775_v51  ;;  %v3843_v51 = vld [vmem:[%s7036_s4] sm:$0xff] }
0x1253   :  { %3812 = vmatpush.msra.mxu1 %v3774_v28 }
0x126f   :  { %v3615_v54 = vpop.xlane.xlu2 %3614 }
0x1270   :  { %v3623_v4 = vmul.f32 %v3615_v54, %v5672_v50 }
0x1272   :  { %v3631_v48 = vadd.f32 1e-05, %v3623_v4  ;;  %v3773_v4 = vld [vmem:[%s7035_s3 + $0x20] sm:$0xff] }
0x1273   :  { %3813 = vmatpush.msra.mxu1 %v3773_v4 }
0x1274   :  { %4667 = vrsqrt.f32 %v3631_v48  ;;  %vm3708_vm10 = vweird.f32 %v3631_v48 }
0x1277   :  { %v3603_v42 = vpop.xlane.xlu2 %3602 }
0x1278   :  { %v3619_v43 = vmul.f32 %v3603_v42, %v5672_v50 }
0x127a   :  { %v4668_v39 = vpop.eup %4667  ;;  %v3627_v7 = vadd.f32 1e-05, %v3619_v43  ;;  %v3772_v43 = vld [vmem:[%s7035_s3 + $0x18] sm:$0xff] }
0x127b   :  { %v3703_v52 = vmul.f32 %v4668_v39, %v3631_v48  ;;  %vm3709_vm9 = vweird.f32 %v4668_v39  ;;  %v3785_v48 = vld [vmem:[%s7035_s3 + $0x80] sm:$0xff]  ;;  %3814 = vmatpush.msra.mxu1 %v3772_v43 }
0x127c   :  { %4669 = vrsqrt.f32 %v3627_v7  ;;  %vm3710_vm11 = vmor %vm3708_vm10, %vm3709_vm9  ;;  %vm3668_vm14 = vweird.f32 %v3627_v7 }
0x127d   :  { %v3704_v0 = vmul.f32 %v4668_v39, %v3703_v52  ;;  %4671 = vrsqrt.f32 %v3628_v35 }
0x127e   :  { %4673 = vrsqrt.f32 %v3624_v8 }
0x127f   :  { %v3705_v18 = vmul.f32 0.5, %v3704_v0 }
0x1281   :  { %v3706_v3 = vsub.f32 1.5, %v3705_v18  ;;  %v3769_v18 = vld [vmem:[%s7035_s3] sm:$0xff] }
0x1282   :  { %v4670_v12 = vpop.eup %4669 }
0x1283   :  { %v3707_v2 = vmul.f32 %v4668_v39, %v3706_v3  ;;  %v3663_v20 = vmul.f32 %v4670_v12, %v3627_v7  ;;  %vm3669_vm13 = vweird.f32 %v4670_v12  ;;  %v4672_v11 = vpop.eup %4671  ;;  %v3770_v7 = vld [vmem:[%s7035_s3 + $0x8] sm:$0xff] }
0x1284   :  { %vm3670_vm15 = vmor %vm3668_vm14, %vm3669_vm13  ;;  %v3673_v54 = vmul.f32 %v4672_v11, %v3628_v35  ;;  %v4674_v50 = vpop.eup %4673  ;;  %vm3679_vm0 = vweird.f32 %v4672_v11 }
0x1285   :  { %v3711_v23 = vsel %vm3710_vm11, %v4668_v39, %v3707_v2  ;;  %v3664_v21 = vmul.f32 %v4670_v12, %v3663_v20  ;;  %v3771_v39 = vld [vmem:[%s7035_s3 + $0x10] sm:$0xff]  ;;  %v3633_v0 = vmul.f32 %v4674_v50, %v3624_v8  ;;  %v3854_v2 = vld [vmem:[%s7036_s4 + $0x58] sm:$0xff]  ;;  %vm3680_vm12 = vmor %vm3678_vm2, %vm3679_vm0  ;;  %vm3639_vm3 = vweird.f32 %v4674_v50 }
0x1286   :  { %v3719_v16 = vmul.f32 %v3711_v23, %v6825_v49  ;;  %v3800_v49 = vld [vmem:[%s7035_s3 + $0xf8] sm:$0xff]  ;;  %v3674_v42 = vmul.f32 %v4672_v11, %v3673_v54  ;;  %3815 = vmatpush.msra.mxu1 %v3771_v39  ;;  %v3853_v20 = vld [vmem:[%s7036_s4 + $0x50] sm:$0xff]  ;;  %v3852_v23 = vld [vmem:[%s7036_s4 + $0x48] sm:$0xff] }
0x1287   :  { %v3665_v62 = vmul.f32 0.5, %v3664_v21  ;;  %3822 = vmatpush.msrb.mxu3 %v3800_v49  ;;  %vm3640_vm6 = vmor %vm3638_vm5, %vm3639_vm3 }
0x1288   :  { %v3728_v30 = vmul.f32 %v6844_v15, %v3719_v16  ;;  %v3675_v52 = vmul.f32 0.5, %v3674_v42  ;;  %3816 = vmatpush.msra.mxu1 %v3770_v7  ;;  %v7075_v7 = vld [vmem:[#allocation3_spill] sm:$0xff] }
0x1289   :  { %v3666_v17 = vsub.f32 1.5, %v3665_v62  ;;  %3823 = vmatpush.msrb.mxu3 %v3799_v57  ;;  %v3851_v62 = vld [vmem:[%s7036_s4 + $0x40] sm:$0xff]  ;;  %vm3879_vm8 = vcmp.lt.s32.totalorder %v7075_v7, 8 }
0x128a   :  { %v3737_v10 = vadd.f32 %v6851_v5, %v3728_v30  ;;  %v3676_v3 = vsub.f32 1.5, %v3675_v52  ;;  %3817 = vmatpush.msra.mxu1 %v3769_v18  ;;  %v3850_v30 = vld [vmem:[%s7036_s4 + $0x38] sm:$0xff] }
0x128b   :  { %v3667_v19 = vmul.f32 %v4670_v12, %v3666_v17 }
0x128c   :  { %3759 = vrot.lane.b32.xlu1 %v3737_v10, %s4681_s25  ;;  %3863 = vmatpush.msrb.mxu1 %v3854_v2  ;;  %v3677_v21 = vmul.f32 %v4672_v11, %v3676_v3 }
0x128d   :  { %v3671_v34 = vsel %vm3670_vm15, %v4670_v12, %v3667_v19  ;;  %v3634_v12 = vmul.f32 %v4674_v50, %v3633_v0  ;;  %v3849_v19 = vld [vmem:[%s7036_s4 + $0x30] sm:$0xff] }
0x128e   :  { %v3715_v37 = vmul.f32 %v3671_v34, %v6831_v45  ;;  %v3798_v45 = vld [vmem:[%s7035_s3 + $0xe8] sm:$0xff]  ;;  %3864 = vmatpush.msrb.mxu1 %v3853_v20  ;;  %v3681_v17 = vsel %vm3680_vm12, %v4672_v11, %v3677_v21 }
0x128f   :  { %3824 = vmatpush.msrb.mxu3 %v3798_v45  ;;  %v3635_v16 = vmul.f32 0.5, %v3634_v12  ;;  %v3848_v34 = vld [vmem:[%s7036_s4 + $0x28] sm:$0xff] }
0x1290   :  { %v3724_v36 = vmul.f32 %v6844_v15, %v3715_v37  ;;  %3865 = vmatpush.msrb.mxu1 %v3852_v23  ;;  %v3716_v37 = vmul.f32 %v3681_v17, %v6810_v25 }
0x1291   :  { %3825 = vmatpush.msrb.mxu3 %v3797_v46  ;;  %v3636_v10 = vsub.f32 1.5, %v3635_v16 }
0x1292   :  { %v3733_v60 = vadd.f32 %v6851_v5, %v3724_v36  ;;  %3866 = vmatpush.msrb.mxu1 %v3851_v62  ;;  %v3725_v49 = vmul.f32 %v6844_v15, %v3716_v37 }
0x1293   :  { %3826 = vmatpush.msrb.mxu3 %v3796_v38  ;;  %v3637_v36 = vmul.f32 %v4674_v50, %v3636_v10 }
0x1294   :  { %3747 = vrot.lane.b32.xlu0 %v3733_v60, %s4681_s25  ;;  %3867 = vmatpush.msrb.mxu1 %v3850_v30  ;;  %v3734_v46 = vadd.f32 %v6851_v5, %v3725_v49 }
0x1295   :  { %3827 = vmatpush.msrb.mxu3 %v3795_v56  ;;  %v3641_v40 = vsel %vm3640_vm6, %v4674_v50, %v3637_v36 }
0x1296   :  { %3868 = vmatpush.msrb.mxu1 %v3849_v19  ;;  %v3712_v41 = vmul.f32 %v3641_v40, %v6819_v13 }
0x1297   :  { %3828 = vmatpush.msrb.mxu3 %v3794_v31 }
0x1298   :  { %3869 = vmatpush.msrb.mxu1 %v3848_v34  ;;  %v3721_v61 = vmul.f32 %v6844_v15, %v3712_v41  ;;  %v3846_v15 = vld [vmem:[%s7036_s4 + $0x18] sm:$0xff] }
0x1299   :  { %3829 = vmatpush.msrb.mxu3 %v3793_v59 }
0x129a   :  { %v3730_v55 = vadd.f32 %v6851_v5, %v3721_v61  ;;  %3870 = vmatpush.msrb.mxu1 %v3847_v26  ;;  %v3845_v5 = vld [vmem:[%s7036_s4 + $0x10] sm:$0xff] }
0x129b   :  { %3830 = vmatpush.msrb.mxu3 %v3792_v44 }
0x129c   :  { %3871 = vmatpush.msrb.mxu1 %v3846_v15 }
0x129d   :  { %3831 = vmatpush.msrb.mxu3 %v3791_v29  ;;  %v3844_v29 = vld [vmem:[%s7036_s4 + $0x8] sm:$0xff] }
0x129e   :  { %3872 = vmatpush.msrb.mxu1 %v3845_v5 }
0x129f   :  { %3832 = vmatpush.msrb.mxu3 %v3790_v1  ;;  %v3801_v1 = vld [vmem:[%s7034_s5 + $0x4] ss:$0 sm:$0xff] }
0x12a0   :  { %v4346_v60 = vpop.permute.xlu2 %4345  ;;  %3873 = vmatpush.msrb.mxu1 %v3844_v29 }
0x12a1   :  { %3833 = vmatpush.msrb.mxu3 %v3789_v6  ;;  %v4347_v45 = vunpack.i.l.bf16 %v4346_v60  ;;  %v4348_v32 = vunpack.i.h.bf16 %v4346_v60 }
0x12a2   :  { %3874 = vmatpush.msrb.mxu1 %v3843_v51 }
0x12a3   :  { %3834 = vmatpush.msrb.mxu3 %v3788_v53  ;;  %v3766_v25 = vsel %vm65_vm1, %v3734_v46, %v4347_v45  ;;  %v3762_v59 = vsel %vm65_vm1, %v3730_v55, %v4348_v32 }
0x12a5   :  { %3835 = vmatpush.msrb.mxu3 %v3787_v47 }
0x12a7   :  { %3836 = vmatpush.msrb.mxu3 %v3786_v27 }
0x12a9   :  { %3837 = vmatpush.msrb.mxu3 %v3785_v48 }
0x12bf   :  { %v4351_v57 = vpop.permute.xlu0 %4350 }
0x12c0   :  { %v4352_v14 = vunpack.i.l.bf16 %v4351_v57  ;;  %v4353_v31 = vunpack.i.h.bf16 %v4351_v57 }
0x12c2   :  { %v3767_v38 = vsel %vm374_vm4, %v3766_v25, %v4352_v14  ;;  %v3763_v58 = vsel %vm374_vm4, %v3762_v59, %v4353_v31 }
0x12fe   :  { %v3760_v24 = vpop.permute.xlu1 %3759 }
0x12ff   :  { %v3768_v56 = vsel %vm3764_vm7, %v3767_v38, %v3760_v24 }
0x1300   :  { %3838 = vmatmul.f32.vlgmr.msrb.gmra.mxu3 %v3768_v56 }
0x1306   :  { %v3748_v13 = vpop.permute.xlu0 %3747 }
0x1307   :  { %v3765_v44 = vsel %vm3764_vm7, %v3763_v58, %v3748_v13 }
0x1308   :  { %3818 = vmatmul.f32.vlgmr.msra.gmra.mxu1 %v3765_v44 }
0x1383   :  { %v3839_v53 = vpop.f32.mrf.mxu3 }
0x1385   :  { %v3819_v28 = vpop.f32.mrf.mxu1 }
0x1386   :  { %v3820_v6 = vadd.f32 %v3819_v28, %v3801_v1 }
0x1388   :  { %v3840_v47 = vadd.f32 %v3839_v53, %v3820_v6 }
0x138a   :  { %v3842_v27 = vmax.f32 %v3840_v47, 0.0 }
0x138c   :  { %4150 = vmatmul.msk.f32.vlgmr.msrb.gmra.mxu1 %vm3764_vm7, %v3842_v27 }
0x1409   :  { %v3876_v9 = vpop.f32.mrf.mxu1 }
0x140a   :  { %v3877_v35 = vadd.f32 %v3876_v9, %v3855_v22 }
0x140c   :  { %v3880_v63 = vsub.f32 0.0, %v3877_v35  ;;  %v3899_v18 = vmax.f32 %v3877_v35, 0.0 }
0x140e   :  { %v3881_v33 = vmul.f32 1.442695, %v3880_v63 }
0x1410   :  { %4675 = vpow2.f32 %v3881_v33 }
0x1416   :  { %v4676_v8 = vpop.eup %4675 }
0x1417   :  { %v3883_v11 = vadd.f32 1.0, %v4676_v8 }
0x1419   :  { %4677 = vrcp.f32 %v3883_v11  ;;  %v3895_v42 = vand.u32 2147483648, %v3883_v11  ;;  %v3893_v50 = vand.u32 2147483647, %v3883_v11  ;;  %vm3889_vm4 = vweird.f32 %v3883_v11 }
0x141b   :  { %v3896_v52 = vor.u32 1.1754944e-38, %v3895_v42  ;;  %vm3894_vm10 = vcmp.eq.f32.partialorder %v3893_v50, 8.507059e+37 }
0x141f   :  { %v4678_v54 = vpop.eup %4677 }
0x1420   :  { %v3885_v4 = vmul.f32 %v4678_v54, %v3883_v11  ;;  %vm3890_vm1 = vweird.f32 %v4678_v54 }
0x1421   :  { %vm3891_vm9 = vmor %vm3889_vm4, %vm3890_vm1 }
0x1422   :  { %v3886_v48 = vsub.f32 1.0, %v3885_v4 }
0x1424   :  { %v3887_v43 = vmul.f32 %v4678_v54, %v3886_v48 }
0x1426   :  { %v3888_v39 = vadd.f32 %v4678_v54, %v3887_v43 }
0x1428   :  { %v3892_v0 = vsel %vm3891_vm9, %v4678_v54, %v3888_v39 }
0x1429   :  { %v3897_v3 = vsel %vm3894_vm10, %v3896_v52, %v3892_v0 }
0x142a   :  { %v3900_v12 = vsel %vm3879_vm8, %v3897_v3, %v3899_v18 }
0x142b   :  { %3901 = vst [vmem:[%s7037_s6] sm:$0xff] %v3900_v12 }

</bundles_post_ra>
